<compile_context>
chip_gen: v7x
topology: tpu7x:2x2x1
jax: 0.10.0
libtpu: 0.0.40
codegen_flags: <defaults>
</compile_context>

<pallas_src>
import functools

import jax
import jax.numpy as jnp
import numpy as np
from jax.experimental import pallas as pl
from jax.experimental.pallas import tpu as pltpu


def _fused_separate_head_kernel(*refs, H, W, cin, c1, c_mxu, c_store, n_mid):
    """Fully fused SeparateHead forward for one batch element.

    Ref order (inputs, outputs, scratch):
      x_ref   (1, H, W, cin)           input tile (NHWC)
      w0_ref  (3, 3, cin, c1)          layer-0 weights, all heads concat on Cout (BN-folded)
      s0_ref  (1, c1)                  layer-0 per-channel shift (folded BN)
      [wm_ref (n_mid, 3, 3, c1, c1)]   middle layers, block-diagonal over heads
      [sm_ref (n_mid, 1, c1)]
      wf_ref  (3, 3, c1, c_mxu)        final conv, block-diagonal, zero-padded to c_mxu (x128)
      bf_ref  (1, c_mxu)               final conv bias (zero-padded)
      o_ref   (1, c_store, H*W)        NCHW-flattened, lane-dense output slab
      pad_x   (H+2, W+2, cin)  VMEM    zero-padded input
      pad_a   (H+2, W+2, c1)   VMEM    zero-padded intermediate (ping)
      [pad_b  (H+2, W+2, c1)   VMEM]   zero-padded intermediate (pong)
    """
    pos = 0
    x_ref = refs[pos]; pos += 1
    w0_ref, s0_ref = refs[pos], refs[pos + 1]; pos += 2
    if n_mid > 0:
        wm_ref, sm_ref = refs[pos], refs[pos + 1]; pos += 2
    wf_ref, bf_ref = refs[pos], refs[pos + 1]; pos += 2
    o_ref = refs[pos]; pos += 1
    pad_x, pad_a = refs[pos], refs[pos + 1]; pos += 2
    pad_b = refs[pos + 2] if n_mid > 0 else None

    HW = H * W

    def conv3x3(src_ref, get_w, c_in_l, c_out_l):
        # 9 per-tap matmuls over the whole image: (H*W, Cin) @ (Cin, Cout), f32 acc.
        acc = jnp.zeros((HW, c_out_l), jnp.float32)
        for dy in range(3):
            for dx in range(3):
                tap = src_ref[pl.ds(dy, H), pl.ds(dx, W), :]
                tap = tap.reshape(HW, c_in_l)
                acc = acc + jnp.dot(tap, get_w(dy, dx),
                                    preferred_element_type=jnp.float32)
        return acc

    # In-kernel zero padding: cheap VMEM memset of the halo buffers.
    pad_x[...] = jnp.zeros_like(pad_x)
    pad_a[...] = jnp.zeros_like(pad_a)
    if n_mid > 0:
        pad_b[...] = jnp.zeros_like(pad_b)
    pad_x[pl.ds(1, H), pl.ds(1, W), :] = x_ref[0].astype(pad_x.dtype)

    # Layer 0: shared input -> every head's first conv (batched along Cout),
    # folded-BN shift + ReLU.  Shift broadcast hoisted out of the tap loop.
    shift0 = s0_ref[...]                                        # (1, c1)
    a = conv3x3(pad_x, lambda dy, dx: w0_ref[dy, dx], cin, c1)
    a = jnp.maximum(a + shift0, 0.0)
    pad_a[pl.ds(1, H), pl.ds(1, W), :] = a.reshape(H, W, c1).astype(pad_a.dtype)

    # Middle layers (block-diagonal across heads), folded-BN shift + ReLU.
    cur, nxt = pad_a, pad_b
    for k in range(n_mid):
        shiftk = sm_ref[k]                                      # (1, c1)
        a = conv3x3(cur, lambda dy, dx, k=k: wm_ref[k, dy, dx], c1, c1)
        a = jnp.maximum(a + shiftk, 0.0)
        nxt[pl.ds(1, H), pl.ds(1, W), :] = a.reshape(H, W, c1).astype(nxt.dtype)
        cur, nxt = nxt, cur

    # Final conv (block-diagonal, bias, no activation).  Accumulate lane-aligned
    # (H*W, c_mxu), transpose once (XLU) to a lane-dense (c_mxu, H*W) slab — this
    # flattened layout IS NCHW — then store the first c_store channels.
    accf = conv3x3(cur, lambda dy, dx: wf_ref[dy, dx], c1, c_mxu)
    accf = accf + bf_ref[...]                                   # (1, c_mxu) broadcast
    out_t = jnp.transpose(accf, (1, 0))                         # (c_mxu, H*W)
    o_ref[0] = out_t[:c_store, :].astype(o_ref.dtype)


def separate_head_forward(packed, x_nchw):
    """SeparateHead.forward: dict of per-head NCHW outputs (single fused kernel)."""
    N, Cin, H, W = x_nchw.shape
    assert Cin == packed['cin']
    assert (H * W) % 128 == 0 and W % 8 == 0, "spatial dims must be TPU-tile friendly"

    c1, c_mxu, c_store, n_mid = (packed['c1'], packed['c_mxu'],
                                 packed['c_store'], packed['n_mid'])
    cdt = packed['compute_dtype']
    x_nhwc = jnp.transpose(x_nchw, (0, 2, 3, 1)).astype(cdt)    # NCHW -> NHWC, once

    inputs = [x_nhwc, packed['w0'], packed['s0']]
    in_specs = [
        pl.BlockSpec((1, H, W, Cin), lambda n: (n, 0, 0, 0)),
        pl.BlockSpec((3, 3, Cin, c1), lambda n: (0, 0, 0, 0)),
        pl.BlockSpec((1, c1), lambda n: (0, 0)),
    ]
    if n_mid > 0:
        inputs += [packed['wm'], packed['sm']]
        in_specs += [
            pl.BlockSpec((n_mid, 3, 3, c1, c1), lambda n: (0, 0, 0, 0, 0)),
            pl.BlockSpec((n_mid, 1, c1), lambda n: (0, 0, 0)),
        ]
    inputs += [packed['wf'], packed['bf']]
    in_specs += [
        pl.BlockSpec((3, 3, c1, c_mxu), lambda n: (0, 0, 0, 0)),
        pl.BlockSpec((1, c_mxu), lambda n: (0, 0)),
    ]

    scratch = [pltpu.VMEM((H + 2, W + 2, Cin), cdt),
               pltpu.VMEM((H + 2, W + 2, c1), cdt)]
    if n_mid > 0:
        scratch.append(pltpu.VMEM((H + 2, W + 2, c1), cdt))

    kernel = functools.partial(
        _fused_separate_head_kernel, H=H, W=W, cin=Cin, c1=c1,
        c_mxu=c_mxu, c_store=c_store, n_mid=n_mid)

    out_flat = pl.pallas_call(
        kernel,
        out_shape=jax.ShapeDtypeStruct((N, c_store, H * W), x_nchw.dtype),
        grid=(N,),
        in_specs=in_specs,
        out_specs=pl.BlockSpec((1, c_store, H * W), lambda n: (n, 0, 0)),
        scratch_shapes=scratch,
        compiler_params=pltpu.CompilerParams(
            dimension_semantics=("parallel",)),   # both v7x TensorCores get work
    )(*inputs)

    # out_flat is NCHW-flattened; per-head outputs are just slices + reshape.
    ret = {}
    for name, off, c in packed['head_slices']:
        ret[name] = out_flat[:, off:off + c, :].reshape(N, c, H, W)
    return ret


def init_separate_head_params(key, input_channels, sep_head_dict,
                              init_bias=-2.19, use_bias=False):
    """Deterministic synthetic parameters mirroring SeparateHead.__init__ shapes.

    Conv weights stored HWIO (kH, kW, Cin, Cout); BN folded into (scale, shift).
    """
    eps = 1e-5
    params = {}
    for cur_name, cfg in sep_head_dict.items():
        out_channels = cfg['out_channels']
        num_conv = cfg['num_conv']
        layers = []
        fan_in = float(input_channels * 9)
        for _ in range(num_conv - 1):
            key, wk = jax.random.split(key)
            w = jax.random.normal(wk, (3, 3, input_channels, input_channels),
                                  jnp.float32) * jnp.sqrt(2.0 / fan_in)
            # Folded inference BatchNorm2d (gamma=1, beta=0, mean=0, var=1).
            scale = jnp.full((input_channels,), 1.0 / np.sqrt(1.0 + eps), jnp.float32)
            shift = jnp.zeros((input_channels,), jnp.float32)
            layers.append(dict(w=w, scale=scale, shift=shift, relu=True))
        key, wk = jax.random.split(key)
        w = jax.random.normal(wk, (3, 3, input_channels, out_channels),
                              jnp.float32) * jnp.sqrt(2.0 / fan_in)
        bias = (jnp.full((out_channels,), init_bias, jnp.float32) if 'hm' in cur_name
                else jnp.zeros((out_channels,), jnp.float32))
        layers.append(dict(w=w, scale=jnp.ones((out_channels,), jnp.float32),
                           shift=bias, relu=False))
        params[cur_name] = layers
    return params


def pack_separate_head_params(raw_params, input_channels, sep_head_dict,
                              compute_dtype=jnp.float32):
    """Pack per-head params into one fused parameter set (head batching + BN fold)."""
    head_names = list(sep_head_dict.keys())
    cin = input_channels
    c1 = len(head_names) * cin

    num_convs = {sep_head_dict[n]['num_conv'] for n in head_names}
    # TODO(synk): heads with differing num_conv would need per-group packing; standard
    # CenterPoint configs (and this test) use a shared num_conv.
    assert len(num_convs) == 1, "fused packing assumes all heads share num_conv"
    num_conv = num_convs.pop()
    assert num_conv >= 2
    n_mid = num_conv - 2

    couts = [sep_head_dict[n]['out_channels'] for n in head_names]
    offs = np.concatenate([[0], np.cumsum(couts)]).astype(np.int64)
    total = int(np.sum(couts))
    c_store = int(-(-total // 8) * 8)       # sublane-aligned store width
    c_mxu = int(-(-total // 128) * 128)     # lane-aligned width -> safe in-kernel transpose

    w0 = np.zeros((3, 3, cin, c1), np.float32)
    s0 = np.zeros((1, c1), np.float32)
    wm = np.zeros((n_mid, 3, 3, c1, c1), np.float32) if n_mid > 0 else None
    sm = np.zeros((n_mid, 1, c1), np.float32) if n_mid > 0 else None
    wf = np.zeros((3, 3, c1, c_mxu), np.float32)
    bf = np.zeros((1, c_mxu), np.float32)

    for h, name in enumerate(head_names):
        layers = raw_params[name]
        lo, hi = h * cin, (h + 1) * cin
        l0 = layers[0]
        w0[..., lo:hi] = np.asarray(l0['w']) * np.asarray(l0['scale'])[None, None, None, :]
        s0[0, lo:hi] = np.asarray(l0['shift'])
        for k in range(n_mid):
            lk = layers[1 + k]
            wm[k, :, :, lo:hi, lo:hi] = (np.asarray(lk['w']) *
                                         np.asarray(lk['scale'])[None, None, None, :])
            sm[k, 0, lo:hi] = np.asarray(lk['shift'])
        lf = layers[-1]
        off, c = int(offs[h]), couts[h]
        wf[:, :, lo:hi, off:off + c] = (np.asarray(lf['w']) *
                                        np.asarray(lf['scale'])[None, None, None, :])
        bf[0, off:off + c] = np.asarray(lf['shift'])

    packed = dict(
        cin=cin, c1=c1, c_mxu=c_mxu, c_store=c_store, n_mid=n_mid,
        compute_dtype=compute_dtype,
        w0=jnp.asarray(w0, compute_dtype), s0=jnp.asarray(s0),       # shifts stay f32
        wf=jnp.asarray(wf, compute_dtype), bf=jnp.asarray(bf),
        head_slices=[(name, int(offs[h]), int(couts[h]))
                     for h, name in enumerate(head_names)],
    )
    if n_mid > 0:
        packed['wm'] = jnp.asarray(wm, compute_dtype)
        packed['sm'] = jnp.asarray(sm)
    return packed


def _ref_forward(params, x_nchw):
    """Pure-JAX reference (XLA conv) for a sanity check."""
    x_nhwc = jnp.transpose(x_nchw, (0, 2, 3, 1))
    ret = {}
    for name, layers in params.items():
        h = x_nhwc
        for layer in layers:
            h = jax.lax.conv_general_dilated(
                h, layer['w'], window_strides=(1, 1), padding='SAME',
                dimension_numbers=('NHWC', 'HWIO', 'NHWC'))
            h = h * layer['scale'] + layer['shift']
            if layer['relu']:
                h = jnp.maximum(h, 0.0)
        ret[name] = jnp.transpose(h, (0, 3, 1, 2))
    return ret


if __name__ == "__main__":
    key = jax.random.PRNGKey(0)
    k_x, k_p = jax.random.split(key)

    B, C, H, W = 2, 32, 16, 16
    sep_head_dict = {
        'hm':     {'out_channels': 2, 'num_conv': 2},
        'center': {'out_channels': 2, 'num_conv': 2},
        'dim':    {'out_channels': 3, 'num_conv': 2},
    }

    x = jax.random.normal(k_x, (B, C, H, W), jnp.float32)        # NCHW, like torch
    raw_params = init_separate_head_params(k_p, C, sep_head_dict)
    # compute_dtype=jnp.bfloat16 is the v6e/v7x fast path (f32 accumulation kept);
    # f32 here so the numerical check against the XLA reference stays tight.
    packed = pack_separate_head_params(raw_params, C, sep_head_dict,
                                       compute_dtype=jnp.float32)

    fwd = jax.jit(functools.partial(separate_head_forward, packed))
    out = fwd(x)
    out = jax.tree_util.tree_map(jax.block_until_ready, out)

    ref = _ref_forward(raw_params, x)
    for name, cfg in sep_head_dict.items():
        assert out[name].shape == (B, cfg['out_channels'], H, W), out[name].shape
        np.testing.assert_allclose(np.asarray(out[name]), np.asarray(ref[name]),
                                   rtol=5e-2, atol=5e-2)

    print("KERNEL_OK")
</pallas_src>

<mosaic_0001>
module attributes {stable_mosaic.version = 11 : i64} {
  func.func @_fused_separate_head_kernel(%arg0: i32, %arg1: memref<1x16x16x32xf32, #tpu.memory_space<vmem>>, %arg2: memref<3x3x32x96xf32, #tpu.memory_space<vmem>>, %arg3: memref<1x96xf32, #tpu.memory_space<vmem>>, %arg4: memref<3x3x96x128xf32, #tpu.memory_space<vmem>>, %arg5: memref<1x128xf32, #tpu.memory_space<vmem>>, %arg6: memref<1x8x256xf32, #tpu.memory_space<vmem>>, %arg7: memref<18x18x32xf32, #tpu.memory_space<vmem>>, %arg8: memref<18x18x96xf32, #tpu.memory_space<vmem>>) attributes {dimension_semantics = [#tpu.dimension_semantics<parallel>], iteration_bounds = array<i64: 2>, scalar_prefetch = 0 : i64, scratch_operands = 2 : i64, tpu.core_type = #tpu.core_type<tc>, window_params = [{transform_indices = @transform_0, window_bounds = array<i64: 1, 16, 16, 32>}, {pipeline_mode = #tpu.pipeline_mode<synchronous>, transform_indices = @transform_1, window_bounds = array<i64: 3, 3, 32, 96>}, {pipeline_mode = #tpu.pipeline_mode<synchronous>, transform_indices = @transform_2, window_bounds = array<i64: 1, 96>}, {pipeline_mode = #tpu.pipeline_mode<synchronous>, transform_indices = @transform_3, window_bounds = array<i64: 3, 3, 96, 128>}, {pipeline_mode = #tpu.pipeline_mode<synchronous>, transform_indices = @transform_4, window_bounds = array<i64: 1, 128>}, {transform_indices = @transform_5, window_bounds = array<i64: 1, 8, 256>}]} {
    %cst = arith.constant 0.000000e+00 : f32
    %0 = vector.broadcast %cst : f32 to vector<18x18x32xf32>
    %c0 = arith.constant 0 : index
    %c0_0 = arith.constant 0 : index
    %c0_1 = arith.constant 0 : index
    %1 = vector.load %arg7[%c0, %c0_0, %c0_1] : memref<18x18x32xf32, #tpu.memory_space<vmem>>, vector<18x18x32xf32>
    tpu.vector_store %arg7[%c0, %c0_0, %c0_1], %0 {strides = array<i32>} : memref<18x18x32xf32, #tpu.memory_space<vmem>>, vector<18x18x32xf32>,
    %cst_2 = arith.constant 0.000000e+00 : f32
    %2 = vector.broadcast %cst_2 : f32 to vector<18x18x96xf32>
    %c0_3 = arith.constant 0 : index
    %c0_4 = arith.constant 0 : index
    %c0_5 = arith.constant 0 : index
    %3 = vector.load %arg8[%c0_3, %c0_4, %c0_5] : memref<18x18x96xf32, #tpu.memory_space<vmem>>, vector<18x18x96xf32>
    tpu.vector_store %arg8[%c0_3, %c0_4, %c0_5], %2 {strides = array<i32>} : memref<18x18x96xf32, #tpu.memory_space<vmem>>, vector<18x18x96xf32>,
    %c0_6 = arith.constant 0 : index
    %c0_7 = arith.constant 0 : index
    %c0_8 = arith.constant 0 : index
    %c0_9 = arith.constant 0 : index
    %4 = vector.load %arg1[%c0_6, %c0_7, %c0_8, %c0_9] : memref<1x16x16x32xf32, #tpu.memory_space<vmem>>, vector<1x16x16x32xf32>
    %5 = vector.shape_cast %4 : vector<1x16x16x32xf32> to vector<16x16x32xf32>
    %c1 = arith.constant 1 : index
    %c1_10 = arith.constant 1 : index
    %c0_11 = arith.constant 0 : index
    %6 = vector.load %arg7[%c1, %c1_10, %c0_11] : memref<18x18x32xf32, #tpu.memory_space<vmem>>, vector<16x16x32xf32>
    tpu.vector_store %arg7[%c1, %c1_10, %c0_11], %5 {strides = array<i32>} : memref<18x18x32xf32, #tpu.memory_space<vmem>>, vector<16x16x32xf32>,
    %c0_12 = arith.constant 0 : index
    %c0_13 = arith.constant 0 : index
    %7 = vector.load %arg3[%c0_12, %c0_13] : memref<1x96xf32, #tpu.memory_space<vmem>>, vector<1x96xf32>
    %cst_14 = arith.constant 0.000000e+00 : f32
    %8 = vector.broadcast %cst_14 : f32 to vector<256x96xf32>
    %c0_15 = arith.constant 0 : index
    %c0_16 = arith.constant 0 : index
    %c0_17 = arith.constant 0 : index
    %9 = vector.load %arg7[%c0_15, %c0_16, %c0_17] : memref<18x18x32xf32, #tpu.memory_space<vmem>>, vector<16x16x32xf32>
    %10 = vector.shape_cast %9 : vector<16x16x32xf32> to vector<256x32xf32>
    %c0_18 = arith.constant 0 : index
    %c0_19 = arith.constant 0 : index
    %c0_20 = arith.constant 0 : index
    %c0_21 = arith.constant 0 : index
    %11 = vector.load %arg2[%c0_18, %c0_19, %c0_20, %c0_21] : memref<3x3x32x96xf32, #tpu.memory_space<vmem>>, vector<1x1x32x96xf32>
    %12 = vector.shape_cast %11 : vector<1x1x32x96xf32> to vector<32x96xf32>
    %cst_22 = arith.constant dense<0.000000e+00> : vector<256x96xf32>
    %13 = tpu.matmul %10, %12, %cst_22 {dimension_numbers = #tpu.dot_dimension_numbers<[1], [0], [0], [1], [0, 0, 1, 1], [], []>} : vector<256x32xf32>, vector<32x96xf32>, vector<256x96xf32> -> vector<256x96xf32>
    %14 = arith.addf %8, %13 : vector<256x96xf32>
    %c0_23 = arith.constant 0 : index
    %c1_24 = arith.constant 1 : index
    %c0_25 = arith.constant 0 : index
    %15 = vector.load %arg7[%c0_23, %c1_24, %c0_25] : memref<18x18x32xf32, #tpu.memory_space<vmem>>, vector<16x16x32xf32>
    %16 = vector.shape_cast %15 : vector<16x16x32xf32> to vector<256x32xf32>
    %c0_26 = arith.constant 0 : index
    %c1_27 = arith.constant 1 : index
    %c0_28 = arith.constant 0 : index
    %c0_29 = arith.constant 0 : index
    %17 = vector.load %arg2[%c0_26, %c1_27, %c0_28, %c0_29] : memref<3x3x32x96xf32, #tpu.memory_space<vmem>>, vector<1x1x32x96xf32>
    %18 = vector.shape_cast %17 : vector<1x1x32x96xf32> to vector<32x96xf32>
    %cst_30 = arith.constant dense<0.000000e+00> : vector<256x96xf32>
    %19 = tpu.matmul %16, %18, %cst_30 {dimension_numbers = #tpu.dot_dimension_numbers<[1], [0], [0], [1], [0, 0, 1, 1], [], []>} : vector<256x32xf32>, vector<32x96xf32>, vector<256x96xf32> -> vector<256x96xf32>
    %20 = arith.addf %14, %19 : vector<256x96xf32>
    %c0_31 = arith.constant 0 : index
    %c2 = arith.constant 2 : index
    %c0_32 = arith.constant 0 : index
    %21 = vector.load %arg7[%c0_31, %c2, %c0_32] : memref<18x18x32xf32, #tpu.memory_space<vmem>>, vector<16x16x32xf32>
    %22 = vector.shape_cast %21 : vector<16x16x32xf32> to vector<256x32xf32>
    %c0_33 = arith.constant 0 : index
    %c2_34 = arith.constant 2 : index
    %c0_35 = arith.constant 0 : index
    %c0_36 = arith.constant 0 : index
    %23 = vector.load %arg2[%c0_33, %c2_34, %c0_35, %c0_36] : memref<3x3x32x96xf32, #tpu.memory_space<vmem>>, vector<1x1x32x96xf32>
    %24 = vector.shape_cast %23 : vector<1x1x32x96xf32> to vector<32x96xf32>
    %cst_37 = arith.constant dense<0.000000e+00> : vector<256x96xf32>
    %25 = tpu.matmul %22, %24, %cst_37 {dimension_numbers = #tpu.dot_dimension_numbers<[1], [0], [0], [1], [0, 0, 1, 1], [], []>} : vector<256x32xf32>, vector<32x96xf32>, vector<256x96xf32> -> vector<256x96xf32>
    %26 = arith.addf %20, %25 : vector<256x96xf32>
    %c1_38 = arith.constant 1 : index
    %c0_39 = arith.constant 0 : index
    %c0_40 = arith.constant 0 : index
    %27 = vector.load %arg7[%c1_38, %c0_39, %c0_40] : memref<18x18x32xf32, #tpu.memory_space<vmem>>, vector<16x16x32xf32>
    %28 = vector.shape_cast %27 : vector<16x16x32xf32> to vector<256x32xf32>
    %c1_41 = arith.constant 1 : index
    %c0_42 = arith.constant 0 : index
    %c0_43 = arith.constant 0 : index
    %c0_44 = arith.constant 0 : index
    %29 = vector.load %arg2[%c1_41, %c0_42, %c0_43, %c0_44] : memref<3x3x32x96xf32, #tpu.memory_space<vmem>>, vector<1x1x32x96xf32>
    %30 = vector.shape_cast %29 : vector<1x1x32x96xf32> to vector<32x96xf32>
    %cst_45 = arith.constant dense<0.000000e+00> : vector<256x96xf32>
    %31 = tpu.matmul %28, %30, %cst_45 {dimension_numbers = #tpu.dot_dimension_numbers<[1], [0], [0], [1], [0, 0, 1, 1], [], []>} : vector<256x32xf32>, vector<32x96xf32>, vector<256x96xf32> -> vector<256x96xf32>
    %32 = arith.addf %26, %31 : vector<256x96xf32>
    %c1_46 = arith.constant 1 : index
    %c1_47 = arith.constant 1 : index
    %c0_48 = arith.constant 0 : index
    %33 = vector.load %arg7[%c1_46, %c1_47, %c0_48] : memref<18x18x32xf32, #tpu.memory_space<vmem>>, vector<16x16x32xf32>
    %34 = vector.shape_cast %33 : vector<16x16x32xf32> to vector<256x32xf32>
    %c1_49 = arith.constant 1 : index
    %c1_50 = arith.constant 1 : index
    %c0_51 = arith.constant 0 : index
    %c0_52 = arith.constant 0 : index
    %35 = vector.load %arg2[%c1_49, %c1_50, %c0_51, %c0_52] : memref<3x3x32x96xf32, #tpu.memory_space<vmem>>, vector<1x1x32x96xf32>
    %36 = vector.shape_cast %35 : vector<1x1x32x96xf32> to vector<32x96xf32>
    %cst_53 = arith.constant dense<0.000000e+00> : vector<256x96xf32>
    %37 = tpu.matmul %34, %36, %cst_53 {dimension_numbers = #tpu.dot_dimension_numbers<[1], [0], [0], [1], [0, 0, 1, 1], [], []>} : vector<256x32xf32>, vector<32x96xf32>, vector<256x96xf32> -> vector<256x96xf32>
    %38 = arith.addf %32, %37 : vector<256x96xf32>
    %c1_54 = arith.constant 1 : index
    %c2_55 = arith.constant 2 : index
    %c0_56 = arith.constant 0 : index
    %39 = vector.load %arg7[%c1_54, %c2_55, %c0_56] : memref<18x18x32xf32, #tpu.memory_space<vmem>>, vector<16x16x32xf32>
    %40 = vector.shape_cast %39 : vector<16x16x32xf32> to vector<256x32xf32>
    %c1_57 = arith.constant 1 : index
    %c2_58 = arith.constant 2 : index
    %c0_59 = arith.constant 0 : index
    %c0_60 = arith.constant 0 : index
    %41 = vector.load %arg2[%c1_57, %c2_58, %c0_59, %c0_60] : memref<3x3x32x96xf32, #tpu.memory_space<vmem>>, vector<1x1x32x96xf32>
    %42 = vector.shape_cast %41 : vector<1x1x32x96xf32> to vector<32x96xf32>
    %cst_61 = arith.constant dense<0.000000e+00> : vector<256x96xf32>
    %43 = tpu.matmul %40, %42, %cst_61 {dimension_numbers = #tpu.dot_dimension_numbers<[1], [0], [0], [1], [0, 0, 1, 1], [], []>} : vector<256x32xf32>, vector<32x96xf32>, vector<256x96xf32> -> vector<256x96xf32>
    %44 = arith.addf %38, %43 : vector<256x96xf32>
    %c2_62 = arith.constant 2 : index
    %c0_63 = arith.constant 0 : index
    %c0_64 = arith.constant 0 : index
    %45 = vector.load %arg7[%c2_62, %c0_63, %c0_64] : memref<18x18x32xf32, #tpu.memory_space<vmem>>, vector<16x16x32xf32>
    %46 = vector.shape_cast %45 : vector<16x16x32xf32> to vector<256x32xf32>
    %c2_65 = arith.constant 2 : index
    %c0_66 = arith.constant 0 : index
    %c0_67 = arith.constant 0 : index
    %c0_68 = arith.constant 0 : index
    %47 = vector.load %arg2[%c2_65, %c0_66, %c0_67, %c0_68] : memref<3x3x32x96xf32, #tpu.memory_space<vmem>>, vector<1x1x32x96xf32>
    %48 = vector.shape_cast %47 : vector<1x1x32x96xf32> to vector<32x96xf32>
    %cst_69 = arith.constant dense<0.000000e+00> : vector<256x96xf32>
    %49 = tpu.matmul %46, %48, %cst_69 {dimension_numbers = #tpu.dot_dimension_numbers<[1], [0], [0], [1], [0, 0, 1, 1], [], []>} : vector<256x32xf32>, vector<32x96xf32>, vector<256x96xf32> -> vector<256x96xf32>
    %50 = arith.addf %44, %49 : vector<256x96xf32>
    %c2_70 = arith.constant 2 : index
    %c1_71 = arith.constant 1 : index
    %c0_72 = arith.constant 0 : index
    %51 = vector.load %arg7[%c2_70, %c1_71, %c0_72] : memref<18x18x32xf32, #tpu.memory_space<vmem>>, vector<16x16x32xf32>
    %52 = vector.shape_cast %51 : vector<16x16x32xf32> to vector<256x32xf32>
    %c2_73 = arith.constant 2 : index
    %c1_74 = arith.constant 1 : index
    %c0_75 = arith.constant 0 : index
    %c0_76 = arith.constant 0 : index
    %53 = vector.load %arg2[%c2_73, %c1_74, %c0_75, %c0_76] : memref<3x3x32x96xf32, #tpu.memory_space<vmem>>, vector<1x1x32x96xf32>
    %54 = vector.shape_cast %53 : vector<1x1x32x96xf32> to vector<32x96xf32>
    %cst_77 = arith.constant dense<0.000000e+00> : vector<256x96xf32>
    %55 = tpu.matmul %52, %54, %cst_77 {dimension_numbers = #tpu.dot_dimension_numbers<[1], [0], [0], [1], [0, 0, 1, 1], [], []>} : vector<256x32xf32>, vector<32x96xf32>, vector<256x96xf32> -> vector<256x96xf32>
    %56 = arith.addf %50, %55 : vector<256x96xf32>
    %c2_78 = arith.constant 2 : index
    %c2_79 = arith.constant 2 : index
    %c0_80 = arith.constant 0 : index
    %57 = vector.load %arg7[%c2_78, %c2_79, %c0_80] : memref<18x18x32xf32, #tpu.memory_space<vmem>>, vector<16x16x32xf32>
    %58 = vector.shape_cast %57 : vector<16x16x32xf32> to vector<256x32xf32>
    %c2_81 = arith.constant 2 : index
    %c2_82 = arith.constant 2 : index
    %c0_83 = arith.constant 0 : index
    %c0_84 = arith.constant 0 : index
    %59 = vector.load %arg2[%c2_81, %c2_82, %c0_83, %c0_84] : memref<3x3x32x96xf32, #tpu.memory_space<vmem>>, vector<1x1x32x96xf32>
    %60 = vector.shape_cast %59 : vector<1x1x32x96xf32> to vector<32x96xf32>
    %cst_85 = arith.constant dense<0.000000e+00> : vector<256x96xf32>
    %61 = tpu.matmul %58, %60, %cst_85 {dimension_numbers = #tpu.dot_dimension_numbers<[1], [0], [0], [1], [0, 0, 1, 1], [], []>} : vector<256x32xf32>, vector<32x96xf32>, vector<256x96xf32> -> vector<256x96xf32>
    %62 = arith.addf %56, %61 : vector<256x96xf32>
    %63 = vector.broadcast %7 : vector<1x96xf32> to vector<256x96xf32>
    %64 = arith.addf %62, %63 : vector<256x96xf32>
    %cst_86 = arith.constant 0.000000e+00 : f32
    %65 = vector.broadcast %cst_86 : f32 to vector<256x96xf32>
    %66 = arith.maximumf %64, %65 : vector<256x96xf32>
    %67 = vector.shape_cast %66 : vector<256x96xf32> to vector<16x16x96xf32>
    %c1_87 = arith.constant 1 : index
    %c1_88 = arith.constant 1 : index
    %c0_89 = arith.constant 0 : index
    %68 = vector.load %arg8[%c1_87, %c1_88, %c0_89] : memref<18x18x96xf32, #tpu.memory_space<vmem>>, vector<16x16x96xf32>
    tpu.vector_store %arg8[%c1_87, %c1_88, %c0_89], %67 {strides = array<i32>} : memref<18x18x96xf32, #tpu.memory_space<vmem>>, vector<16x16x96xf32>,
    %cst_90 = arith.constant 0.000000e+00 : f32
    %69 = vector.broadcast %cst_90 : f32 to vector<256x128xf32>
    %c0_91 = arith.constant 0 : index
    %c0_92 = arith.constant 0 : index
    %c0_93 = arith.constant 0 : index
    %70 = vector.load %arg8[%c0_91, %c0_92, %c0_93] : memref<18x18x96xf32, #tpu.memory_space<vmem>>, vector<16x16x96xf32>
    %71 = vector.shape_cast %70 : vector<16x16x96xf32> to vector<256x96xf32>
    %c0_94 = arith.constant 0 : index
    %c0_95 = arith.constant 0 : index
    %c0_96 = arith.constant 0 : index
    %c0_97 = arith.constant 0 : index
    %72 = vector.load %arg4[%c0_94, %c0_95, %c0_96, %c0_97] : memref<3x3x96x128xf32, #tpu.memory_space<vmem>>, vector<1x1x96x128xf32>
    %73 = vector.shape_cast %72 : vector<1x1x96x128xf32> to vector<96x128xf32>
    %cst_98 = arith.constant dense<0.000000e+00> : vector<256x128xf32>
    %74 = tpu.matmul %71, %73, %cst_98 {dimension_numbers = #tpu.dot_dimension_numbers<[1], [0], [0], [1], [0, 0, 1, 1], [], []>} : vector<256x96xf32>, vector<96x128xf32>, vector<256x128xf32> -> vector<256x128xf32>
    %75 = arith.addf %69, %74 : vector<256x128xf32>
    %c0_99 = arith.constant 0 : index
    %c1_100 = arith.constant 1 : index
    %c0_101 = arith.constant 0 : index
    %76 = vector.load %arg8[%c0_99, %c1_100, %c0_101] : memref<18x18x96xf32, #tpu.memory_space<vmem>>, vector<16x16x96xf32>
    %77 = vector.shape_cast %76 : vector<16x16x96xf32> to vector<256x96xf32>
    %c0_102 = arith.constant 0 : index
    %c1_103 = arith.constant 1 : index
    %c0_104 = arith.constant 0 : index
    %c0_105 = arith.constant 0 : index
    %78 = vector.load %arg4[%c0_102, %c1_103, %c0_104, %c0_105] : memref<3x3x96x128xf32, #tpu.memory_space<vmem>>, vector<1x1x96x128xf32>
    %79 = vector.shape_cast %78 : vector<1x1x96x128xf32> to vector<96x128xf32>
    %cst_106 = arith.constant dense<0.000000e+00> : vector<256x128xf32>
    %80 = tpu.matmul %77, %79, %cst_106 {dimension_numbers = #tpu.dot_dimension_numbers<[1], [0], [0], [1], [0, 0, 1, 1], [], []>} : vector<256x96xf32>, vector<96x128xf32>, vector<256x128xf32> -> vector<256x128xf32>
    %81 = arith.addf %75, %80 : vector<256x128xf32>
    %c0_107 = arith.constant 0 : index
    %c2_108 = arith.constant 2 : index
    %c0_109 = arith.constant 0 : index
    %82 = vector.load %arg8[%c0_107, %c2_108, %c0_109] : memref<18x18x96xf32, #tpu.memory_space<vmem>>, vector<16x16x96xf32>
    %83 = vector.shape_cast %82 : vector<16x16x96xf32> to vector<256x96xf32>
    %c0_110 = arith.constant 0 : index
    %c2_111 = arith.constant 2 : index
    %c0_112 = arith.constant 0 : index
    %c0_113 = arith.constant 0 : index
    %84 = vector.load %arg4[%c0_110, %c2_111, %c0_112, %c0_113] : memref<3x3x96x128xf32, #tpu.memory_space<vmem>>, vector<1x1x96x128xf32>
    %85 = vector.shape_cast %84 : vector<1x1x96x128xf32> to vector<96x128xf32>
    %cst_114 = arith.constant dense<0.000000e+00> : vector<256x128xf32>
    %86 = tpu.matmul %83, %85, %cst_114 {dimension_numbers = #tpu.dot_dimension_numbers<[1], [0], [0], [1], [0, 0, 1, 1], [], []>} : vector<256x96xf32>, vector<96x128xf32>, vector<256x128xf32> -> vector<256x128xf32>
    %87 = arith.addf %81, %86 : vector<256x128xf32>
    %c1_115 = arith.constant 1 : index
    %c0_116 = arith.constant 0 : index
    %c0_117 = arith.constant 0 : index
    %88 = vector.load %arg8[%c1_115, %c0_116, %c0_117] : memref<18x18x96xf32, #tpu.memory_space<vmem>>, vector<16x16x96xf32>
    %89 = vector.shape_cast %88 : vector<16x16x96xf32> to vector<256x96xf32>
    %c1_118 = arith.constant 1 : index
    %c0_119 = arith.constant 0 : index
    %c0_120 = arith.constant 0 : index
    %c0_121 = arith.constant 0 : index
    %90 = vector.load %arg4[%c1_118, %c0_119, %c0_120, %c0_121] : memref<3x3x96x128xf32, #tpu.memory_space<vmem>>, vector<1x1x96x128xf32>
    %91 = vector.shape_cast %90 : vector<1x1x96x128xf32> to vector<96x128xf32>
    %cst_122 = arith.constant dense<0.000000e+00> : vector<256x128xf32>
    %92 = tpu.matmul %89, %91, %cst_122 {dimension_numbers = #tpu.dot_dimension_numbers<[1], [0], [0], [1], [0, 0, 1, 1], [], []>} : vector<256x96xf32>, vector<96x128xf32>, vector<256x128xf32> -> vector<256x128xf32>
    %93 = arith.addf %87, %92 : vector<256x128xf32>
    %c1_123 = arith.constant 1 : index
    %c1_124 = arith.constant 1 : index
    %c0_125 = arith.constant 0 : index
    %94 = vector.load %arg8[%c1_123, %c1_124, %c0_125] : memref<18x18x96xf32, #tpu.memory_space<vmem>>, vector<16x16x96xf32>
    %95 = vector.shape_cast %94 : vector<16x16x96xf32> to vector<256x96xf32>
    %c1_126 = arith.constant 1 : index
    %c1_127 = arith.constant 1 : index
    %c0_128 = arith.constant 0 : index
    %c0_129 = arith.constant 0 : index
    %96 = vector.load %arg4[%c1_126, %c1_127, %c0_128, %c0_129] : memref<3x3x96x128xf32, #tpu.memory_space<vmem>>, vector<1x1x96x128xf32>
    %97 = vector.shape_cast %96 : vector<1x1x96x128xf32> to vector<96x128xf32>
    %cst_130 = arith.constant dense<0.000000e+00> : vector<256x128xf32>
    %98 = tpu.matmul %95, %97, %cst_130 {dimension_numbers = #tpu.dot_dimension_numbers<[1], [0], [0], [1], [0, 0, 1, 1], [], []>} : vector<256x96xf32>, vector<96x128xf32>, vector<256x128xf32> -> vector<256x128xf32>
    %99 = arith.addf %93, %98 : vector<256x128xf32>
    %c1_131 = arith.constant 1 : index
    %c2_132 = arith.constant 2 : index
    %c0_133 = arith.constant 0 : index
    %100 = vector.load %arg8[%c1_131, %c2_132, %c0_133] : memref<18x18x96xf32, #tpu.memory_space<vmem>>, vector<16x16x96xf32>
    %101 = vector.shape_cast %100 : vector<16x16x96xf32> to vector<256x96xf32>
    %c1_134 = arith.constant 1 : index
    %c2_135 = arith.constant 2 : index
    %c0_136 = arith.constant 0 : index
    %c0_137 = arith.constant 0 : index
    %102 = vector.load %arg4[%c1_134, %c2_135, %c0_136, %c0_137] : memref<3x3x96x128xf32, #tpu.memory_space<vmem>>, vector<1x1x96x128xf32>
    %103 = vector.shape_cast %102 : vector<1x1x96x128xf32> to vector<96x128xf32>
    %cst_138 = arith.constant dense<0.000000e+00> : vector<256x128xf32>
    %104 = tpu.matmul %101, %103, %cst_138 {dimension_numbers = #tpu.dot_dimension_numbers<[1], [0], [0], [1], [0, 0, 1, 1], [], []>} : vector<256x96xf32>, vector<96x128xf32>, vector<256x128xf32> -> vector<256x128xf32>
    %105 = arith.addf %99, %104 : vector<256x128xf32>
    %c2_139 = arith.constant 2 : index
    %c0_140 = arith.constant 0 : index
    %c0_141 = arith.constant 0 : index
    %106 = vector.load %arg8[%c2_139, %c0_140, %c0_141] : memref<18x18x96xf32, #tpu.memory_space<vmem>>, vector<16x16x96xf32>
    %107 = vector.shape_cast %106 : vector<16x16x96xf32> to vector<256x96xf32>
    %c2_142 = arith.constant 2 : index
    %c0_143 = arith.constant 0 : index
    %c0_144 = arith.constant 0 : index
    %c0_145 = arith.constant 0 : index
    %108 = vector.load %arg4[%c2_142, %c0_143, %c0_144, %c0_145] : memref<3x3x96x128xf32, #tpu.memory_space<vmem>>, vector<1x1x96x128xf32>
    %109 = vector.shape_cast %108 : vector<1x1x96x128xf32> to vector<96x128xf32>
    %cst_146 = arith.constant dense<0.000000e+00> : vector<256x128xf32>
    %110 = tpu.matmul %107, %109, %cst_146 {dimension_numbers = #tpu.dot_dimension_numbers<[1], [0], [0], [1], [0, 0, 1, 1], [], []>} : vector<256x96xf32>, vector<96x128xf32>, vector<256x128xf32> -> vector<256x128xf32>
    %111 = arith.addf %105, %110 : vector<256x128xf32>
    %c2_147 = arith.constant 2 : index
    %c1_148 = arith.constant 1 : index
    %c0_149 = arith.constant 0 : index
    %112 = vector.load %arg8[%c2_147, %c1_148, %c0_149] : memref<18x18x96xf32, #tpu.memory_space<vmem>>, vector<16x16x96xf32>
    %113 = vector.shape_cast %112 : vector<16x16x96xf32> to vector<256x96xf32>
    %c2_150 = arith.constant 2 : index
    %c1_151 = arith.constant 1 : index
    %c0_152 = arith.constant 0 : index
    %c0_153 = arith.constant 0 : index
    %114 = vector.load %arg4[%c2_150, %c1_151, %c0_152, %c0_153] : memref<3x3x96x128xf32, #tpu.memory_space<vmem>>, vector<1x1x96x128xf32>
    %115 = vector.shape_cast %114 : vector<1x1x96x128xf32> to vector<96x128xf32>
    %cst_154 = arith.constant dense<0.000000e+00> : vector<256x128xf32>
    %116 = tpu.matmul %113, %115, %cst_154 {dimension_numbers = #tpu.dot_dimension_numbers<[1], [0], [0], [1], [0, 0, 1, 1], [], []>} : vector<256x96xf32>, vector<96x128xf32>, vector<256x128xf32> -> vector<256x128xf32>
    %117 = arith.addf %111, %116 : vector<256x128xf32>
    %c2_155 = arith.constant 2 : index
    %c2_156 = arith.constant 2 : index
    %c0_157 = arith.constant 0 : index
    %118 = vector.load %arg8[%c2_155, %c2_156, %c0_157] : memref<18x18x96xf32, #tpu.memory_space<vmem>>, vector<16x16x96xf32>
    %119 = vector.shape_cast %118 : vector<16x16x96xf32> to vector<256x96xf32>
    %c2_158 = arith.constant 2 : index
    %c2_159 = arith.constant 2 : index
    %c0_160 = arith.constant 0 : index
    %c0_161 = arith.constant 0 : index
    %120 = vector.load %arg4[%c2_158, %c2_159, %c0_160, %c0_161] : memref<3x3x96x128xf32, #tpu.memory_space<vmem>>, vector<1x1x96x128xf32>
    %121 = vector.shape_cast %120 : vector<1x1x96x128xf32> to vector<96x128xf32>
    %cst_162 = arith.constant dense<0.000000e+00> : vector<256x128xf32>
    %122 = tpu.matmul %119, %121, %cst_162 {dimension_numbers = #tpu.dot_dimension_numbers<[1], [0], [0], [1], [0, 0, 1, 1], [], []>} : vector<256x96xf32>, vector<96x128xf32>, vector<256x128xf32> -> vector<256x128xf32>
    %123 = arith.addf %117, %122 : vector<256x128xf32>
    %c0_163 = arith.constant 0 : index
    %c0_164 = arith.constant 0 : index
    %124 = vector.load %arg5[%c0_163, %c0_164] : memref<1x128xf32, #tpu.memory_space<vmem>>, vector<1x128xf32>
    %125 = vector.broadcast %124 : vector<1x128xf32> to vector<256x128xf32>
    %126 = arith.addf %123, %125 : vector<256x128xf32>
    %127 = tpu.transpose %126, [1, 0] : vector<256x128xf32> -> vector<128x256xf32>
    %128 = vector.extract_strided_slice %127 {offsets = [0, 0], sizes = [8, 256], strides = [1, 1]} : vector<128x256xf32> to vector<8x256xf32>
    %c0_165 = arith.constant 0 : index
    %c0_166 = arith.constant 0 : index
    %c0_167 = arith.constant 0 : index
    %129 = vector.load %arg6[%c0_165, %c0_166, %c0_167] : memref<1x8x256xf32, #tpu.memory_space<vmem>>, vector<1x8x256xf32>
    %130 = vector.shape_cast %129 : vector<1x8x256xf32> to vector<8x256xf32>
    %131 = vector.shape_cast %128 : vector<8x256xf32> to vector<1x8x256xf32>
    tpu.vector_store %arg6[%c0_165, %c0_166, %c0_167], %131 {strides = array<i32>} : memref<1x8x256xf32, #tpu.memory_space<vmem>>, vector<1x8x256xf32>,
    return
  }
  func.func @transform_0(%arg0: i32) -> (i32, i32, i32, i32) {
    %c0_i32 = arith.constant 0 : i32
    %c0_i32_0 = arith.constant 0 : i32
    %c0_i32_1 = arith.constant 0 : i32
    %c0_i32_2 = arith.constant 0 : i32
    return %arg0, %c0_i32, %c0_i32_0, %c0_i32_1 : i32, i32, i32, i32
  }
  func.func @transform_1(%arg0: i32) -> (i32, i32, i32, i32) {
    %c0_i32 = arith.constant 0 : i32
    %c0_i32_0 = arith.constant 0 : i32
    %c0_i32_1 = arith.constant 0 : i32
    %c0_i32_2 = arith.constant 0 : i32
    %c0_i32_3 = arith.constant 0 : i32
    return %c0_i32, %c0_i32_0, %c0_i32_1, %c0_i32_2 : i32, i32, i32, i32
  }
  func.func @transform_2(%arg0: i32) -> (i32, i32) {
    %c0_i32 = arith.constant 0 : i32
    %c0_i32_0 = arith.constant 0 : i32
    %c0_i32_1 = arith.constant 0 : i32
    return %c0_i32, %c0_i32_0 : i32, i32
  }
  func.func @transform_3(%arg0: i32) -> (i32, i32, i32, i32) {
    %c0_i32 = arith.constant 0 : i32
    %c0_i32_0 = arith.constant 0 : i32
    %c0_i32_1 = arith.constant 0 : i32
    %c0_i32_2 = arith.constant 0 : i32
    %c0_i32_3 = arith.constant 0 : i32
    return %c0_i32, %c0_i32_0, %c0_i32_1, %c0_i32_2 : i32, i32, i32, i32
  }
  func.func @transform_4(%arg0: i32) -> (i32, i32) {
    %c0_i32 = arith.constant 0 : i32
    %c0_i32_0 = arith.constant 0 : i32
    %c0_i32_1 = arith.constant 0 : i32
    return %c0_i32, %c0_i32_0 : i32, i32
  }
  func.func @transform_5(%arg0: i32) -> (i32, i32, i32) {
    %c0_i32 = arith.constant 0 : i32
    %c0_i32_0 = arith.constant 0 : i32
    %c0_i32_1 = arith.constant 0 : i32
    return %arg0, %c0_i32, %c0_i32_0 : i32, i32, i32
  }
}

</mosaic_0001>

<bundles_post_ra>
// kernel: separate_head_forward.1
= control target key start
LH: loop header
LB: loop body
LE: loop exit
PB: predicated region body
PF: predicated region fallthrough
CT: control target
= control target key end

     0   :  { %10 = vsyncpa [#allocation5], 0  ;;  %s13273_s0 = inlined_call_operand.hbm [shape: f32[2,16,16,32], index: 0, kind: input, shape index: {}]   ;;  %s13274_s1 = inlined_call_operand.hbm [shape: f32[3,3,32,96], index: 1, kind: input, shape index: {}]   ;;  %s13275_s2 = inlined_call_operand.vmem [shape: f32[1,96], index: 2, kind: input, shape index: {}]   ;;  %s13276_s3 = inlined_call_operand.hbm [shape: f32[3,3,96,128], index: 3, kind: input, shape index: {}]   ;;  %s13277_s4 = inlined_call_operand.vmem [shape: f32[1,128], index: 4, kind: input, shape index: {}]   ;;  %s13278_s5 = inlined_call_operand.vmem [shape: f32[2,8,256], index: 5, kind: output, shape index: {}]  }
   0x1   :  { %12 = vsyncpa [#allocation5 + $0x1], 0 }
   0x2   :  { %13 = vsyncpa [#allocation7], 0  ;;  %s11215_s18 = smov 0   ;;  %s11217_s19 = smov 0  }
   0x3   :  { %s11219_s20 = smov 0   ;;  %s11221_s21 = smov 0  }
   0x4 LB: > { %s11234_s22 = sadd.s32 4294967295, %s11177_s21   ;;  %p39_p0 = scmp.ne.s32.totalorder %s11169_s19, %s11165_s18  ;;  %s11177_s21 = sphi %s11221_s21, %s13542_s21   ;;  %s11173_s20 = sphi %s11219_s20, %s13541_s20   ;;  %s11169_s19 = sphi %s11217_s19, %s13540_s19   ;;  %s11165_s18 = sphi %s11215_s18, %s13539_s18  }
   0x5   : > { %p13279_p1 = scmp.eq.s32.totalorder %s11234_s22, 0  ;;  %p7711_p2 = scmp.ge.s32.totalorder %s11177_s21, 1 }
   0x6   : > { %p160_p3 = scmp.lt.s32.totalorder %s11177_s21, 3  ;;  %s11179_s25 = smov [#allocation6]  }
   0x7   : > { %p11242_p4 = por %p13279_p1, %p39_p0  ;;  %s172_s26 = sshll.u32 %s11179_s25, 4  ;;  %s173_s26 = int_to_ptr.vmem [resolvable:$true] %s172_s26 }
   0x8   : > { %p11246_p5 = pnand %p7711_p2, %p160_p3  ;;  %s11180_s28 = smov [#allocation8]  }
   0x9   : > { %s13379_s23 = scalar_select %p11242_p4, 1, 0 }
   0xa   : > { %s13380_s24 = scalar_select %p11246_p5, 1, 0 }
   0xb   : > { %p11000_p6 = pneg %p11246_p5  ;;  %s188_s29 = sshll.u32 %s11180_s28, 4  ;;  %s11258_s29 = int_to_ptr.vmem [resolvable:$true] %s188_s29 }
   0xc   : > { %s11053_s7 = scalar_lea.hbm %s13274_s1, 4608 }
   0xd   : > { %p11254_p7 = pnand %p11000_p6, %p13279_p1  ;;  %p11054_p8 = scmp.ne.s32.totalorder %s13274_s1, %s11053_s7 }
   0xe   : > { %p11060_p12 = scmp.lt.u32.totalorder %s11053_s7, %s13274_s1 }
   0xf   : > { %p11055_p9 = pneg %p11254_p7 }
  0x11   : > { %p11056_p10 = pnand %p11055_p9, %p11054_p8 }
  0x13   : > { %p11057_p11 = pneg %p11056_p10 }
  0x15   : > { %p11062_p13 = pnand %p11060_p12, %p11057_p11 }
  0x17   : > { %11065 = shalt.err (!%p11062_p13)
}
  0x18   : > { %s11066_s12 = scalar_lea.vmem %s173_s26, 4608  ;;  %p11074_p6 = scmp.lt.s32.totalorder %s173_s26, %s173_s26 }
  0x19   : > { %p11067_p0 = scmp.ne.s32.totalorder %s173_s26, %s11066_s12  ;;  %p11075_p1 = scmp.lt.s32.totalorder %s11066_s12, %s11066_s12 }
  0x1b   : > { %p11069_p2 = pnand %p11067_p0, %p11055_p9  ;;  %p11076_p4 = por %p11075_p1, %p11074_p6 }
  0x1d   : > { %p11070_p3 = pneg %p11069_p2 }
  0x1f   : > { %p11077_p5 = pnand %p11076_p4, %p11070_p3 }
  0x21   : > { %11080 = shalt.err (!%p11077_p5)
}
  0x22   : > { %s11181_s13 = smov 128   ;;  %s11182_s14 = smov 8  }
  0x23   : > { %11003 = dma.hbm_to_vmem [thread:$0]  (!%p11254_p7), %s13274_s1, 4608, %s173_s26, [#allocation7], %s11181_s13, %s11181_s13, %s11182_s14  }
  0x24   : > { %s11081_s25 = scalar_lea.hbm %s13276_s3, 13824 }
  0x25   : > { %p11082_p1 = scmp.ne.s32.totalorder %s13276_s3, %s11081_s25  ;;  %p11088_p8 = scmp.lt.u32.totalorder %s11081_s25, %s13276_s3 }
  0x27   : > { %p11084_p4 = pnand %p11082_p1, %p11055_p9 }
  0x29   : > { %p11085_p5 = pneg %p11084_p4 }
  0x2b   : > { %p11090_p10 = pnand %p11088_p8, %p11085_p5 }
  0x2d   : > { %11093 = shalt.err (!%p11090_p10)
}
  0x2e   : > { %s11094_s26 = scalar_lea.vmem %s11258_s29, 13824  ;;  %p11102_p0 = scmp.lt.s32.totalorder %s11258_s29, %s11258_s29 }
  0x2f   : > { %p11095_p11 = scmp.ne.s32.totalorder %s11258_s29, %s11094_s26  ;;  %p11103_p2 = scmp.lt.s32.totalorder %s11094_s26, %s11094_s26 }
  0x31   : > { %p11097_p12 = pnand %p11095_p11, %p11055_p9  ;;  %p11104_p3 = por %p11103_p2, %p11102_p0 }
  0x33   : > { %p11098_p13 = pneg %p11097_p12 }
  0x35   : > { %p11105_p6 = pnand %p11104_p3, %p11098_p13 }
  0x37   : > { %11108 = shalt.err (!%p11105_p6)
}
  0x38   : > { %11006 = dma.hbm_to_vmem [thread:$0]  (!%p11254_p7), %s13276_s3, 13824, %s11258_s29, [#allocation7], %s11181_s13, %s11181_s13, %s11182_s14  }
  0x39   : > { %s11314_s10 = sadd.s32 1, %s11177_s21   ;;  %s26_s27 = sadd.s32 1, %s11173_s20 }
  0x3a   : > { %s23_s11 = ssub.s32 %s11177_s21, %s11314_s10  ;;  %p33_p9 = scmp.ne.s32.totalorder %s11173_s20, %s11169_s19 }
  0x3b   : > { %p24_p1 = scmp.eq.s32.totalorder %s23_s11, 0  ;;  %p34_p4 = scmp.eq.s32.totalorder %s11177_s21, 0 }
  0x3c   : > { %p11013_p5 = scmp.lt.s32.totalorder %s11177_s21, 2  ;;  %s205_s12 = sand.u32 1, %s11173_s20  }
  0x3d   : > { %s11325_s15 = scalar_select %p24_p1, %s11173_s20, %s26_s27  }
  0x3e   : > { %p35_p8 = por %p34_p4, %p33_p9  ;;  %s7715_s16 = sshll.u32 %s205_s12, 8 }
  0x3f   : > { %s8304_s17 = sshll.u32 %s11177_s21, 12  ;;  %s209_s29 = scalar_lea.vmem [#allocation4], %s7715_s16 }
  0x40   : > { %s11331_s28 = scalar_lea.hbm %s13273_s0, %s8304_s17  ;;  %s216_s30 = sshll.u32 %s209_s29, 4  ;;  %s11337_s30 = int_to_ptr.vmem [resolvable:$true] %s216_s30 }
  0x41   : > { %p11333_p7 = pnand %p11013_p5, %p35_p8  ;;  %s11339_s21 = scalar_lea.sflag [#allocation5], %s205_s12 }
  0x42   : > { %s11109_s7 = scalar_lea.hbm %s11331_s28, 4096  ;;  %s11114_s9 = scalar_lea.hbm %s13273_s0, 8192 }
  0x43   : > { %p11110_p10 = scmp.ne.s32.totalorder %s11331_s28, %s11109_s7  ;;  %p11111_p11 = pneg %p11333_p7 }
  0x44   : > { %p11115_p0 = scmp.lt.u32.totalorder %s11331_s28, %s13273_s0  ;;  %p11116_p2 = scmp.lt.u32.totalorder %s11114_s9, %s11109_s7 }
  0x45   : > { %p11112_p12 = pnand %p11111_p11, %p11110_p10  ;;  %p11118_p6 = scmp.lt.u32.totalorder %s11109_s7, %s11331_s28 }
  0x46   : > { %p11117_p3 = por %p11116_p2, %p11115_p0 }
  0x47   : > { %p11113_p13 = pneg %p11112_p12 }
  0x48   : > { %p11119_p9 = por %p11118_p6, %p11117_p3 }
  0x4a   : > { %p11120_p1 = pnand %p11119_p9, %p11113_p13 }
  0x4c   : > { %11123 = shalt.err (!%p11120_p1)
}
  0x4d   : > { %s11124_s12 = scalar_lea.vmem %s11337_s30, 4096  ;;  %s11183_s16 = smov [#allocation4]  }
  0x4e   : > { %p11125_p4 = scmp.ne.s32.totalorder %s11337_s30, %s11124_s12  ;;  %s11129_s17 = sshll.u32 %s11183_s16, 4  ;;  %s11130_s17 = int_to_ptr.vmem [resolvable:$false] %s11129_s17 }
  0x4f   : > { %s11131_s18 = scalar_lea.vmem %s11130_s17, 8192  ;;  %p11132_p10 = scmp.lt.s32.totalorder %s11337_s30, %s11130_s17 }
  0x50   : > { %p11127_p5 = pnand %p11125_p4, %p11111_p11  ;;  %p11133_p12 = scmp.lt.s32.totalorder %s11131_s18, %s11124_s12 }
  0x52   : > { %p11128_p8 = pneg %p11127_p5  ;;  %p11134_p0 = por %p11133_p12, %p11132_p10 }
  0x54   : > { %p11135_p2 = pnand %p11134_p0, %p11128_p8 }
  0x56   : > { %11138 = shalt.err (!%p11135_p2)
}
  0x57   : > { %11010 = dma.hbm_to_vmem [thread:$0]  (!%p11333_p7), %s11331_s28, 4096, %s11337_s30, %s11339_s21, %s11181_s13, %s11181_s13, %s11182_s14  }
  0x58   : > { %p13383_p11 = scmp.ne.s32.totalorder %s13380_s24, 0 }
  0x5a   : > { %228 = sbr.rel (%p13383_p11) target bundleno = 1760 (0x6e0), region = 40 }
  0x61   : > { %s230_s25 = sand.u32 1, %s11169_s19   ;;  %p13384_p13 = scmp.ne.s32.totalorder %s13379_s23, 0 }
  0x62   : > { %s7719_s29 = sshll.u32 %s230_s25, 8  ;;  %s231_s7 = scalar_lea.sflag [#allocation5], %s230_s25 }
  0x63   : > { %s11373_s26 = scalar_lea.vmem [#allocation4], %s7719_s29 }
  0x64   : > { %11156 = dma.done.wait (%p13384_p13), %s231_s7, 4096  }
  0x65   : > { %11158 = vsyncadd (%p13384_p13), %s231_s7, 4294963200  ;;  %p13385_p3 = scmp.eq.s32.totalorder %s11234_s22, 0 }
  0x67   : > { %11160 = dma.done.wait (%p13385_p3), [#allocation7], 18432   ;;  %p13386_p7 = pmov %p13385_p3 }
  0x68   : > { %vm274_vm0 = vcmask 261120   ;;  %vm277_vm1 = vcmask 254976   ;;  %v13282_v0 = vmov 0.0   ;;  %v521_v1 = vld [vmem:[#allocation6 + $0x20] sm:$0xff]  ;;  %v522_v2 = vld [vmem:[#allocation6 + $0x28] sm:$0xff]  ;;  %v523_v3 = vld [vmem:[#allocation6 + $0x30] sm:$0xff] }
  0x69   : > { %11162 = vsyncadd (%p13386_p7), [#allocation7], 4294948864  ;;  %275 = vst.msk [vmem:[#allocation2] sm:$0xff] %vm274_vm0, %v13282_v0  ;;  %v10178_v4 = vpack.c.bf16 %v522_v2, %v521_v1  ;;  %v524_v5 = vld [vmem:[#allocation6 + $0x38] sm:$0xff]  ;;  %v484_v8 = vld [vmem:[#allocation6] sm:$0xff]  ;;  %vm330_vm2 = vcmask 785408  }
  0x6a   : > { %276 = vst.msk [vmem:[#allocation2 + $0x8] sm:$0xff] %vm274_vm0, %v13282_v0  ;;  %279 = vst.msk [vmem:[#allocation2 + $0x18] sm:$0xff] %vm274_vm0, %v13282_v0  ;;  %v10182_v7 = vpack.c.bf16 %v524_v5, %v523_v3  ;;  %v485_v9 = vld [vmem:[#allocation6 + $0x8] sm:$0xff]  ;;  %v386_v10 = vld [vmem:[%s11373_s26] sm:$0xff]  ;;  %vm333_vm3 = vcmask 779264   ;;  %p269_p6 = scmp.lt.s32.totalorder %s11234_s22, 1 }
  0x6b   : > { %280 = vst.msk [vmem:[#allocation2 + $0x20] sm:$0xff] %vm274_vm0, %v13282_v0  ;;  %282 = vst.msk [vmem:[#allocation2 + $0x30] sm:$0xff] %vm274_vm0, %v13282_v0  ;;  %10179 = vmatprep.subr.bf16.mxu0 %v10178_v4  ;;  %v387_v11 = vld [vmem:[%s11373_s26 + $0x8] sm:$0xff]  ;;  %v388_v12 = vld [vmem:[%s11373_s26 + $0x10] sm:$0xff]  ;;  %v10186_v17 = vpack.c.bf16 %v485_v9, %v484_v8 }
  0x6c   : > { %283 = vst.msk [vmem:[#allocation2 + $0x38] sm:$0xff] %vm274_vm0, %v13282_v0  ;;  %285 = vst.msk [vmem:[#allocation2 + $0x48] sm:$0xff] %vm274_vm0, %v13282_v0  ;;  %v389_v13 = vld [vmem:[%s11373_s26 + $0x18] sm:$0xff]  ;;  %10181 = vmatpush3.bf16.msra.mxu0 %v10178_v4  ;;  %v390_v14 = vld [vmem:[%s11373_s26 + $0x20] sm:$0xff]  ;;  %s13544_s22 = smov (!%p269_p6, %s11234_s22), 1 }
  0x6d   : > { %286 = vst.msk [vmem:[#allocation2 + $0x50] sm:$0xff] %vm274_vm0, %v13282_v0  ;;  %288 = vst.msk [vmem:[#allocation2 + $0x60] sm:$0xff] %vm274_vm0, %v13282_v0  ;;  %v391_v15 = vld [vmem:[%s11373_s26 + $0x28] sm:$0xff]  ;;  %v392_v16 = vld [vmem:[%s11373_s26 + $0x30] sm:$0xff]  ;;  %10183 = vmatprep.subr.bf16.mxu0 %v10182_v7  ;;  %s8305_s28 = sshll.u32 %s13544_s22, 4 }
  0x6e   : > { %289 = vst.msk [vmem:[#allocation2 + $0x68] sm:$0xff] %vm274_vm0, %v13282_v0  ;;  %291 = vst.msk [vmem:[#allocation2 + $0x78] sm:$0xff] %vm274_vm0, %v13282_v0  ;;  %v393_v18 = vld [vmem:[%s11373_s26 + $0x38] sm:$0xff]  ;;  %v394_v19 = vld [vmem:[%s11373_s26 + $0x40] sm:$0xff]  ;;  %s273_s21 = scalar_lea.vmem %s13278_s5, %s8305_s28 }
  0x6f   : > { %292 = vst.msk [vmem:[#allocation2 + $0x80] sm:$0xff] %vm274_vm0, %v13282_v0  ;;  %294 = vst.msk [vmem:[#allocation2 + $0x90] sm:$0xff] %vm274_vm0, %v13282_v0  ;;  %v395_v20 = vld [vmem:[%s11373_s26 + $0x48] sm:$0xff]  ;;  %v396_v22 = vld [vmem:[%s11373_s26 + $0x50] sm:$0xff] }
  0x70   : > { %295 = vst.msk [vmem:[#allocation2 + $0x98] sm:$0xff] %vm274_vm0, %v13282_v0  ;;  %297 = vst.msk [vmem:[#allocation2 + $0xa8] sm:$0xff] %vm274_vm0, %v13282_v0  ;;  %v397_v23 = vld [vmem:[%s11373_s26 + $0x58] sm:$0xff]  ;;  %v398_v24 = vld [vmem:[%s11373_s26 + $0x60] sm:$0xff]  ;;  %10185 = vmatpush3.bf16.msra.mxu0 %v10182_v7 }
  0x71   : > { %298 = vst.msk [vmem:[#allocation2 + $0xb0] sm:$0xff] %vm274_vm0, %v13282_v0  ;;  %300 = vst.msk [vmem:[#allocation2 + $0xc0] sm:$0xff] %vm274_vm0, %v13282_v0  ;;  %v488_v6 = vld [vmem:[#allocation2 + $0x1] sm:$0xff]  ;;  %v400_v26 = vld [vmem:[%s11373_s26 + $0x70] sm:$0xff]  ;;  %10187 = vmatprep.subr.bf16.mxu0 %v10186_v17 }
  0x72   : > { %301 = vst.msk [vmem:[#allocation2 + $0xc8] sm:$0xff] %vm274_vm0, %v13282_v0  ;;  %303 = vst.msk [vmem:[#allocation2 + $0xd8] sm:$0xff] %vm274_vm0, %v13282_v0  ;;  %9034 = vmatprep.mubr.msk.f32.mxu0 %vm274_vm0, %v488_v6  ;;  %v399_v25 = vld [vmem:[%s11373_s26 + $0x68] sm:$0xff]  ;;  %v401_v27 = vld [vmem:[%s11373_s26 + $0x78] sm:$0xff] }
  0x73   : > { %304 = vst.msk [vmem:[#allocation2 + $0xe0] sm:$0xff] %vm274_vm0, %v13282_v0  ;;  %306 = vst.msk [vmem:[#allocation2 + $0xf0] sm:$0xff] %vm274_vm0, %v13282_v0  ;;  %v486_v28 = vld [vmem:[#allocation6 + $0x10] sm:$0xff]  ;;  %v487_v29 = vld [vmem:[#allocation6 + $0x18] sm:$0xff] }
  0x74   : > { %307 = vst.msk [vmem:[#allocation2 + $0xf8] sm:$0xff] %vm274_vm0, %v13282_v0  ;;  %309 = vst.msk [vmem:[#allocation2 + $0x108] sm:$0xff] %vm274_vm0, %v13282_v0  ;;  %v402_v30 = vld [vmem:[%s11373_s26 + $0x80] sm:$0xff]  ;;  %v10190_v31 = vpack.c.bf16 %v487_v29, %v486_v28  ;;  %v403_v32 = vld [vmem:[%s11373_s26 + $0x88] sm:$0xff] }
  0x75   : > { %310 = vst.msk [vmem:[#allocation2 + $0x110] sm:$0xff] %vm274_vm0, %v13282_v0  ;;  %312 = vst.msk [vmem:[#allocation2 + $0x120] sm:$0xff] %vm274_vm0, %v13282_v0  ;;  %v404_v33 = vld [vmem:[%s11373_s26 + $0x90] sm:$0xff]  ;;  %v405_v34 = vld [vmem:[%s11373_s26 + $0x98] sm:$0xff] }
  0x76   : > { %313 = vst.msk [vmem:[#allocation2 + $0x128] sm:$0xff] %vm274_vm0, %v13282_v0  ;;  %315 = vst.msk [vmem:[#allocation2 + $0x138] sm:$0xff] %vm274_vm0, %v13282_v0  ;;  %v406_v36 = vld [vmem:[%s11373_s26 + $0xa0] sm:$0xff]  ;;  %v407_v37 = vld [vmem:[%s11373_s26 + $0xa8] sm:$0xff] }
  0x77   : > { %316 = vst.msk [vmem:[#allocation2 + $0x140] sm:$0xff] %vm274_vm0, %v13282_v0  ;;  %318 = vst.msk [vmem:[#allocation2 + $0x150] sm:$0xff] %vm274_vm0, %v13282_v0  ;;  %v408_v41 = vld [vmem:[%s11373_s26 + $0xb0] sm:$0xff]  ;;  %v409_v42 = vld [vmem:[%s11373_s26 + $0xb8] sm:$0xff] }
  0x78   : > { %319 = vst.msk [vmem:[#allocation2 + $0x158] sm:$0xff] %vm274_vm0, %v13282_v0  ;;  %321 = vst.msk [vmem:[#allocation2 + $0x168] sm:$0xff] %vm274_vm0, %v13282_v0  ;;  %v410_v44 = vld [vmem:[%s11373_s26 + $0xc0] sm:$0xff]  ;;  %v411_v45 = vld [vmem:[%s11373_s26 + $0xc8] sm:$0xff] }
  0x79   : > { %322 = vst.msk [vmem:[#allocation2 + $0x170] sm:$0xff] %vm274_vm0, %v13282_v0  ;;  %324 = vst.msk [vmem:[#allocation2 + $0x180] sm:$0xff] %vm274_vm0, %v13282_v0  ;;  %v412_v46 = vld [vmem:[%s11373_s26 + $0xd0] sm:$0xff]  ;;  %v413_v47 = vld [vmem:[%s11373_s26 + $0xd8] sm:$0xff] }
  0x7a   : > { %325 = vst.msk [vmem:[#allocation2 + $0x188] sm:$0xff] %vm274_vm0, %v13282_v0  ;;  %327 = vst.msk [vmem:[#allocation2 + $0x198] sm:$0xff] %vm274_vm0, %v13282_v0  ;;  %v414_v49 = vld [vmem:[%s11373_s26 + $0xe0] sm:$0xff]  ;;  %v415_v50 = vld [vmem:[%s11373_s26 + $0xe8] sm:$0xff] }
  0x7b   : > { %328 = vst.msk [vmem:[#allocation2 + $0x1a0] sm:$0xff] %vm274_vm0, %v13282_v0  ;;  %419 = vst.msk [vmem:[#allocation2 + $0x19] sm:$0xff] %vm274_vm0, %v386_v10  ;;  %v1200_v52 = vld [vmem:[#allocation6 + $0x40] sm:$0xff]  ;;  %v1201_v53 = vld [vmem:[#allocation6 + $0x48] sm:$0xff] }
  0x7c   : > { %278 = vst.msk [vmem:[#allocation2 + $0x10] sm:$0x3] %vm277_vm1, %v13282_v0  ;;  %281 = vst.msk [vmem:[#allocation2 + $0x28] sm:$0x3] %vm277_vm1, %v13282_v0  ;;  %v10194_v54 = vpack.c.bf16 %v1201_v53, %v1200_v52 }
  0x7d   : > { %284 = vst.msk [vmem:[#allocation2 + $0x40] sm:$0x3] %vm277_vm1, %v13282_v0  ;;  %287 = vst.msk [vmem:[#allocation2 + $0x58] sm:$0x3] %vm277_vm1, %v13282_v0 }
  0x7e   : > { %290 = vst.msk [vmem:[#allocation2 + $0x70] sm:$0x3] %vm277_vm1, %v13282_v0  ;;  %293 = vst.msk [vmem:[#allocation2 + $0x88] sm:$0x3] %vm277_vm1, %v13282_v0 }
  0x7f   : > { %296 = vst.msk [vmem:[#allocation2 + $0xa0] sm:$0x3] %vm277_vm1, %v13282_v0  ;;  %299 = vst.msk [vmem:[#allocation2 + $0xb8] sm:$0x3] %vm277_vm1, %v13282_v0 }
  0x80   : > { %302 = vst.msk [vmem:[#allocation2 + $0xd0] sm:$0x3] %vm277_vm1, %v13282_v0  ;;  %305 = vst.msk [vmem:[#allocation2 + $0xe8] sm:$0x3] %vm277_vm1, %v13282_v0 }
  0x81   : > { %308 = vst.msk [vmem:[#allocation2 + $0x100] sm:$0x3] %vm277_vm1, %v13282_v0  ;;  %311 = vst.msk [vmem:[#allocation2 + $0x118] sm:$0x3] %vm277_vm1, %v13282_v0 }
  0x82   : > { %314 = vst.msk [vmem:[#allocation2 + $0x130] sm:$0x3] %vm277_vm1, %v13282_v0  ;;  %317 = vst.msk [vmem:[#allocation2 + $0x148] sm:$0x3] %vm277_vm1, %v13282_v0  ;;  %v11529_v35 = vld [vmem:[#allocation2 + $0x19] sm:$0xff] }
  0x83   : > { %320 = vst.msk [vmem:[#allocation2 + $0x160] sm:$0x3] %vm277_vm1, %v13282_v0  ;;  %323 = vst.msk [vmem:[#allocation2 + $0x178] sm:$0x3] %vm277_vm1, %v13282_v0  ;;  %v489_v21 = vld [vmem:[#allocation2 + $0x9] sm:$0xff] }
  0x84   : > { %326 = vst.msk [vmem:[#allocation2 + $0x190] sm:$0x3] %vm277_vm1, %v13282_v0  ;;  %329 = vst.msk [vmem:[#allocation2 + $0x1a8] sm:$0x3] %vm277_vm1, %v13282_v0  ;;  %9035 = vmatmul.mubr.msk.f32.vlgmr.msra.gmra.mrb[0].mxu0 %vm274_vm0, %v489_v21  ;;  %v1590_v21 = vld [vmem:[#allocation6 + $0x60] sm:$0xff]  ;;  %v1592_v0 = vld [vmem:[#allocation6 + $0x70] sm:$0xff] }
  0x85   : > { %420 = vst.msk [vmem:[#allocation2 + $0x21] sm:$0xff] %vm274_vm0, %v387_v11  ;;  %421 = vst.msk [vmem:[#allocation2 + $0x31] sm:$0xff] %vm274_vm0, %v388_v12  ;;  %10189 = vmatpush3.bf16.msra.mxu0 %v10186_v17  ;;  %9037 = vmatprep.mubr.msk.f32.mxu0 %vm274_vm0, %v11529_v35  ;;  %v1203_v17 = vld [vmem:[#allocation6 + $0x58] sm:$0xff] }
  0x86   : > { %422 = vst.msk [vmem:[#allocation2 + $0x39] sm:$0xff] %vm274_vm0, %v389_v13  ;;  %423 = vst.msk [vmem:[#allocation2 + $0x49] sm:$0xff] %vm274_vm0, %v390_v14  ;;  %10191 = vmatprep.subr.bf16.mxu0 %v10190_v31 }
  0x87   : > { %424 = vst.msk [vmem:[#allocation2 + $0x51] sm:$0xff] %vm274_vm0, %v391_v15  ;;  %425 = vst.msk [vmem:[#allocation2 + $0x61] sm:$0xff] %vm274_vm0, %v392_v16  ;;  %v452_v15 = vld [vmem:[#allocation2] sm:$0xff]  ;;  %v1202_v16 = vld [vmem:[#allocation6 + $0x50] sm:$0xff] }
  0x88   : > { %426 = vst.msk [vmem:[#allocation2 + $0x69] sm:$0xff] %vm274_vm0, %v393_v18  ;;  %427 = vst.msk [vmem:[#allocation2 + $0x79] sm:$0xff] %vm274_vm0, %v394_v19  ;;  %v453_v18 = vld [vmem:[#allocation2 + $0x8] sm:$0xff]  ;;  %v11674_v19 = vld [vmem:[#allocation2 + $0x18] sm:$0xff] }
  0x89   : > { %428 = vst.msk [vmem:[#allocation2 + $0x81] sm:$0xff] %vm274_vm0, %v395_v20  ;;  %429 = vst.msk [vmem:[#allocation2 + $0x91] sm:$0xff] %vm274_vm0, %v396_v22  ;;  %10193 = vmatpush3.bf16.msra.mxu0 %v10190_v31  ;;  %v10198_v20 = vpack.c.bf16 %v1203_v17, %v1202_v16  ;;  %v1591_v22 = vld [vmem:[#allocation6 + $0x68] sm:$0xff]  ;;  %v416_v17 = vld [vmem:[%s11373_s26 + $0xf0] sm:$0xff] }
  0x8a   : > { %430 = vst.msk [vmem:[#allocation2 + $0x99] sm:$0xff] %vm274_vm0, %v397_v23  ;;  %431 = vst.msk [vmem:[#allocation2 + $0xa9] sm:$0xff] %vm274_vm0, %v398_v24  ;;  %10195 = vmatprep.subr.bf16.mxu0 %v10194_v54 }
  0x8b   : > { %432 = vst.msk [vmem:[#allocation2 + $0xb1] sm:$0xff] %vm274_vm0, %v399_v25  ;;  %433 = vst.msk [vmem:[#allocation2 + $0xc1] sm:$0xff] %vm274_vm0, %v400_v26  ;;  %v11683_v25 = vpack.c.bf16 %v1591_v22, %v1590_v21 }
  0x8c   : > { %434 = vst.msk [vmem:[#allocation2 + $0xc9] sm:$0xff] %vm274_vm0, %v401_v27  ;;  %435 = vst.msk [vmem:[#allocation2 + $0xd9] sm:$0xff] %vm274_vm0, %v402_v30  ;;  %v11541_v38 = vld [vmem:[#allocation2 + $0x21] sm:$0xff]  ;;  %v11543_v39 = vld [vmem:[#allocation2 + $0x31] sm:$0xff] }
  0x8d   : > { %436 = vst.msk [vmem:[#allocation2 + $0xe1] sm:$0xff] %vm274_vm0, %v403_v32  ;;  %437 = vst.msk [vmem:[#allocation2 + $0xf1] sm:$0xff] %vm274_vm0, %v404_v33  ;;  %9038 = vmatmul.mubr.msk.f32.gmra.mrb[2].mxu0 %vm274_vm0, %v11541_v38  ;;  %v11549_v40 = vld [vmem:[#allocation2 + $0x39] sm:$0xff]  ;;  %v11553_v43 = vld [vmem:[#allocation2 + $0x49] sm:$0xff] }
  0x8e   : > { %438 = vst.msk [vmem:[#allocation2 + $0xf9] sm:$0xff] %vm274_vm0, %v405_v34  ;;  %439 = vst.msk [vmem:[#allocation2 + $0x109] sm:$0xff] %vm274_vm0, %v406_v36  ;;  %9040 = vmatprep.mubr.msk.f32.mxu0 %vm274_vm0, %v11543_v39  ;;  %v11566_v48 = vld [vmem:[#allocation2 + $0x51] sm:$0xff]  ;;  %v11573_v51 = vld [vmem:[#allocation2 + $0x61] sm:$0xff] }
  0x8f   : > { %440 = vst.msk [vmem:[#allocation2 + $0x111] sm:$0xff] %vm274_vm0, %v407_v37  ;;  %441 = vst.msk [vmem:[#allocation2 + $0x121] sm:$0xff] %vm274_vm0, %v408_v41  ;;  %v11581_v55 = vld [vmem:[#allocation2 + $0x69] sm:$0xff]  ;;  %v11583_v56 = vld [vmem:[#allocation2 + $0x79] sm:$0xff] }
  0x90   : > { %442 = vst.msk [vmem:[#allocation2 + $0x129] sm:$0xff] %vm274_vm0, %v409_v42  ;;  %443 = vst.msk [vmem:[#allocation2 + $0x139] sm:$0xff] %vm274_vm0, %v410_v44  ;;  %v11589_v57 = vld [vmem:[#allocation2 + $0x81] sm:$0xff]  ;;  %v11591_v58 = vld [vmem:[#allocation2 + $0x91] sm:$0xff] }
  0x91   : > { %9041 = vmatmul.mubr.msk.f32.gmra.mrb[4].mxu0 %vm274_vm0, %v11549_v40  ;;  %444 = vst.msk [vmem:[#allocation2 + $0x141] sm:$0xff] %vm274_vm0, %v411_v45  ;;  %445 = vst.msk [vmem:[#allocation2 + $0x151] sm:$0xff] %vm274_vm0, %v412_v46  ;;  %v11597_v59 = vld [vmem:[#allocation2 + $0x99] sm:$0xff]  ;;  %v11599_v60 = vld [vmem:[#allocation2 + $0xa9] sm:$0xff] }
  0x92   : > { %9043 = vmatprep.mubr.msk.f32.mxu0 %vm274_vm0, %v11553_v43  ;;  %446 = vst.msk [vmem:[#allocation2 + $0x159] sm:$0xff] %vm274_vm0, %v413_v47  ;;  %447 = vst.msk [vmem:[#allocation2 + $0x169] sm:$0xff] %vm274_vm0, %v414_v49  ;;  %v11605_v61 = vld [vmem:[#allocation2 + $0xb1] sm:$0xff]  ;;  %v11607_v62 = vld [vmem:[#allocation2 + $0xc1] sm:$0xff] }
  0x93   : > { %448 = vst.msk [vmem:[#allocation2 + $0x171] sm:$0xff] %vm274_vm0, %v415_v50  ;;  %v11613_v63 = vld [vmem:[#allocation2 + $0xc9] sm:$0xff]  ;;  %v11615_v1 = vld [vmem:[#allocation2 + $0xd9] sm:$0xff]  ;;  %449 = vst.msk [vmem:[#allocation2 + $0x181] sm:$0xff] %vm274_vm0, %v416_v17 }
  0x94   : > { %v11621_v2 = vld [vmem:[#allocation2 + $0xe1] sm:$0xff]  ;;  %v11623_v3 = vld [vmem:[#allocation2 + $0xf1] sm:$0xff] }
  0x95   : > { %9044 = vmatmul.mubr.msk.f32.gmra.mrb[6].mxu0 %vm274_vm0, %v11566_v48  ;;  %v11629_v4 = vld [vmem:[#allocation2 + $0xf9] sm:$0xff]  ;;  %v11631_v5 = vld [vmem:[#allocation2 + $0x109] sm:$0xff] }
  0x96   : > { %9046 = vmatprep.mubr.msk.f32.mxu0 %vm274_vm0, %v11573_v51  ;;  %v11637_v6 = vld [vmem:[#allocation2 + $0x111] sm:$0xff]  ;;  %v11639_v7 = vld [vmem:[#allocation2 + $0x121] sm:$0xff] }
  0x97   : > { %13387 = vst [vmem:[#allocation11_spill] sm:$0xff] %v11639_v7  ;;  %v11645_v8 = vld [vmem:[#allocation2 + $0x129] sm:$0xff]  ;;  %v11647_v9 = vld [vmem:[#allocation2 + $0x139] sm:$0xff] }
  0x98   : > { %13388 = vst [vmem:[#allocation12_spill] sm:$0xff] %v11645_v8  ;;  %13389 = vst [vmem:[#allocation13_spill] sm:$0xff] %v11647_v9  ;;  %v11653_v10 = vld [vmem:[#allocation2 + $0x141] sm:$0xff]  ;;  %v11655_v11 = vld [vmem:[#allocation2 + $0x151] sm:$0xff] }
  0x99   : > { %9047 = vmatmul.mubr.msk.f32.gmra.mrb[8].mxu0 %vm274_vm0, %v11581_v55  ;;  %13390 = vst [vmem:[#allocation14_spill] sm:$0xff] %v11653_v10  ;;  %13391 = vst [vmem:[#allocation15_spill] sm:$0xff] %v11655_v11  ;;  %v11661_v12 = vld [vmem:[#allocation2 + $0x159] sm:$0xff]  ;;  %v11663_v13 = vld [vmem:[#allocation2 + $0x169] sm:$0xff] }
  0x9a   : > { %9049 = vmatprep.mubr.msk.f32.mxu0 %vm274_vm0, %v11583_v56  ;;  %13392 = vst [vmem:[#allocation16_spill] sm:$0xff] %v11661_v12  ;;  %13393 = vst [vmem:[#allocation17_spill] sm:$0xff] %v11663_v13  ;;  %v11669_v14 = vld [vmem:[#allocation2 + $0x171] sm:$0xff]  ;;  %v11679_v23 = vld [vmem:[#allocation2 + $0x20] sm:$0xff] }
  0x9b   : > { %13394 = vst [vmem:[#allocation18_spill] sm:$0xff] %v11669_v14  ;;  %v11681_v24 = vld [vmem:[#allocation2 + $0x30] sm:$0xff]  ;;  %v11689_v26 = vld [vmem:[#allocation2 + $0x38] sm:$0xff]  ;;  %v11691_v27 = vld [vmem:[#allocation2 + $0x48] sm:$0xff] }
  0x9c   : > { %v11698_v28 = vld [vmem:[#allocation2 + $0x50] sm:$0xff]  ;;  %v11700_v29 = vld [vmem:[#allocation2 + $0x60] sm:$0xff]  ;;  %v11706_v30 = vld [vmem:[#allocation2 + $0x68] sm:$0xff] }
  0x9d   : > { %9050 = vmatmul.mubr.msk.f32.gmra.mrb[10].mxu0 %vm274_vm0, %v11589_v57  ;;  %v11708_v31 = vld [vmem:[#allocation2 + $0x78] sm:$0xff]  ;;  %v11714_v32 = vld [vmem:[#allocation2 + $0x80] sm:$0xff]  ;;  %v11716_v33 = vld [vmem:[#allocation2 + $0x90] sm:$0xff] }
  0x9e   : > { %9052 = vmatprep.mubr.msk.f32.mxu0 %vm274_vm0, %v11591_v58  ;;  %v11722_v34 = vld [vmem:[#allocation2 + $0x98] sm:$0xff]  ;;  %v11724_v36 = vld [vmem:[#allocation2 + $0xa8] sm:$0xff]  ;;  %v11730_v37 = vld [vmem:[#allocation2 + $0xb0] sm:$0xff] }
  0x9f   : > { %v11732_v41 = vld [vmem:[#allocation2 + $0xc0] sm:$0xff]  ;;  %v11738_v42 = vld [vmem:[#allocation2 + $0xc8] sm:$0xff]  ;;  %v11740_v44 = vld [vmem:[#allocation2 + $0xd8] sm:$0xff] }
  0xa0   : > { %v11746_v45 = vld [vmem:[#allocation2 + $0xe0] sm:$0xff]  ;;  %v11748_v46 = vld [vmem:[#allocation2 + $0xf0] sm:$0xff]  ;;  %v11754_v47 = vld [vmem:[#allocation2 + $0xf8] sm:$0xff] }
  0xa1   : > { %9053 = vmatmul.mubr.msk.f32.gmra.mrb[12].mxu0 %vm274_vm0, %v11597_v59  ;;  %v11756_v49 = vld [vmem:[#allocation2 + $0x108] sm:$0xff]  ;;  %v11762_v50 = vld [vmem:[#allocation2 + $0x110] sm:$0xff]  ;;  %v11764_v52 = vld [vmem:[#allocation2 + $0x120] sm:$0xff] }
  0xa2   : > { %9055 = vmatprep.mubr.msk.f32.mxu0 %vm274_vm0, %v11599_v60  ;;  %v11770_v53 = vld [vmem:[#allocation2 + $0x128] sm:$0xff]  ;;  %v11780_v16 = vld [vmem:[#allocation2 + $0x150] sm:$0xff] }
  0xa3   : > { %v11792_v21 = vld [vmem:[#allocation2 + $0x168] sm:$0xff]  ;;  %v11798_v22 = vld [vmem:[#allocation2 + $0x170] sm:$0xff] }
  0xa4   : > { %v1167_v17 = vld [vmem:[#allocation2 + $0x2] sm:$0xff] }
  0xa5   : > { %9056 = vmatmul.mubr.msk.f32.gmra.mrb[14].mxu0 %vm274_vm0, %v11605_v61 }
  0xa6   : > { %9058 = vmatprep.mubr.msk.f32.mxu0 %vm274_vm0, %v11607_v62 }
  0xa9   : > { %9059 = vmatmul.mubr.msk.f32.gmra.mrb[16].mxu0 %vm274_vm0, %v11613_v63 }
  0xaa   : > { %9061 = vmatprep.mubr.msk.f32.mxu0 %vm274_vm0, %v11615_v1 }
  0xad   : > { %9062 = vmatmul.mubr.msk.f32.gmra.mrb[18].mxu0 %vm274_vm0, %v11621_v2 }
  0xae   : > { %9064 = vmatprep.mubr.msk.f32.mxu0 %vm274_vm0, %v11623_v3 }
  0xb1   : > { %9065 = vmatmul.mubr.msk.f32.gmra.mrb[20].mxu0 %vm274_vm0, %v11629_v4 }
  0xb2   : > { %9067 = vmatprep.mubr.msk.f32.mxu0 %vm274_vm0, %v11631_v5 }
  0xb5   : > { %9068 = vmatmul.mubr.msk.f32.gmra.mrb[22].mxu0 %vm274_vm0, %v11637_v6 }
  0xb6   : > { %9070 = vmatprep.mubr.msk.f32.mxu0 %vm274_vm0, %v11639_v7 }
  0xb9   : > { %9071 = vmatmul.mubr.msk.f32.gmra.mrb[24].mxu0 %vm274_vm0, %v11645_v8  ;;  %v11811_v8 = vld [vmem:[#allocation2 + $0x32] sm:$0xff] }
  0xba   : > { %9073 = vmatprep.mubr.msk.f32.mxu0 %vm274_vm0, %v11647_v9  ;;  %v11809_v9 = vld [vmem:[#allocation2 + $0x22] sm:$0xff] }
  0xbd   : > { %9074 = vmatmul.mubr.msk.f32.gmra.mrb[26].mxu0 %vm274_vm0, %v11653_v10  ;;  %v1981_v10 = vld [vmem:[#allocation6 + $0x88] sm:$0xff] }
  0xbe   : > { %9076 = vmatprep.mubr.msk.f32.mxu0 %vm274_vm0, %v11655_v11  ;;  %v1980_v11 = vld [vmem:[#allocation6 + $0x80] sm:$0xff] }
  0xbf   : > { %v11813_v7 = vpack.c.bf16 %v1981_v10, %v1980_v11  ;;  %v11828_v10 = vld [vmem:[#allocation2 + $0x52] sm:$0xff]  ;;  %v11830_v11 = vld [vmem:[#allocation2 + $0x62] sm:$0xff] }
  0xc0   : > { %13397 = vst [vmem:[#allocation21_spill] sm:$0xff] %v11828_v10  ;;  %13398 = vst [vmem:[#allocation22_spill] sm:$0xff] %v11830_v11 }
  0xc1   : > { %9077 = vmatmul.mubr.msk.f32.gmra.mrb[28].mxu0 %vm274_vm0, %v11661_v12 }
  0xc2   : > { %9079 = vmatprep.mubr.msk.f32.mxu0 %vm274_vm0, %v11663_v13  ;;  %v11803_v13 = vld [vmem:[#allocation2 + $0x1a] sm:$0xff] }
  0xc5   : > { %9080 = vmatmul.mubr.msk.f32.gmra.mrb[30].mxu0 %vm274_vm0, %v11669_v14  ;;  %v1593_v14 = vld [vmem:[#allocation6 + $0x78] sm:$0xff] }
  0xc6   : > { %9090 = vmatprep.mubr.msk.f32.mxu0 %vm274_vm0, %v452_v15  ;;  %v11778_v15 = vld [vmem:[#allocation2 + $0x140] sm:$0xff]  ;;  %v10206_v12 = vpack.c.bf16 %v1593_v14, %v1592_v0  ;;  %v11821_v14 = vld [vmem:[#allocation2 + $0x4a] sm:$0xff] }
  0xc7   : > { %v11819_v0 = vld [vmem:[#allocation2 + $0x3a] sm:$0xff]  ;;  %13396 = vst [vmem:[#allocation20_spill] sm:$0xff] %v11821_v14 }
  0xc8   : > { %13395 = vst [vmem:[#allocation19_spill] sm:$0xff] %v11819_v0 }
  0xc9   : > { %9091 = vmatmul.mubr.msk.f32.vlgmr.msra.gmra.mrb[0].mxu0 %vm274_vm0, %v453_v18  ;;  %v417_v18 = vld [vmem:[%s11373_s26 + $0xf8] sm:$0xff] }
  0xca   : > { %10197 = vmatpush3.bf16.msra.mxu0 %v10194_v54  ;;  %9093 = vmatprep.mubr.msk.f32.mxu0 %vm274_vm0, %v11674_v19  ;;  %v11772_v54 = vld [vmem:[#allocation2 + $0x138] sm:$0xff]  ;;  %450 = vst.msk [vmem:[#allocation2 + $0x189] sm:$0xff] %vm274_vm0, %v417_v18  ;;  %v1168_v18 = vld [vmem:[#allocation2 + $0xa] sm:$0xff] }
  0xcb   : > { %10199 = vmatprep.subr.bf16.mxu0 %v10198_v20 }
  0xcd   : > { %9094 = vmatmul.mubr.msk.f32.gmra.mrb[2].mxu0 %vm274_vm0, %v11679_v23 }
  0xce   : > { %9096 = vmatprep.mubr.msk.f32.mxu0 %vm274_vm0, %v11681_v24  ;;  %10201 = vmatpush3.bf16.msra.mxu0 %v10198_v20  ;;  %v11790_v20 = vld [vmem:[#allocation2 + $0x158] sm:$0xff] }
  0xcf   : > { %10203 = vmatprep.subr.bf16.mxu0 %v11683_v25 }
  0xd1   : > { %9097 = vmatmul.mubr.msk.f32.gmra.mrb[4].mxu0 %vm274_vm0, %v11689_v26 }
  0xd2   : > { %9099 = vmatprep.mubr.msk.f32.mxu0 %vm274_vm0, %v11691_v27 }
  0xd5   : > { %9100 = vmatmul.mubr.msk.f32.gmra.mrb[6].mxu0 %vm274_vm0, %v11698_v28 }
  0xd6   : > { %9102 = vmatprep.mubr.msk.f32.mxu0 %vm274_vm0, %v11700_v29 }
  0xd9   : > { %9103 = vmatmul.mubr.msk.f32.gmra.mrb[8].mxu0 %vm274_vm0, %v11706_v30 }
  0xda   : > { %9105 = vmatprep.mubr.msk.f32.mxu0 %vm274_vm0, %v11708_v31 }
  0xdd   : > { %9106 = vmatmul.mubr.msk.f32.gmra.mrb[10].mxu0 %vm274_vm0, %v11714_v32 }
  0xde   : > { %9108 = vmatprep.mubr.msk.f32.mxu0 %vm274_vm0, %v11716_v33 }
  0xe1   : > { %9109 = vmatmul.mubr.msk.f32.gmra.mrb[12].mxu0 %vm274_vm0, %v11722_v34 }
  0xe2   : > { %9111 = vmatprep.mubr.msk.f32.mxu0 %vm274_vm0, %v11724_v36 }
  0xe5   : > { %9112 = vmatmul.mubr.msk.f32.gmra.mrb[14].mxu0 %vm274_vm0, %v11730_v37 }
  0xe6   : > { %9114 = vmatprep.mubr.msk.f32.mxu0 %vm274_vm0, %v11732_v41 }
  0xe9   : > { %9115 = vmatmul.mubr.msk.f32.gmra.mrb[16].mxu0 %vm274_vm0, %v11738_v42 }
  0xea   : > { %9117 = vmatprep.mubr.msk.f32.mxu0 %vm274_vm0, %v11740_v44 }
  0xed   : > { %9118 = vmatmul.mubr.msk.f32.gmra.mrb[18].mxu0 %vm274_vm0, %v11746_v45 }
  0xee   : > { %9120 = vmatprep.mubr.msk.f32.mxu0 %vm274_vm0, %v11748_v46 }
  0xf1   : > { %9121 = vmatmul.mubr.msk.f32.gmra.mrb[20].mxu0 %vm274_vm0, %v11754_v47 }
  0xf2   : > { %9123 = vmatprep.mubr.msk.f32.mxu0 %vm274_vm0, %v11756_v49 }
  0xf5   : > { %9124 = vmatmul.mubr.msk.f32.gmra.mrb[22].mxu0 %vm274_vm0, %v11762_v50 }
  0xf6   : > { %9126 = vmatprep.mubr.msk.f32.mxu0 %vm274_vm0, %v11764_v52 }
  0xf9   : > { %9127 = vmatmul.mubr.msk.f32.gmra.mrb[24].mxu0 %vm274_vm0, %v11770_v53 }
  0xfa   : > { %9129 = vmatprep.mubr.msk.f32.mxu0 %vm274_vm0, %v11772_v54 }
  0xfd   : > { %9130 = vmatmul.mubr.msk.f32.gmra.mrb[26].mxu0 %vm274_vm0, %v11778_v15 }
  0xfe   : > { %9132 = vmatprep.mubr.msk.f32.mxu0 %vm274_vm0, %v11780_v16 }
 0x101   : > { %9133 = vmatmul.mubr.msk.f32.gmra.mrb[28].mxu0 %vm274_vm0, %v11790_v20 }
 0x102   : > { %9135 = vmatprep.mubr.msk.f32.mxu0 %vm274_vm0, %v11792_v21 }
 0x105   : > { %9136 = vmatmul.mubr.msk.f32.gmra.mrb[30].mxu0 %vm274_vm0, %v11798_v22 }
 0x106   : > { %9146 = vmatprep.mubr.msk.f32.mxu0 %vm274_vm0, %v1167_v17  ;;  %v11844_v17 = vld [vmem:[#allocation2 + $0x82] sm:$0xff] }
 0x107   : > { %13401 = vst [vmem:[#allocation25_spill] sm:$0xff] %v11844_v17 }
 0x109   : > { %9147 = vmatmul.mubr.msk.f32.vlgmr.msra.gmra.mrb[0].mxu0 %vm274_vm0, %v1168_v18  ;;  %v11846_v18 = vld [vmem:[#allocation2 + $0x92] sm:$0xff] }
 0x10a   : > { %10205 = vmatpush3.bf16.msra.mxu0 %v11683_v25  ;;  %9149 = vmatprep.mubr.msk.f32.mxu0 %vm274_vm0, %v11803_v13  ;;  %v11838_v25 = vld [vmem:[#allocation2 + $0x7a] sm:$0xff]  ;;  %13402 = vst [vmem:[#allocation26_spill] sm:$0xff] %v11846_v18 }
 0x10b   : > { %10207 = vmatprep.subr.bf16.mxu0 %v10206_v12  ;;  %13400 = vst [vmem:[#allocation24_spill] sm:$0xff] %v11838_v25 }
 0x10d   : > { %9150 = vmatmul.mubr.msk.f32.gmra.mrb[2].mxu0 %vm274_vm0, %v11809_v9 }
 0x10e   : > { %9152 = vmatprep.mubr.msk.f32.mxu0 %vm274_vm0, %v11811_v8  ;;  %10209 = vmatpush3.bf16.msra.mxu0 %v10206_v12  ;;  %v11836_v12 = vld [vmem:[#allocation2 + $0x6a] sm:$0xff] }
 0x10f   : > { %10211 = vmatprep.subr.bf16.mxu0 %v11813_v7  ;;  %13399 = vst [vmem:[#allocation23_spill] sm:$0xff] %v11836_v12 }
 0x111   : > { %9153 = vmatmul.mubr.msk.f32.gmra.mrb[4].mxu0 %vm274_vm0, %v11819_v0  ;;  %v2371_v0 = vld [vmem:[#allocation6 + $0xa8] sm:$0xff] }
 0x112   : > { %9155 = vmatprep.mubr.msk.f32.mxu0 %vm274_vm0, %v11821_v14  ;;  %v1983_v14 = vld [vmem:[#allocation6 + $0x98] sm:$0xff] }
 0x115   : > { %9156 = vmatmul.mubr.msk.f32.gmra.mrb[6].mxu0 %vm274_vm0, %v11828_v10  ;;  %v11854_v10 = vld [vmem:[#allocation2 + $0xaa] sm:$0xff] }
 0x116   : > { %9158 = vmatprep.mubr.msk.f32.mxu0 %vm274_vm0, %v11830_v11  ;;  %v11852_v11 = vld [vmem:[#allocation2 + $0x9a] sm:$0xff]  ;;  %13404 = vst [vmem:[#allocation28_spill] sm:$0xff] %v11854_v10 }
 0x117   : > { %13403 = vst [vmem:[#allocation27_spill] sm:$0xff] %v11852_v11 }
 0x119   : > { %9159 = vmatmul.mubr.msk.f32.gmra.mrb[8].mxu0 %vm274_vm0, %v11836_v12  ;;  %v11862_v12 = vld [vmem:[#allocation2 + $0xc2] sm:$0xff] }
 0x11a   : > { %9161 = vmatprep.mubr.msk.f32.mxu0 %vm274_vm0, %v11838_v25  ;;  %v11860_v25 = vld [vmem:[#allocation2 + $0xb2] sm:$0xff]  ;;  %13406 = vst [vmem:[#allocation30_spill] sm:$0xff] %v11862_v12 }
 0x11b   : > { %13405 = vst [vmem:[#allocation29_spill] sm:$0xff] %v11860_v25 }
 0x11d   : > { %9162 = vmatmul.mubr.msk.f32.gmra.mrb[10].mxu0 %vm274_vm0, %v11844_v17  ;;  %v11870_v17 = vld [vmem:[#allocation2 + $0xda] sm:$0xff] }
 0x11e   : > { %9164 = vmatprep.mubr.msk.f32.mxu0 %vm274_vm0, %v11846_v18  ;;  %v11868_v18 = vld [vmem:[#allocation2 + $0xca] sm:$0xff]  ;;  %13408 = vst [vmem:[#allocation32_spill] sm:$0xff] %v11870_v17 }
 0x11f   : > { %13407 = vst [vmem:[#allocation31_spill] sm:$0xff] %v11868_v18 }
 0x121   : > { %9165 = vmatmul.mubr.msk.f32.gmra.mrb[12].mxu0 %vm274_vm0, %v11852_v11  ;;  %v11878_v11 = vld [vmem:[#allocation2 + $0xf2] sm:$0xff] }
 0x122   : > { %9167 = vmatprep.mubr.msk.f32.mxu0 %vm274_vm0, %v11854_v10  ;;  %v11876_v10 = vld [vmem:[#allocation2 + $0xe2] sm:$0xff]  ;;  %13410 = vst [vmem:[#allocation34_spill] sm:$0xff] %v11878_v11 }
 0x123   : > { %13409 = vst [vmem:[#allocation33_spill] sm:$0xff] %v11876_v10 }
 0x125   : > { %9168 = vmatmul.mubr.msk.f32.gmra.mrb[14].mxu0 %vm274_vm0, %v11860_v25  ;;  %v11886_v25 = vld [vmem:[#allocation2 + $0x10a] sm:$0xff] }
 0x126   : > { %9170 = vmatprep.mubr.msk.f32.mxu0 %vm274_vm0, %v11862_v12  ;;  %v11884_v12 = vld [vmem:[#allocation2 + $0xfa] sm:$0xff]  ;;  %13412 = vst [vmem:[#allocation36_spill] sm:$0xff] %v11886_v25 }
 0x127   : > { %13411 = vst [vmem:[#allocation35_spill] sm:$0xff] %v11884_v12 }
 0x129   : > { %9171 = vmatmul.mubr.msk.f32.gmra.mrb[16].mxu0 %vm274_vm0, %v11868_v18  ;;  %v11894_v18 = vld [vmem:[#allocation2 + $0x122] sm:$0xff] }
 0x12a   : > { %9173 = vmatprep.mubr.msk.f32.mxu0 %vm274_vm0, %v11870_v17  ;;  %v11892_v17 = vld [vmem:[#allocation2 + $0x112] sm:$0xff]  ;;  %13414 = vst [vmem:[#allocation38_spill] sm:$0xff] %v11894_v18 }
 0x12b   : > { %13413 = vst [vmem:[#allocation37_spill] sm:$0xff] %v11892_v17 }
 0x12d   : > { %9174 = vmatmul.mubr.msk.f32.gmra.mrb[18].mxu0 %vm274_vm0, %v11876_v10  ;;  %v11902_v10 = vld [vmem:[#allocation2 + $0x13a] sm:$0xff] }
 0x12e   : > { %9176 = vmatprep.mubr.msk.f32.mxu0 %vm274_vm0, %v11878_v11  ;;  %v11900_v11 = vld [vmem:[#allocation2 + $0x12a] sm:$0xff]  ;;  %13416 = vst [vmem:[#allocation40_spill] sm:$0xff] %v11902_v10 }
 0x12f   : > { %13415 = vst [vmem:[#allocation39_spill] sm:$0xff] %v11900_v11 }
 0x131   : > { %9177 = vmatmul.mubr.msk.f32.gmra.mrb[20].mxu0 %vm274_vm0, %v11884_v12  ;;  %v11910_v12 = vld [vmem:[#allocation2 + $0x152] sm:$0xff] }
 0x132   : > { %9179 = vmatprep.mubr.msk.f32.mxu0 %vm274_vm0, %v11886_v25  ;;  %v11908_v25 = vld [vmem:[#allocation2 + $0x142] sm:$0xff]  ;;  %13418 = vst [vmem:[#allocation42_spill] sm:$0xff] %v11910_v12 }
 0x133   : > { %13417 = vst [vmem:[#allocation41_spill] sm:$0xff] %v11908_v25 }
 0x135   : > { %9180 = vmatmul.mubr.msk.f32.gmra.mrb[22].mxu0 %vm274_vm0, %v11892_v17  ;;  %v11918_v17 = vld [vmem:[#allocation2 + $0x16a] sm:$0xff] }
 0x136   : > { %9182 = vmatprep.mubr.msk.f32.mxu0 %vm274_vm0, %v11894_v18  ;;  %v11916_v18 = vld [vmem:[#allocation2 + $0x15a] sm:$0xff]  ;;  %13420 = vst [vmem:[#allocation44_spill] sm:$0xff] %v11918_v17 }
 0x137   : > { %13419 = vst [vmem:[#allocation43_spill] sm:$0xff] %v11916_v18 }
 0x139   : > { %9183 = vmatmul.mubr.msk.f32.gmra.mrb[24].mxu0 %vm274_vm0, %v11900_v11  ;;  %v1982_v11 = vld [vmem:[#allocation6 + $0x90] sm:$0xff] }
 0x13a   : > { %9185 = vmatprep.mubr.msk.f32.mxu0 %vm274_vm0, %v11902_v10  ;;  %v11924_v10 = vld [vmem:[#allocation2 + $0x172] sm:$0xff] }
 0x13d   : > { %9186 = vmatmul.mubr.msk.f32.gmra.mrb[26].mxu0 %vm274_vm0, %v11908_v25  ;;  %v2370_v25 = vld [vmem:[#allocation6 + $0xa0] sm:$0xff] }
 0x13e   : > { %9188 = vmatprep.mubr.msk.f32.mxu0 %vm274_vm0, %v11910_v12  ;;  %v10214_v12 = vpack.c.bf16 %v1983_v14, %v1982_v11  ;;  %v2761_v11 = vld [vmem:[#allocation6 + $0xc0] sm:$0xff] }
 0x141   : > { %9189 = vmatmul.mubr.msk.f32.gmra.mrb[28].mxu0 %vm274_vm0, %v11916_v18 }
 0x142   : > { %9191 = vmatprep.mubr.msk.f32.mxu0 %vm274_vm0, %v11918_v17  ;;  %v10218_v17 = vpack.c.bf16 %v2371_v0, %v2370_v25  ;;  %v2373_v0 = vld [vmem:[#allocation6 + $0xb8] sm:$0xff] }
 0x145   : > { %9192 = vmatmul.mubr.msk.f32.gmra.mrb[30].mxu0 %vm274_vm0, %v11924_v10 }
 0x146   : > { %9202 = vmatprep.mubr.msk.f32.mxu0 %vm274_vm0, %v11674_v19  ;;  %v11993_v19 = vld [vmem:[#allocation2 + $0x188] sm:$0xff] }
 0x149   : > { %9203 = vmatmul.mubr.msk.f32.vlgmr.msra.gmra.mrb[0].mxu0 %vm274_vm0, %v11679_v23  ;;  %v2372_v23 = vld [vmem:[#allocation6 + $0xb0] sm:$0xff] }
 0x14a   : > { %10213 = vmatpush3.bf16.msra.mxu0 %v11813_v7  ;;  %9205 = vmatprep.mubr.msk.f32.mxu0 %vm274_vm0, %v11681_v24  ;;  %v11987_v7 = vld [vmem:[#allocation2 + $0x180] sm:$0xff]  ;;  %v10222_v14 = vpack.c.bf16 %v2373_v0, %v2372_v23  ;;  %v13438_v23 = vld [vmem:[#allocation28_spill] sm:$0xff]  ;;  %v13439_v0 = vld [vmem:[#allocation29_spill] sm:$0xff] }
 0x14b   : > { %10215 = vmatprep.subr.bf16.mxu0 %v10214_v12 }
 0x14d   : > { %9206 = vmatmul.mubr.msk.f32.gmra.mrb[2].mxu0 %vm274_vm0, %v11689_v26 }
 0x14e   : > { %9208 = vmatprep.mubr.msk.f32.mxu0 %vm274_vm0, %v11691_v27  ;;  %10217 = vmatpush3.bf16.msra.mxu0 %v10214_v12  ;;  %v2762_v12 = vld [vmem:[#allocation6 + $0xc8] sm:$0xff] }
 0x14f   : > { %10219 = vmatprep.subr.bf16.mxu0 %v10218_v17  ;;  %v10226_v25 = vpack.c.bf16 %v2762_v12, %v2761_v11  ;;  %v13441_v11 = vld [vmem:[#allocation31_spill] sm:$0xff]  ;;  %v13442_v12 = vld [vmem:[#allocation32_spill] sm:$0xff] }
 0x151   : > { %9209 = vmatmul.mubr.msk.f32.gmra.mrb[4].mxu0 %vm274_vm0, %v11698_v28 }
 0x152   : > { %9211 = vmatprep.mubr.msk.f32.mxu0 %vm274_vm0, %v11700_v29 }
 0x155   : > { %9212 = vmatmul.mubr.msk.f32.gmra.mrb[6].mxu0 %vm274_vm0, %v11706_v30 }
 0x156   : > { %9214 = vmatprep.mubr.msk.f32.mxu0 %vm274_vm0, %v11708_v31 }
 0x159   : > { %9215 = vmatmul.mubr.msk.f32.gmra.mrb[8].mxu0 %vm274_vm0, %v11714_v32 }
 0x15a   : > { %9217 = vmatprep.mubr.msk.f32.mxu0 %vm274_vm0, %v11716_v33 }
 0x15d   : > { %9218 = vmatmul.mubr.msk.f32.gmra.mrb[10].mxu0 %vm274_vm0, %v11722_v34 }
 0x15e   : > { %9220 = vmatprep.mubr.msk.f32.mxu0 %vm274_vm0, %v11724_v36 }
 0x161   : > { %9221 = vmatmul.mubr.msk.f32.gmra.mrb[12].mxu0 %vm274_vm0, %v11730_v37 }
 0x162   : > { %9223 = vmatprep.mubr.msk.f32.mxu0 %vm274_vm0, %v11732_v41 }
 0x165   : > { %9224 = vmatmul.mubr.msk.f32.gmra.mrb[14].mxu0 %vm274_vm0, %v11738_v42 }
 0x166   : > { %9226 = vmatprep.mubr.msk.f32.mxu0 %vm274_vm0, %v11740_v44 }
 0x169   : > { %9227 = vmatmul.mubr.msk.f32.gmra.mrb[16].mxu0 %vm274_vm0, %v11746_v45 }
 0x16a   : > { %9229 = vmatprep.mubr.msk.f32.mxu0 %vm274_vm0, %v11748_v46 }
 0x16d   : > { %9230 = vmatmul.mubr.msk.f32.gmra.mrb[18].mxu0 %vm274_vm0, %v11754_v47 }
 0x16e   : > { %9232 = vmatprep.mubr.msk.f32.mxu0 %vm274_vm0, %v11756_v49 }
 0x171   : > { %9233 = vmatmul.mubr.msk.f32.gmra.mrb[20].mxu0 %vm274_vm0, %v11762_v50 }
 0x172   : > { %9235 = vmatprep.mubr.msk.f32.mxu0 %vm274_vm0, %v11764_v52 }
 0x175   : > { %9236 = vmatmul.mubr.msk.f32.gmra.mrb[22].mxu0 %vm274_vm0, %v11770_v53 }
 0x176   : > { %9238 = vmatprep.mubr.msk.f32.mxu0 %vm274_vm0, %v11772_v54 }
 0x179   : > { %9239 = vmatmul.mubr.msk.f32.gmra.mrb[24].mxu0 %vm274_vm0, %v11778_v15 }
 0x17a   : > { %9241 = vmatprep.mubr.msk.f32.mxu0 %vm274_vm0, %v11780_v16 }
 0x17d   : > { %9242 = vmatmul.mubr.msk.f32.gmra.mrb[26].mxu0 %vm274_vm0, %v11790_v20 }
 0x17e   : > { %9244 = vmatprep.mubr.msk.f32.mxu0 %vm274_vm0, %v11792_v21 }
 0x181   : > { %9245 = vmatmul.mubr.msk.f32.gmra.mrb[28].mxu0 %vm274_vm0, %v11798_v22 }
 0x182   : > { %9247 = vmatprep.mubr.msk.f32.mxu0 %vm274_vm0, %v11987_v7 }
 0x185   : > { %9248 = vmatmul.mubr.msk.f32.gmra.mrb[30].mxu0 %vm274_vm0, %v11993_v19 }
 0x186   : > { %9258 = vmatprep.mubr.msk.f32.mxu0 %vm274_vm0, %v11529_v35  ;;  %v13421_v35 = vld [vmem:[#allocation11_spill] sm:$0xff] }
 0x189   : > { %9259 = vmatmul.mubr.msk.f32.vlgmr.msra.gmra.mrb[0].mxu0 %vm274_vm0, %v11541_v38  ;;  %v13422_v38 = vld [vmem:[#allocation12_spill] sm:$0xff] }
 0x18a   : > { %10221 = vmatpush3.bf16.msra.mxu0 %v10218_v17  ;;  %9261 = vmatprep.mubr.msk.f32.mxu0 %vm274_vm0, %v11543_v39  ;;  %v13423_v39 = vld [vmem:[#allocation13_spill] sm:$0xff]  ;;  %v13437_v17 = vld [vmem:[#allocation27_spill] sm:$0xff] }
 0x18b   : > { %10223 = vmatprep.subr.bf16.mxu0 %v10222_v14 }
 0x18d   : > { %9262 = vmatmul.mubr.msk.f32.gmra.mrb[2].mxu0 %vm274_vm0, %v11549_v40  ;;  %v13424_v40 = vld [vmem:[#allocation14_spill] sm:$0xff] }
 0x18e   : > { %9264 = vmatprep.mubr.msk.f32.mxu0 %vm274_vm0, %v11553_v43  ;;  %10225 = vmatpush3.bf16.msra.mxu0 %v10222_v14  ;;  %v13425_v43 = vld [vmem:[#allocation15_spill] sm:$0xff]  ;;  %v13440_v14 = vld [vmem:[#allocation30_spill] sm:$0xff] }
 0x18f   : > { %10227 = vmatprep.subr.bf16.mxu0 %v10226_v25 }
 0x191   : > { %9265 = vmatmul.mubr.msk.f32.gmra.mrb[4].mxu0 %vm274_vm0, %v11566_v48  ;;  %v13426_v48 = vld [vmem:[#allocation16_spill] sm:$0xff] }
 0x192   : > { %9267 = vmatprep.mubr.msk.f32.mxu0 %vm274_vm0, %v11573_v51  ;;  %v13427_v51 = vld [vmem:[#allocation17_spill] sm:$0xff] }
 0x195   : > { %9268 = vmatmul.mubr.msk.f32.gmra.mrb[6].mxu0 %vm274_vm0, %v11581_v55  ;;  %v12055_v55 = vld [vmem:[#allocation2 + $0x181] sm:$0xff] }
 0x196   : > { %9270 = vmatprep.mubr.msk.f32.mxu0 %vm274_vm0, %v11583_v56  ;;  %v13428_v56 = vld [vmem:[#allocation18_spill] sm:$0xff] }
 0x199   : > { %9271 = vmatmul.mubr.msk.f32.gmra.mrb[8].mxu0 %vm274_vm0, %v11589_v57  ;;  %v12061_v57 = vld [vmem:[#allocation2 + $0x189] sm:$0xff] }
 0x19a   : > { %9273 = vmatprep.mubr.msk.f32.mxu0 %vm274_vm0, %v11591_v58  ;;  %v2763_v58 = vld [vmem:[#allocation6 + $0xd0] sm:$0xff] }
 0x19d   : > { %9274 = vmatmul.mubr.msk.f32.gmra.mrb[10].mxu0 %vm274_vm0, %v11597_v59  ;;  %v2764_v59 = vld [vmem:[#allocation6 + $0xd8] sm:$0xff] }
 0x19e   : > { %9276 = vmatprep.mubr.msk.f32.mxu0 %vm274_vm0, %v11599_v60  ;;  %v10230_v60 = vpack.c.bf16 %v2764_v59, %v2763_v58  ;;  %v13452_v58 = vld [vmem:[#allocation42_spill] sm:$0xff]  ;;  %v13453_v59 = vld [vmem:[#allocation44_spill] sm:$0xff] }
 0x1a1   : > { %9277 = vmatmul.mubr.msk.f32.gmra.mrb[12].mxu0 %vm274_vm0, %v11605_v61  ;;  %v3151_v61 = vld [vmem:[#allocation6 + $0xe0] sm:$0xff] }
 0x1a2   : > { %9279 = vmatprep.mubr.msk.f32.mxu0 %vm274_vm0, %v11607_v62  ;;  %v3152_v62 = vld [vmem:[#allocation6 + $0xe8] sm:$0xff] }
 0x1a5   : > { %9280 = vmatmul.mubr.msk.f32.gmra.mrb[14].mxu0 %vm274_vm0, %v11613_v63  ;;  %v10234_v63 = vpack.c.bf16 %v3152_v62, %v3151_v61  ;;  %v12129_v61 = vld [vmem:[#allocation2 + $0x18a] sm:$0xff] }
 0x1a6   : > { %9282 = vmatprep.mubr.msk.f32.mxu0 %vm274_vm0, %v11615_v1  ;;  %v13429_v1 = vld [vmem:[#allocation19_spill] sm:$0xff]  ;;  %v3153_v62 = vld [vmem:[#allocation6 + $0xf0] sm:$0xff] }
 0x1a9   : > { %9283 = vmatmul.mubr.msk.f32.gmra.mrb[16].mxu0 %vm274_vm0, %v11621_v2  ;;  %v13430_v2 = vld [vmem:[#allocation20_spill] sm:$0xff] }
 0x1aa   : > { %9285 = vmatprep.mubr.msk.f32.mxu0 %vm274_vm0, %v11623_v3  ;;  %v13431_v3 = vld [vmem:[#allocation21_spill] sm:$0xff] }
 0x1ad   : > { %9286 = vmatmul.mubr.msk.f32.gmra.mrb[18].mxu0 %vm274_vm0, %v11629_v4  ;;  %v13432_v4 = vld [vmem:[#allocation22_spill] sm:$0xff] }
 0x1ae   : > { %9288 = vmatprep.mubr.msk.f32.mxu0 %vm274_vm0, %v11631_v5  ;;  %v13433_v5 = vld [vmem:[#allocation23_spill] sm:$0xff] }
 0x1b1   : > { %9289 = vmatmul.mubr.msk.f32.gmra.mrb[20].mxu0 %vm274_vm0, %v11637_v6  ;;  %v13434_v6 = vld [vmem:[#allocation24_spill] sm:$0xff] }
 0x1b2   : > { %9291 = vmatprep.mubr.msk.f32.mxu0 %vm274_vm0, %v13421_v35  ;;  %v13444_v35 = vld [vmem:[#allocation34_spill] sm:$0xff] }
 0x1b5   : > { %9292 = vmatmul.mubr.msk.f32.gmra.mrb[22].mxu0 %vm274_vm0, %v13422_v38  ;;  %v13445_v38 = vld [vmem:[#allocation35_spill] sm:$0xff] }
 0x1b6   : > { %9294 = vmatprep.mubr.msk.f32.mxu0 %vm274_vm0, %v13423_v39  ;;  %v13446_v39 = vld [vmem:[#allocation36_spill] sm:$0xff] }
 0x1b9   : > { %9295 = vmatmul.mubr.msk.f32.gmra.mrb[24].mxu0 %vm274_vm0, %v13424_v40  ;;  %v13447_v40 = vld [vmem:[#allocation37_spill] sm:$0xff] }
 0x1ba   : > { %9297 = vmatprep.mubr.msk.f32.mxu0 %vm274_vm0, %v13425_v43  ;;  %v13448_v43 = vld [vmem:[#allocation38_spill] sm:$0xff] }
 0x1bd   : > { %9298 = vmatmul.mubr.msk.f32.gmra.mrb[26].mxu0 %vm274_vm0, %v13426_v48  ;;  %v13449_v48 = vld [vmem:[#allocation39_spill] sm:$0xff] }
 0x1be   : > { %9300 = vmatprep.mubr.msk.f32.mxu0 %vm274_vm0, %v13427_v51  ;;  %v13450_v51 = vld [vmem:[#allocation40_spill] sm:$0xff] }
 0x1c1   : > { %9301 = vmatmul.mubr.msk.f32.gmra.mrb[28].mxu0 %vm274_vm0, %v13428_v56  ;;  %v13451_v56 = vld [vmem:[#allocation41_spill] sm:$0xff] }
 0x1c2   : > { %9303 = vmatprep.mubr.msk.f32.mxu0 %vm274_vm0, %v12055_v55 }
 0x1c5   : > { %9304 = vmatmul.mubr.msk.f32.gmra.mrb[30].mxu0 %vm274_vm0, %v12061_v57 }
 0x1c6   : > { %9314 = vmatprep.mubr.msk.f32.mxu0 %vm274_vm0, %v11803_v13  ;;  %v13436_v13 = vld [vmem:[#allocation26_spill] sm:$0xff] }
 0x1c9   : > { %9315 = vmatmul.mubr.msk.f32.vlgmr.msra.gmra.mrb[0].mxu0 %vm274_vm0, %v11809_v9  ;;  %v13435_v9 = vld [vmem:[#allocation25_spill] sm:$0xff] }
 0x1ca   : > { %10229 = vmatpush3.bf16.msra.mxu0 %v10226_v25  ;;  %9317 = vmatprep.mubr.msk.f32.mxu0 %vm274_vm0, %v11811_v8  ;;  %v13443_v25 = vld [vmem:[#allocation33_spill] sm:$0xff] }
 0x1cb   : > { %10231 = vmatprep.subr.bf16.mxu0 %v10230_v60 }
 0x1cd   : > { %9318 = vmatmul.mubr.msk.f32.gmra.mrb[2].mxu0 %vm274_vm0, %v13429_v1 }
 0x1ce   : > { %9320 = vmatprep.mubr.msk.f32.mxu0 %vm274_vm0, %v13430_v2  ;;  %10233 = vmatpush3.bf16.msra.mxu0 %v10230_v60  ;;  %v12123_v60 = vld [vmem:[#allocation2 + $0x182] sm:$0xff] }
 0x1cf   : > { %10235 = vmatprep.subr.bf16.mxu0 %v10234_v63  ;;  %13454 = vst [vmem:[#allocation11_spill] sm:$0xff] %v12123_v60 }
 0x1d1   : > { %9321 = vmatmul.mubr.msk.f32.gmra.mrb[4].mxu0 %vm274_vm0, %v13431_v3 }
 0x1d2   : > { %9323 = vmatprep.mubr.msk.f32.mxu0 %vm274_vm0, %v13432_v4 }
 0x1d5   : > { %9324 = vmatmul.mubr.msk.f32.gmra.mrb[6].mxu0 %vm274_vm0, %v13433_v5 }
 0x1d6   : > { %9326 = vmatprep.mubr.msk.f32.mxu0 %vm274_vm0, %v13434_v6 }
 0x1d9   : > { %9327 = vmatmul.mubr.msk.f32.gmra.mrb[8].mxu0 %vm274_vm0, %v13435_v9 }
 0x1da   : > { %9329 = vmatprep.mubr.msk.f32.mxu0 %vm274_vm0, %v13436_v13 }
 0x1dd   : > { %9330 = vmatmul.mubr.msk.f32.gmra.mrb[10].mxu0 %vm274_vm0, %v13437_v17 }
 0x1de   : > { %9332 = vmatprep.mubr.msk.f32.mxu0 %vm274_vm0, %v13438_v23 }
 0x1e1   : > { %9333 = vmatmul.mubr.msk.f32.gmra.mrb[12].mxu0 %vm274_vm0, %v13439_v0 }
 0x1e2   : > { %9335 = vmatprep.mubr.msk.f32.mxu0 %vm274_vm0, %v13440_v14 }
 0x1e5   : > { %9336 = vmatmul.mubr.msk.f32.gmra.mrb[14].mxu0 %vm274_vm0, %v13441_v11 }
 0x1e6   : > { %9338 = vmatprep.mubr.msk.f32.mxu0 %vm274_vm0, %v13442_v12 }
 0x1e9   : > { %9339 = vmatmul.mubr.msk.f32.gmra.mrb[16].mxu0 %vm274_vm0, %v13443_v25 }
 0x1ea   : > { %9341 = vmatprep.mubr.msk.f32.mxu0 %vm274_vm0, %v13444_v35 }
 0x1ed   : > { %9342 = vmatmul.mubr.msk.f32.gmra.mrb[18].mxu0 %vm274_vm0, %v13445_v38 }
 0x1ee   : > { %9344 = vmatprep.mubr.msk.f32.mxu0 %vm274_vm0, %v13446_v39 }
 0x1f1   : > { %9345 = vmatmul.mubr.msk.f32.gmra.mrb[20].mxu0 %vm274_vm0, %v13447_v40 }
 0x1f2   : > { %9347 = vmatprep.mubr.msk.f32.mxu0 %vm274_vm0, %v13448_v43 }
 0x1f5   : > { %9348 = vmatmul.mubr.msk.f32.gmra.mrb[22].mxu0 %vm274_vm0, %v13449_v48 }
 0x1f6   : > { %9350 = vmatprep.mubr.msk.f32.mxu0 %vm274_vm0, %v13450_v51 }
 0x1f9   : > { %9351 = vmatmul.mubr.msk.f32.gmra.mrb[24].mxu0 %vm274_vm0, %v13451_v56  ;;  %v3154_v56 = vld [vmem:[#allocation6 + $0xf8] sm:$0xff] }
 0x1fa   : > { %9353 = vmatprep.mubr.msk.f32.mxu0 %vm274_vm0, %v13452_v58  ;;  %v3542_v58 = vld [vmem:[#allocation6 + $0x108] sm:$0xff] }
 0x1fd   : > { %9354 = vmatmul.mubr.msk.f32.gmra.mrb[26].mxu0 %vm274_vm0, %v11916_v18  ;;  %v10238_v18 = vpack.c.bf16 %v3154_v56, %v3153_v62  ;;  %v3132_v56 = vld [vmem:[#allocation2 + $0xd9] sm:$0xff]  ;;  %v3136_v62 = vld [vmem:[#allocation2 + $0x109] sm:$0xff] }
 0x1fe   : > { %9356 = vmatprep.mubr.msk.f32.mxu0 %vm274_vm0, %v13453_v59  ;;  %v3541_v59 = vld [vmem:[#allocation6 + $0x100] sm:$0xff] }
 0x201   : > { %9357 = vmatmul.mubr.msk.f32.gmra.mrb[28].mxu0 %vm274_vm0, %v11924_v10 }
 0x202   : > { %9359 = vmatprep.mubr.msk.f32.mxu0 %vm274_vm0, %v12123_v60  ;;  %v12139_v60 = vpack.c.bf16 %v3542_v58, %v3541_v59  ;;  %v3133_v58 = vld [vmem:[#allocation2 + $0xe1] sm:$0xff]  ;;  %v3134_v59 = vld [vmem:[#allocation2 + $0xf1] sm:$0xff] }
 0x205   : > { %9360 = vmatmul.mubr.msk.f32.gmra.mrb[30].mxu0 %vm274_vm0, %v12129_v61 }
 0x206   : > { %9370 = vmatprep.mubr.msk.f32.mxu0 %vm274_vm0, %v11681_v24  ;;  %v2758_v24 = vld [vmem:[#allocation2 + $0x198] sm:$0xff] }
 0x209   : > { %9371 = vmatmul.mubr.msk.f32.vlgmr.msra.gmra.mrb[0].mxu0 %vm274_vm0, %v11689_v26  ;;  %v2759_v26 = vld [vmem:[#allocation2 + $0x1a0] sm:$0xff] }
 0x20a   : > { %10237 = vmatpush3.bf16.msra.mxu0 %v10234_v63  ;;  %9373 = vmatprep.mubr.msk.f32.mxu0 %vm274_vm0, %v11691_v27  ;;  %v3118_v27 = vld [vmem:[#allocation2 + $0x31] sm:$0xff]  ;;  %v3131_v63 = vld [vmem:[#allocation2 + $0xc9] sm:$0xff] }
 0x20b   : > { %10239 = vmatprep.subr.bf16.mxu0 %v10238_v18 }
 0x20d   : > { %9374 = vmatmul.mubr.msk.f32.gmra.mrb[2].mxu0 %vm274_vm0, %v11698_v28  ;;  %v12197_v28 = vld [vmem:[#allocation6 + $0x110] sm:$0xff] }
 0x20e   : > { %9376 = vmatprep.mubr.msk.f32.mxu0 %vm274_vm0, %v11700_v29  ;;  %10241 = vmatpush3.bf16.msra.mxu0 %v10238_v18  ;;  %v12199_v29 = vld [vmem:[#allocation6 + $0x118] sm:$0xff]  ;;  %v3128_v18 = vld [vmem:[#allocation2 + $0xa9] sm:$0xff] }
 0x20f   : > { %10243 = vmatprep.subr.bf16.mxu0 %v12139_v60 }
 0x211   : > { %9377 = vmatmul.mubr.msk.f32.gmra.mrb[4].mxu0 %vm274_vm0, %v11706_v30  ;;  %v4078_v30 = vld [vmem:[#allocation8 + $0x60] sm:$0xff] }
 0x212   : > { %9379 = vmatprep.mubr.msk.f32.mxu0 %vm274_vm0, %v11708_v31  ;;  %v4079_v31 = vld [vmem:[#allocation8 + $0x68] sm:$0xff] }
 0x215   : > { %9380 = vmatmul.mubr.msk.f32.gmra.mrb[6].mxu0 %vm274_vm0, %v11714_v32  ;;  %v3119_v32 = vld [vmem:[#allocation2 + $0x39] sm:$0xff] }
 0x216   : > { %9382 = vmatprep.mubr.msk.f32.mxu0 %vm274_vm0, %v11716_v33  ;;  %v12203_v33 = vpack.c.bf16 %v4079_v31, %v4078_v30  ;;  %v3142_v30 = vld [vmem:[#allocation2 + $0x151] sm:$0xff]  ;;  %v3143_v31 = vld [vmem:[#allocation2 + $0x159] sm:$0xff] }
 0x218   : > { %10466 = vmatprep.subr.bf16.mxu1 %v12203_v33 }
 0x219   : > { %9383 = vmatmul.mubr.msk.f32.gmra.mrb[8].mxu0 %vm274_vm0, %v11722_v34  ;;  %v4080_v34 = vld [vmem:[#allocation8 + $0x70] sm:$0xff]  ;;  %10472 = vmatpush3.bf16.msra.mxu1 %v12203_v33 }
 0x21a   : > { %9385 = vmatprep.mubr.msk.f32.mxu0 %vm274_vm0, %v11724_v36  ;;  %v4081_v36 = vld [vmem:[#allocation8 + $0x78] sm:$0xff] }
 0x21d   : > { %9386 = vmatmul.mubr.msk.f32.gmra.mrb[10].mxu0 %vm274_vm0, %v11730_v37  ;;  %v13455_v37 = vmov 0.0  }
 0x21e   : > { %9388 = vmatprep.mubr.msk.f32.mxu0 %vm274_vm0, %v11732_v41  ;;  %336 = vst.msk [vmem:[#allocation3 + $0x20] sm:$0xff] %vm330_vm2, %v13455_v37  ;;  %331 = vst.msk [vmem:[#allocation3] sm:$0xff] %vm330_vm2, %v13455_v37  ;;  %v3120_v41 = vld [vmem:[#allocation2 + $0x49] sm:$0xff] }
 0x21f   : > { %337 = vst.msk [vmem:[#allocation3 + $0x28] sm:$0x3] %vm333_vm3, %v13455_v37  ;;  %334 = vst.msk [vmem:[#allocation3 + $0x10] sm:$0x3] %vm333_vm3, %v13455_v37 }
 0x220   : > { %332 = vst.msk [vmem:[#allocation3 + $0x8] sm:$0xff] %vm330_vm2, %v13455_v37  ;;  %335 = vst.msk [vmem:[#allocation3 + $0x18] sm:$0xff] %vm330_vm2, %v13455_v37 }
 0x221   : > { %9389 = vmatmul.mubr.msk.f32.gmra.mrb[12].mxu0 %vm274_vm0, %v11738_v42  ;;  %338 = vst.msk [vmem:[#allocation3 + $0x30] sm:$0xff] %vm330_vm2, %v13455_v37  ;;  %339 = vst.msk [vmem:[#allocation3 + $0x38] sm:$0xff] %vm330_vm2, %v13455_v37  ;;  %v10246_v42 = vpack.c.bf16 %v12199_v29, %v12197_v28  ;;  %v3140_v28 = vld [vmem:[#allocation2 + $0x139] sm:$0xff]  ;;  %v3141_v29 = vld [vmem:[#allocation2 + $0x141] sm:$0xff] }
 0x222   : > { %9391 = vmatprep.mubr.msk.f32.mxu0 %vm274_vm0, %v11740_v44  ;;  %340 = vst.msk [vmem:[#allocation3 + $0x40] sm:$0x3] %vm333_vm3, %v13455_v37  ;;  %343 = vst.msk [vmem:[#allocation3 + $0x58] sm:$0x3] %vm333_vm3, %v13455_v37  ;;  %v12317_v44 = vpack.c.bf16 %v4081_v36, %v4080_v34  ;;  %v3145_v34 = vld [vmem:[#allocation2 + $0x171] sm:$0xff]  ;;  %v3148_v36 = vld [vmem:[#allocation2 + $0x199] sm:$0xff] }
 0x223   : > { %341 = vst.msk [vmem:[#allocation3 + $0x48] sm:$0xff] %vm330_vm2, %v13455_v37  ;;  %342 = vst.msk [vmem:[#allocation3 + $0x50] sm:$0xff] %vm330_vm2, %v13455_v37 }
 0x224   : > { %344 = vst.msk [vmem:[#allocation3 + $0x60] sm:$0xff] %vm330_vm2, %v13455_v37  ;;  %345 = vst.msk [vmem:[#allocation3 + $0x68] sm:$0xff] %vm330_vm2, %v13455_v37  ;;  %10467 = vmatprep.subr.bf16.mxu1 %v12317_v44 }
 0x225   : > { %9392 = vmatmul.mubr.msk.f32.gmra.mrb[14].mxu0 %vm274_vm0, %v11746_v45  ;;  %346 = vst.msk [vmem:[#allocation3 + $0x70] sm:$0x3] %vm333_vm3, %v13455_v37  ;;  %349 = vst.msk [vmem:[#allocation3 + $0x88] sm:$0x3] %vm333_vm3, %v13455_v37  ;;  %v3121_v45 = vld [vmem:[#allocation2 + $0x51] sm:$0xff]  ;;  %10473 = vmatpush3.bf16.msra.mxu1 %v12317_v44 }
 0x226   : > { %9394 = vmatprep.mubr.msk.f32.mxu0 %vm274_vm0, %v11748_v46  ;;  %347 = vst.msk [vmem:[#allocation3 + $0x78] sm:$0xff] %vm330_vm2, %v13455_v37  ;;  %348 = vst.msk [vmem:[#allocation3 + $0x80] sm:$0xff] %vm330_vm2, %v13455_v37  ;;  %v4082_v46 = vld [vmem:[#allocation8 + $0x80] sm:$0xff] }
 0x227   : > { %350 = vst.msk [vmem:[#allocation3 + $0x90] sm:$0xff] %vm330_vm2, %v13455_v37  ;;  %351 = vst.msk [vmem:[#allocation3 + $0x98] sm:$0xff] %vm330_vm2, %v13455_v37 }
 0x228   : > { %352 = vst.msk [vmem:[#allocation3 + $0xa0] sm:$0x3] %vm333_vm3, %v13455_v37  ;;  %355 = vst.msk [vmem:[#allocation3 + $0xb8] sm:$0x3] %vm333_vm3, %v13455_v37 }
 0x229   : > { %9395 = vmatmul.mubr.msk.f32.gmra.mrb[16].mxu0 %vm274_vm0, %v11754_v47  ;;  %353 = vst.msk [vmem:[#allocation3 + $0xa8] sm:$0xff] %vm330_vm2, %v13455_v37  ;;  %354 = vst.msk [vmem:[#allocation3 + $0xb0] sm:$0xff] %vm330_vm2, %v13455_v37  ;;  %v4083_v47 = vld [vmem:[#allocation8 + $0x88] sm:$0xff] }
 0x22a   : > { %9397 = vmatprep.mubr.msk.f32.mxu0 %vm274_vm0, %v11756_v49  ;;  %356 = vst.msk [vmem:[#allocation3 + $0xc0] sm:$0xff] %vm330_vm2, %v13455_v37  ;;  %357 = vst.msk [vmem:[#allocation3 + $0xc8] sm:$0xff] %vm330_vm2, %v13455_v37  ;;  %v3122_v49 = vld [vmem:[#allocation2 + $0x61] sm:$0xff] }
 0x22b   : > { %358 = vst.msk [vmem:[#allocation3 + $0xd0] sm:$0x3] %vm333_vm3, %v13455_v37  ;;  %361 = vst.msk [vmem:[#allocation3 + $0xe8] sm:$0x3] %vm333_vm3, %v13455_v37 }
 0x22c   : > { %359 = vst.msk [vmem:[#allocation3 + $0xd8] sm:$0xff] %vm330_vm2, %v13455_v37  ;;  %360 = vst.msk [vmem:[#allocation3 + $0xe0] sm:$0xff] %vm330_vm2, %v13455_v37 }
 0x22d   : > { %9398 = vmatmul.mubr.msk.f32.gmra.mrb[18].mxu0 %vm274_vm0, %v11762_v50  ;;  %362 = vst.msk [vmem:[#allocation3 + $0xf0] sm:$0xff] %vm330_vm2, %v13455_v37  ;;  %363 = vst.msk [vmem:[#allocation3 + $0xf8] sm:$0xff] %vm330_vm2, %v13455_v37  ;;  %v12324_v50 = vpack.c.bf16 %v4083_v47, %v4082_v46 }
 0x22e   : > { %9400 = vmatprep.mubr.msk.f32.mxu0 %vm274_vm0, %v11764_v52  ;;  %364 = vst.msk [vmem:[#allocation3 + $0x100] sm:$0x3] %vm333_vm3, %v13455_v37  ;;  %367 = vst.msk [vmem:[#allocation3 + $0x118] sm:$0x3] %vm333_vm3, %v13455_v37  ;;  %v4084_v52 = vld [vmem:[#allocation8 + $0x90] sm:$0xff] }
 0x22f   : > { %365 = vst.msk [vmem:[#allocation3 + $0x108] sm:$0xff] %vm330_vm2, %v13455_v37  ;;  %366 = vst.msk [vmem:[#allocation3 + $0x110] sm:$0xff] %vm330_vm2, %v13455_v37  ;;  %10468 = vmatprep.subr.bf16.mxu1 %v12324_v50 }
 0x230   : > { %368 = vst.msk [vmem:[#allocation3 + $0x120] sm:$0xff] %vm330_vm2, %v13455_v37  ;;  %369 = vst.msk [vmem:[#allocation3 + $0x128] sm:$0xff] %vm330_vm2, %v13455_v37  ;;  %10474 = vmatpush3.bf16.msra.mxu1 %v12324_v50 }
 0x231   : > { %9401 = vmatmul.mubr.msk.f32.gmra.mrb[20].mxu0 %vm274_vm0, %v11770_v53  ;;  %370 = vst.msk [vmem:[#allocation3 + $0x130] sm:$0x3] %vm333_vm3, %v13455_v37  ;;  %373 = vst.msk [vmem:[#allocation3 + $0x148] sm:$0x3] %vm333_vm3, %v13455_v37  ;;  %v4085_v53 = vld [vmem:[#allocation8 + $0x98] sm:$0xff] }
 0x232   : > { %9403 = vmatprep.mubr.msk.f32.mxu0 %vm274_vm0, %v11772_v54  ;;  %371 = vst.msk [vmem:[#allocation3 + $0x138] sm:$0xff] %vm330_vm2, %v13455_v37  ;;  %372 = vst.msk [vmem:[#allocation3 + $0x140] sm:$0xff] %vm330_vm2, %v13455_v37  ;;  %v3123_v54 = vld [vmem:[#allocation2 + $0x69] sm:$0xff] }
 0x233   : > { %374 = vst.msk [vmem:[#allocation3 + $0x150] sm:$0xff] %vm330_vm2, %v13455_v37  ;;  %375 = vst.msk [vmem:[#allocation3 + $0x158] sm:$0xff] %vm330_vm2, %v13455_v37 }
 0x234   : > { %376 = vst.msk [vmem:[#allocation3 + $0x160] sm:$0x3] %vm333_vm3, %v13455_v37  ;;  %379 = vst.msk [vmem:[#allocation3 + $0x178] sm:$0x3] %vm333_vm3, %v13455_v37 }
 0x235   : > { %9404 = vmatmul.mubr.msk.f32.gmra.mrb[22].mxu0 %vm274_vm0, %v11778_v15  ;;  %377 = vst.msk [vmem:[#allocation3 + $0x168] sm:$0xff] %vm330_vm2, %v13455_v37  ;;  %378 = vst.msk [vmem:[#allocation3 + $0x170] sm:$0xff] %vm330_vm2, %v13455_v37  ;;  %v3124_v15 = vld [vmem:[#allocation2 + $0x79] sm:$0xff] }
 0x236   : > { %9406 = vmatprep.mubr.msk.f32.mxu0 %vm274_vm0, %v11780_v16  ;;  %380 = vst.msk [vmem:[#allocation3 + $0x180] sm:$0xff] %vm330_vm2, %v13455_v37  ;;  %381 = vst.msk [vmem:[#allocation3 + $0x188] sm:$0xff] %vm330_vm2, %v13455_v37  ;;  %v12330_v16 = vpack.c.bf16 %v4085_v53, %v4084_v52 }
 0x237   : > { %382 = vst.msk [vmem:[#allocation3 + $0x190] sm:$0x3] %vm333_vm3, %v13455_v37  ;;  %385 = vst.msk [vmem:[#allocation3 + $0x1a8] sm:$0x3] %vm333_vm3, %v13455_v37 }
 0x238   : > { %383 = vst.msk [vmem:[#allocation3 + $0x198] sm:$0xff] %vm330_vm2, %v13455_v37  ;;  %384 = vst.msk [vmem:[#allocation3 + $0x1a0] sm:$0xff] %vm330_vm2, %v13455_v37  ;;  %10469 = vmatprep.subr.bf16.mxu1 %v12330_v16  ;;  %v3149_v37 = vld [vmem:[#allocation2 + $0x1a1] sm:$0xff] }
 0x239   : > { %9407 = vmatmul.mubr.msk.f32.gmra.mrb[24].mxu0 %vm274_vm0, %v11790_v20  ;;  %v3125_v20 = vld [vmem:[#allocation2 + $0x81] sm:$0xff]  ;;  %10475 = vmatpush3.bf16.msra.mxu1 %v12330_v16 }
 0x23a   : > { %9409 = vmatprep.mubr.msk.f32.mxu0 %vm274_vm0, %v11792_v21  ;;  %v3126_v21 = vld [vmem:[#allocation2 + $0x91] sm:$0xff] }
 0x23d   : > { %9410 = vmatmul.mubr.msk.f32.gmra.mrb[26].mxu0 %vm274_vm0, %v11798_v22  ;;  %v3127_v22 = vld [vmem:[#allocation2 + $0x99] sm:$0xff] }
 0x23e   : > { %9412 = vmatprep.mubr.msk.f32.mxu0 %vm274_vm0, %v11987_v7  ;;  %v3129_v7 = vld [vmem:[#allocation2 + $0xb1] sm:$0xff] }
 0x241   : > { %9413 = vmatmul.mubr.msk.f32.gmra.mrb[28].mxu0 %vm274_vm0, %v11993_v19  ;;  %v3130_v19 = vld [vmem:[#allocation2 + $0xc1] sm:$0xff] }
 0x242   : > { %9415 = vmatprep.mubr.msk.f32.mxu0 %vm274_vm0, %v2758_v24  ;;  %v3137_v24 = vld [vmem:[#allocation2 + $0x111] sm:$0xff] }
 0x245   : > { %9416 = vmatmul.mubr.msk.f32.gmra.mrb[30].mxu0 %vm274_vm0, %v2759_v26  ;;  %v3138_v26 = vld [vmem:[#allocation2 + $0x121] sm:$0xff] }
 0x246   : > { %9426 = vmatprep.mubr.msk.f32.mxu0 %vm274_vm0, %v3118_v27  ;;  %v3139_v27 = vld [vmem:[#allocation2 + $0x129] sm:$0xff] }
 0x249   : > { %9427 = vmatmul.mubr.msk.f32.vlgmr.msra.gmra.mrb[0].mxu0 %vm274_vm0, %v3119_v32  ;;  %v3144_v32 = vld [vmem:[#allocation2 + $0x169] sm:$0xff] }
 0x24a   : > { %10245 = vmatpush3.bf16.msra.mxu0 %v12139_v60  ;;  %9429 = vmatprep.mubr.msk.f32.mxu0 %vm274_vm0, %v3120_v41  ;;  %v3135_v60 = vld [vmem:[#allocation2 + $0xf9] sm:$0xff] }
 0x24b   : > { %10247 = vmatprep.subr.bf16.mxu0 %v10246_v42 }
 0x24d   : > { %9430 = vmatmul.mubr.msk.f32.gmra.mrb[2].mxu0 %vm274_vm0, %v3121_v45 }
 0x24e   : > { %9432 = vmatprep.mubr.msk.f32.mxu0 %vm274_vm0, %v3122_v49  ;;  %10249 = vmatpush3.bf16.msra.mxu0 %v10246_v42 }
 0x24f   : > { %10251 = vmatprep.subr.bf16.mxu0 %v12203_v33 }
 0x251   : > { %9433 = vmatmul.mubr.msk.f32.gmra.mrb[4].mxu0 %vm274_vm0, %v3123_v54 }
 0x252   : > { %9435 = vmatprep.mubr.msk.f32.mxu0 %vm274_vm0, %v3124_v15 }
 0x255   : > { %9436 = vmatmul.mubr.msk.f32.gmra.mrb[6].mxu0 %vm274_vm0, %v3125_v20 }
 0x256   : > { %9438 = vmatprep.mubr.msk.f32.mxu0 %vm274_vm0, %v3126_v21 }
 0x259   : > { %9439 = vmatmul.mubr.msk.f32.gmra.mrb[8].mxu0 %vm274_vm0, %v3127_v22  ;;  %v4035_v22 = vld [vmem:[#allocation8 + $0x10] sm:$0xff] }
 0x25a   : > { %9441 = vmatprep.mubr.msk.f32.mxu0 %vm274_vm0, %v3128_v18  ;;  %v4036_v18 = vld [vmem:[#allocation8 + $0x18] sm:$0xff] }
 0x25d   : > { %9442 = vmatmul.mubr.msk.f32.gmra.mrb[10].mxu0 %vm274_vm0, %v3129_v7 }
 0x25e   : > { %9444 = vmatprep.mubr.msk.f32.mxu0 %vm274_vm0, %v3130_v19 }
 0x261   : > { %9445 = vmatmul.mubr.msk.f32.gmra.mrb[12].mxu0 %vm274_vm0, %v3131_v63 }
 0x262   : > { %9447 = vmatprep.mubr.msk.f32.mxu0 %vm274_vm0, %v3132_v56 }
 0x265   : > { %9448 = vmatmul.mubr.msk.f32.gmra.mrb[14].mxu0 %vm274_vm0, %v3133_v58 }
 0x266   : > { %9450 = vmatprep.mubr.msk.f32.mxu0 %vm274_vm0, %v3134_v59 }
 0x269   : > { %9451 = vmatmul.mubr.msk.f32.gmra.mrb[16].mxu0 %vm274_vm0, %v3135_v60  ;;  %v10278_v60 = vpack.c.bf16 %v4036_v18, %v4035_v22 }
 0x26a   : > { %9453 = vmatprep.mubr.msk.f32.mxu0 %vm274_vm0, %v3136_v62 }
 0x26d   : > { %9454 = vmatmul.mubr.msk.f32.gmra.mrb[18].mxu0 %vm274_vm0, %v3137_v24 }
 0x26e   : > { %9456 = vmatprep.mubr.msk.f32.mxu0 %vm274_vm0, %v3138_v26  ;;  %v4037_v26 = vld [vmem:[#allocation8 + $0x20] sm:$0xff] }
 0x271   : > { %9457 = vmatmul.mubr.msk.f32.gmra.mrb[20].mxu0 %vm274_vm0, %v3139_v27  ;;  %v4038_v27 = vld [vmem:[#allocation8 + $0x28] sm:$0xff] }
 0x272   : > { %9459 = vmatprep.mubr.msk.f32.mxu0 %vm274_vm0, %v3140_v28 }
 0x275   : > { %9460 = vmatmul.mubr.msk.f32.gmra.mrb[22].mxu0 %vm274_vm0, %v3141_v29 }
 0x276   : > { %9462 = vmatprep.mubr.msk.f32.mxu0 %vm274_vm0, %v3142_v30 }
 0x279   : > { %9463 = vmatmul.mubr.msk.f32.gmra.mrb[24].mxu0 %vm274_vm0, %v3143_v31 }
 0x27a   : > { %9465 = vmatprep.mubr.msk.f32.mxu0 %vm274_vm0, %v3144_v32 }
 0x27d   : > { %9466 = vmatmul.mubr.msk.f32.gmra.mrb[26].mxu0 %vm274_vm0, %v3145_v34 }
 0x27e   : > { %9468 = vmatprep.mubr.msk.f32.mxu0 %vm274_vm0, %v12055_v55  ;;  %v13457_v55 = vld [vmem:[#allocation42_spill] sm:$0xff] }
 0x281   : > { %9469 = vmatmul.mubr.msk.f32.gmra.mrb[28].mxu0 %vm274_vm0, %v12061_v57  ;;  %v13458_v57 = vld [vmem:[#allocation43_spill] sm:$0xff] }
 0x282   : > { %9471 = vmatprep.mubr.msk.f32.mxu0 %vm274_vm0, %v3148_v36  ;;  %v10282_v36 = vpack.c.bf16 %v4038_v27, %v4037_v26 }
 0x285   : > { %9472 = vmatmul.mubr.msk.f32.gmra.mrb[30].mxu0 %vm274_vm0, %v3149_v37 }
 0x286   : > { %9482 = vmatprep.mubr.msk.f32.mxu0 %vm274_vm0, %v11811_v8  ;;  %v13456_v8 = vld [vmem:[#allocation41_spill] sm:$0xff] }
 0x289   : > { %9483 = vmatmul.mubr.msk.f32.vlgmr.msra.gmra.mrb[0].mxu0 %vm274_vm0, %v13429_v1  ;;  %v13459_v1 = vld [vmem:[#allocation44_spill] sm:$0xff] }
 0x28a   : > { %9485 = vmatprep.mubr.msk.f32.mxu0 %vm274_vm0, %v13430_v2  ;;  %10253 = vmatpush3.bf16.msra.mxu0 %v12203_v33  ;;  %v13460_v2 = vld [vmem:[#allocation11_spill] sm:$0xff] }
 0x28b   : > { %10255 = vmatprep.subr.bf16.mxu0 %v12317_v44 }
 0x28d   : > { %9486 = vmatmul.mubr.msk.f32.gmra.mrb[2].mxu0 %vm274_vm0, %v13431_v3  ;;  %v3538_v3 = vld [vmem:[#allocation2 + $0x19a] sm:$0xff] }
 0x28e   : > { %9488 = vmatprep.mubr.msk.f32.mxu0 %vm274_vm0, %v13432_v4  ;;  %10257 = vmatpush3.bf16.msra.mxu0 %v12317_v44  ;;  %v3539_v4 = vld [vmem:[#allocation2 + $0x1a2] sm:$0xff] }
 0x28f   : > { %10259 = vmatprep.subr.bf16.mxu0 %v12324_v50 }
 0x291   : > { %9489 = vmatmul.mubr.msk.f32.gmra.mrb[4].mxu0 %vm274_vm0, %v13433_v5  ;;  %v4086_v5 = vld [vmem:[#allocation8 + $0xa0] sm:$0xff] }
 0x292   : > { %9491 = vmatprep.mubr.msk.f32.mxu0 %vm274_vm0, %v13434_v6  ;;  %10261 = vmatpush3.bf16.msra.mxu0 %v12324_v50  ;;  %v4087_v6 = vld [vmem:[#allocation8 + $0xa8] sm:$0xff] }
 0x293   : > { %10263 = vmatprep.subr.bf16.mxu0 %v12330_v16 }
 0x295   : > { %9492 = vmatmul.mubr.msk.f32.gmra.mrb[6].mxu0 %vm274_vm0, %v13435_v9  ;;  %v10266_v9 = vpack.c.bf16 %v4087_v6, %v4086_v5 }
 0x296   : > { %9494 = vmatprep.mubr.msk.f32.mxu0 %vm274_vm0, %v13436_v13  ;;  %10265 = vmatpush3.bf16.msra.mxu0 %v12330_v16  ;;  %v4088_v13 = vld [vmem:[#allocation8 + $0xb0] sm:$0xff] }
 0x297   : > { %10267 = vmatprep.subr.bf16.mxu0 %v10266_v9  ;;  %10470 = vmatprep.subr.bf16.mxu1 %v10266_v9 }
 0x298   : > { %10476 = vmatpush3.bf16.msra.mxu1 %v10266_v9 }
 0x299   : > { %9495 = vmatmul.mubr.msk.f32.gmra.mrb[8].mxu0 %vm274_vm0, %v13437_v17 }
 0x29a   : > { %9497 = vmatprep.mubr.msk.f32.mxu0 %vm274_vm0, %v13438_v23  ;;  %10269 = vmatpush3.bf16.msra.mxu0 %v10266_v9  ;;  %v4045_v23 = vld [vmem:[#allocation3 + $0x1] sm:$0xff] }
 0x29d   : > { %9498 = vmatmul.mubr.msk.f32.gmra.mrb[10].mxu0 %vm274_vm0, %v13439_v0  ;;  %v4046_v0 = vld [vmem:[#allocation3 + $0x9] sm:$0xff] }
 0x29e   : > { %9500 = vmatprep.mubr.msk.f32.mxu0 %vm274_vm0, %v13440_v14  ;;  %v4033_v14 = vld [vmem:[#allocation8] sm:$0xff] }
 0x2a1   : > { %9501 = vmatmul.mubr.msk.f32.gmra.mrb[12].mxu0 %vm274_vm0, %v13441_v11  ;;  %v4034_v11 = vld [vmem:[#allocation8 + $0x8] sm:$0xff] }
 0x2a2   : > { %9503 = vmatprep.mubr.msk.f32.mxu0 %vm274_vm0, %v13442_v12  ;;  %v10274_v12 = vpack.c.bf16 %v4034_v11, %v4033_v14 }
 0x2a5   : > { %9504 = vmatmul.mubr.msk.f32.gmra.mrb[14].mxu0 %vm274_vm0, %v13443_v25  ;;  %v12438_v25 = vld [vmem:[%s13275_s2] ss:$0 sm:$0xff] }
 0x2a6   : > { %9506 = vmatprep.mubr.msk.f32.mxu0 %vm274_vm0, %v13444_v35 }
 0x2a9   : > { %9507 = vmatmul.mubr.msk.f32.gmra.mrb[16].mxu0 %vm274_vm0, %v13445_v38 }
 0x2aa   : > { %9509 = vmatprep.mubr.msk.f32.mxu0 %vm274_vm0, %v13446_v39 }
 0x2ad   : > { %9510 = vmatmul.mubr.msk.f32.gmra.mrb[18].mxu0 %vm274_vm0, %v13447_v40 }
 0x2ae   : > { %9512 = vmatprep.mubr.msk.f32.mxu0 %vm274_vm0, %v13448_v43 }
 0x2b1   : > { %9513 = vmatmul.mubr.msk.f32.gmra.mrb[20].mxu0 %vm274_vm0, %v13449_v48 }
 0x2b2   : > { %9515 = vmatprep.mubr.msk.f32.mxu0 %vm274_vm0, %v13450_v51 }
 0x2b5   : > { %9516 = vmatmul.mubr.msk.f32.gmra.mrb[22].mxu0 %vm274_vm0, %v13456_v8 }
 0x2b6   : > { %9518 = vmatprep.mubr.msk.f32.mxu0 %vm274_vm0, %v13457_v55  ;;  %v4039_v55 = vld [vmem:[#allocation8 + $0x30] sm:$0xff] }
 0x2b9   : > { %9519 = vmatmul.mubr.msk.f32.gmra.mrb[24].mxu0 %vm274_vm0, %v13458_v57  ;;  %v4040_v57 = vld [vmem:[#allocation8 + $0x38] sm:$0xff] }
 0x2ba   : > { %9521 = vmatprep.mubr.msk.f32.mxu0 %vm274_vm0, %v13459_v1  ;;  %v10286_v9 = vpack.c.bf16 %v4040_v57, %v4039_v55 }
 0x2bd   : > { %9522 = vmatmul.mubr.msk.f32.gmra.mrb[26].mxu0 %vm274_vm0, %v11924_v10  ;;  %v4089_v10 = vld [vmem:[#allocation8 + $0xb8] sm:$0xff] }
 0x2be   : > { %9524 = vmatprep.mubr.msk.f32.mxu0 %vm274_vm0, %v13460_v2  ;;  %v10270_v17 = vpack.c.bf16 %v4089_v10, %v4088_v13 }
 0x2c0   : > { %10271 = vmatprep.subr.bf16.mxu0 %v10270_v17  ;;  %10471 = vmatprep.subr.bf16.mxu1 %v10270_v17 }
 0x2c1   : > { %9525 = vmatmul.mubr.msk.f32.gmra.mrb[28].mxu0 %vm274_vm0, %v12129_v61  ;;  %10477 = vmatpush3.bf16.msra.mxu1 %v10270_v17 }
 0x2c2   : > { %9527 = vmatprep.mubr.msk.f32.mxu0 %vm274_vm0, %v3538_v3  ;;  %10273 = vmatpush3.bf16.msra.mxu0 %v10270_v17  ;;  %v4041_v17 = vld [vmem:[#allocation8 + $0x40] sm:$0xff] }
 0x2c3   : > { %10275 = vmatprep.subr.bf16.mxu1 %v10274_v12 }
 0x2c5   : > { %9528 = vmatmul.mubr.msk.f32.gmra.mrb[30].mxu0 %vm274_vm0, %v3539_v4 }
 0x2c6   : > { %9554 = vmatprep.mubr.msk.f32.mxu0 %vm330_vm2, %v4045_v23  ;;  %v4042_v23 = vld [vmem:[#allocation8 + $0x48] sm:$0xff] }
 0x2c9   : > { %9555 = vmatmul.mubr.msk.f32.vlgmr.msra.gmra.mrb[32].mxu0 %vm330_vm2, %v4046_v0 }
 0x35c   : > { %v9484_v35 = vpop.f32.mrb[0].mxu0 }
 0x35d   : > { %v3905_v38 = vadd.f32 %v9484_v35, %v12438_v25  ;;  %v3707_v39 = vpop.f32.mrb[1].mxu0 }
 0x35e   : > { %v3904_v40 = vadd.f32 %v12438_v25, %v3707_v39  ;;  %v10290_v39 = vpack.c.bf16 %v4042_v23, %v4041_v17 }
 0x35f   : > { %v3937_v43 = vmax.f32 %v3905_v38, 0.0 }
 0x360   : > { %v3936_v48 = vmax.f32 %v3904_v40, 0.0  ;;  %v9487_v51 = vpop.f32.mrb[2].mxu0 }
 0x361   : > { %3970 = vst.msk [vmem:[#allocation3 + $0x21] sm:$0xff] %vm330_vm2, %v3937_v43  ;;  %v3907_v61 = vadd.f32 %v9487_v51, %v12438_v25  ;;  %v3717_v33 = vpop.f32.mrb[3].mxu0  ;;  %v4044_v51 = vld [vmem:[#allocation8 + $0x58] sm:$0xff] }
 0x362   : > { %3969 = vst.msk [vmem:[#allocation3 + $0x19] sm:$0xff] %vm330_vm2, %v3936_v48  ;;  %v3906_v41 = vadd.f32 %v12438_v25, %v3717_v33  ;;  %v4043_v48 = vld [vmem:[#allocation8 + $0x50] sm:$0xff] }
 0x363   : > { %v3939_v42 = vmax.f32 %v3907_v61, 0.0 }
 0x364   : > { %v3938_v44 = vmax.f32 %v3906_v41, 0.0  ;;  %v9490_v45 = vpop.f32.mrb[4].mxu0 }
 0x365   : > { %3972 = vst.msk [vmem:[#allocation3 + $0x39] sm:$0xff] %vm330_vm2, %v3939_v42  ;;  %v3909_v46 = vadd.f32 %v9490_v45, %v12438_v25  ;;  %v3727_v47 = vpop.f32.mrb[5].mxu0 }
 0x366   : > { %3971 = vst.msk [vmem:[#allocation3 + $0x31] sm:$0xff] %vm330_vm2, %v3938_v44  ;;  %v3908_v49 = vadd.f32 %v12438_v25, %v3727_v47 }
 0x367   : > { %v3941_v50 = vmax.f32 %v3909_v46, 0.0  ;;  %v10294_v46 = vpack.c.bf16 %v4044_v51, %v4043_v48 }
 0x368   : > { %v3940_v52 = vmax.f32 %v3908_v49, 0.0  ;;  %v9493_v53 = vpop.f32.mrb[6].mxu0  ;;  %v12458_v21 = vld [vmem:[#allocation3 + $0x21] sm:$0xff] }
 0x369   : > { %3974 = vst.msk [vmem:[#allocation3 + $0x51] sm:$0xff] %vm330_vm2, %v3941_v50  ;;  %v3911_v54 = vadd.f32 %v9493_v53, %v12438_v25  ;;  %v3737_v15 = vpop.f32.mrb[7].mxu0  ;;  %v12452_v16 = vld [vmem:[#allocation3 + $0x19] sm:$0xff]  ;;  %v4765_v50 = vld [vmem:[#allocation8 + $0xc0] sm:$0xff] }
 0x36a   : > { %3973 = vst.msk [vmem:[#allocation3 + $0x49] sm:$0xff] %vm330_vm2, %v3940_v52  ;;  %v3910_v20 = vadd.f32 %v12438_v25, %v3737_v15  ;;  %9557 = vmatprep.mubr.msk.f32.mxu0 %vm330_vm2, %v12452_v16  ;;  %v4766_v52 = vld [vmem:[#allocation8 + $0xc8] sm:$0xff] }
 0x36b   : > { %v3943_v7 = vmax.f32 %v3911_v54, 0.0  ;;  %9558 = vmatmul.mubr.msk.f32.gmra.mrb[34].mxu0 %vm330_vm2, %v12458_v21 }
 0x36c   : > { %v3942_v19 = vmax.f32 %v3910_v20, 0.0  ;;  %v9496_v63 = vpop.f32.mrb[8].mxu0  ;;  %v12470_v24 = vld [vmem:[#allocation3 + $0x39] sm:$0xff] }
 0x36d   : > { %3976 = vst.msk [vmem:[#allocation3 + $0x69] sm:$0xff] %vm330_vm2, %v3943_v7  ;;  %v3913_v56 = vadd.f32 %v9496_v63, %v12438_v25  ;;  %v3747_v58 = vpop.f32.mrb[9].mxu0  ;;  %v12464_v59 = vld [vmem:[#allocation3 + $0x31] sm:$0xff]  ;;  %v12526_v7 = vpack.c.bf16 %v4766_v52, %v4765_v50 }
 0x36e   : > { %3975 = vst.msk [vmem:[#allocation3 + $0x61] sm:$0xff] %vm330_vm2, %v3942_v19  ;;  %v3912_v62 = vadd.f32 %v12438_v25, %v3747_v58  ;;  %9560 = vmatprep.mubr.msk.f32.mxu1 %vm330_vm2, %v12464_v59 }
 0x36f   : > { %v3945_v28 = vmax.f32 %v3913_v56, 0.0  ;;  %9561 = vmatmul.mubr.msk.f32.vlgmr.msra.gmra.mrb[0].mxu1 %vm330_vm2, %v12470_v24 }
 0x370   : > { %v3944_v29 = vmax.f32 %v3912_v62, 0.0  ;;  %v9499_v30 = vpop.f32.mrb[10].mxu0  ;;  %10277 = vmatpush3.bf16.msra.mxu1 %v10274_v12  ;;  %v12482_v8 = vld [vmem:[#allocation3 + $0x51] sm:$0xff] }
 0x371   : > { %3978 = vst.msk [vmem:[#allocation3 + $0x81] sm:$0xff] %vm330_vm2, %v3945_v28  ;;  %v3915_v31 = vadd.f32 %v9499_v30, %v12438_v25  ;;  %v3757_v32 = vpop.f32.mrb[11].mxu0  ;;  %v12476_v34 = vld [vmem:[#allocation3 + $0x49] sm:$0xff]  ;;  %10279 = vmatprep.subr.bf16.mxu1 %v10278_v60 }
 0x372   : > { %3977 = vst.msk [vmem:[#allocation3 + $0x79] sm:$0xff] %vm330_vm2, %v3944_v29  ;;  %v3914_v37 = vadd.f32 %v12438_v25, %v3757_v32  ;;  %9563 = vmatprep.mubr.msk.f32.mxu1 %vm330_vm2, %v12476_v34 }
 0x373   : > { %v3947_v1 = vmax.f32 %v3915_v31, 0.0  ;;  %9564 = vmatmul.mubr.msk.f32.gmra.mrb[2].mxu1 %vm330_vm2, %v12482_v8 }
 0x374   : > { %v3946_v2 = vmax.f32 %v3914_v37, 0.0  ;;  %v9502_v3 = vpop.f32.mrb[12].mxu0  ;;  %10281 = vmatpush3.bf16.msra.mxu1 %v10278_v60  ;;  %v12494_v10 = vld [vmem:[#allocation3 + $0x69] sm:$0xff] }
 0x375   : > { %3980 = vst.msk [vmem:[#allocation3 + $0x99] sm:$0xff] %vm330_vm2, %v3947_v1  ;;  %v3917_v4 = vadd.f32 %v9502_v3, %v12438_v25  ;;  %v3767_v5 = vpop.f32.mrb[13].mxu0  ;;  %v12488_v6 = vld [vmem:[#allocation3 + $0x61] sm:$0xff]  ;;  %10283 = vmatprep.subr.bf16.mxu1 %v10282_v36 }
 0x376   : > { %3979 = vst.msk [vmem:[#allocation3 + $0x91] sm:$0xff] %vm330_vm2, %v3946_v2  ;;  %v3916_v13 = vadd.f32 %v12438_v25, %v3767_v5  ;;  %9566 = vmatprep.mubr.msk.f32.mxu1 %vm330_vm2, %v12488_v6 }
 0x377   : > { %v3949_v0 = vmax.f32 %v3917_v4, 0.0  ;;  %9567 = vmatmul.mubr.msk.f32.gmra.mrb[4].mxu1 %vm330_vm2, %v12494_v10 }
 0x378   : > { %v3948_v14 = vmax.f32 %v3916_v13, 0.0  ;;  %v9505_v11 = vpop.f32.mrb[14].mxu0  ;;  %10285 = vmatpush3.bf16.msra.mxu1 %v10282_v36  ;;  %v12506_v43 = vld [vmem:[#allocation3 + $0x81] sm:$0xff] }
 0x379   : > { %3982 = vst.msk [vmem:[#allocation3 + $0xb1] sm:$0xff] %vm330_vm2, %v3949_v0  ;;  %v3919_v12 = vadd.f32 %v9505_v11, %v12438_v25  ;;  %v3777_v35 = vpop.f32.mrb[15].mxu0  ;;  %v12500_v38 = vld [vmem:[#allocation3 + $0x79] sm:$0xff]  ;;  %10287 = vmatprep.subr.bf16.mxu1 %v10286_v9 }
 0x37a   : > { %3981 = vst.msk [vmem:[#allocation3 + $0xa9] sm:$0xff] %vm330_vm2, %v3948_v14  ;;  %v3918_v40 = vadd.f32 %v12438_v25, %v3777_v35  ;;  %9569 = vmatprep.mubr.msk.f32.mxu1 %vm330_vm2, %v12500_v38 }
 0x37b   : > { %v3951_v61 = vmax.f32 %v3919_v12, 0.0  ;;  %9570 = vmatmul.mubr.msk.f32.gmra.mrb[6].mxu1 %vm330_vm2, %v12506_v43 }
 0x37c   : > { %v3950_v33 = vmax.f32 %v3918_v40, 0.0  ;;  %v9508_v41 = vpop.f32.mrb[16].mxu0  ;;  %10289 = vmatpush3.bf16.msra.mxu1 %v10286_v9  ;;  %v12518_v49 = vld [vmem:[#allocation3 + $0x99] sm:$0xff] }
 0x37d   : > { %3984 = vst.msk [vmem:[#allocation3 + $0xc9] sm:$0xff] %vm330_vm2, %v3951_v61  ;;  %v3921_v42 = vadd.f32 %v9508_v41, %v12438_v25  ;;  %v3787_v44 = vpop.f32.mrb[17].mxu0  ;;  %v12512_v45 = vld [vmem:[#allocation3 + $0x91] sm:$0xff]  ;;  %10291 = vmatprep.subr.bf16.mxu1 %v10290_v39 }
 0x37e   : > { %3983 = vst.msk [vmem:[#allocation3 + $0xc1] sm:$0xff] %vm330_vm2, %v3950_v33  ;;  %v3920_v47 = vadd.f32 %v12438_v25, %v3787_v44  ;;  %9572 = vmatprep.mubr.msk.f32.mxu1 %vm330_vm2, %v12512_v45 }
 0x37f   : > { %v3953_v53 = vmax.f32 %v3921_v42, 0.0  ;;  %9573 = vmatmul.mubr.msk.f32.gmra.mrb[8].mxu1 %vm330_vm2, %v12518_v49 }
 0x380   : > { %v3952_v54 = vmax.f32 %v3920_v47, 0.0  ;;  %v9511_v15 = vpop.f32.mrb[18].mxu0  ;;  %10293 = vmatpush3.bf16.msra.mxu1 %v10290_v39  ;;  %v12532_v63 = vld [vmem:[#allocation3 + $0xb1] sm:$0xff] }
 0x381   : > { %3986 = vst.msk [vmem:[#allocation3 + $0xe1] sm:$0xff] %vm330_vm2, %v3953_v53  ;;  %v3923_v20 = vadd.f32 %v9511_v15, %v12438_v25  ;;  %v3797_v22 = vpop.f32.mrb[19].mxu0  ;;  %v12524_v18 = vld [vmem:[#allocation3 + $0xa9] sm:$0xff]  ;;  %10295 = vmatprep.subr.bf16.mxu1 %v10294_v46 }
 0x382   : > { %3985 = vst.msk [vmem:[#allocation3 + $0xd9] sm:$0xff] %vm330_vm2, %v3952_v54  ;;  %v3922_v19 = vadd.f32 %v12438_v25, %v3797_v22  ;;  %9575 = vmatprep.mubr.msk.f32.mxu1 %vm330_vm2, %v12524_v18 }
 0x383   : > { %v3955_v56 = vmax.f32 %v3923_v20, 0.0  ;;  %9576 = vmatmul.mubr.msk.f32.gmra.mrb[10].mxu1 %vm330_vm2, %v12532_v63 }
 0x384   : > { %v3954_v58 = vmax.f32 %v3922_v19, 0.0  ;;  %v9514_v60 = vpop.f32.mrb[20].mxu0  ;;  %10297 = vmatpush3.bf16.msra.mxu1 %v10294_v46  ;;  %v12545_v29 = vld [vmem:[#allocation3 + $0xc9] sm:$0xff] }
 0x385   : > { %3988 = vst.msk [vmem:[#allocation3 + $0xf9] sm:$0xff] %vm330_vm2, %v3955_v56  ;;  %v3925_v62 = vadd.f32 %v9514_v60, %v12438_v25  ;;  %v3807_v26 = vpop.f32.mrb[21].mxu0  ;;  %v12538_v27 = vld [vmem:[#allocation3 + $0xc1] sm:$0xff]  ;;  %10299 = vmatprep.subr.bf16.mxu1 %v12526_v7 }
 0x386   : > { %3987 = vst.msk [vmem:[#allocation3 + $0xf1] sm:$0xff] %vm330_vm2, %v3954_v58  ;;  %v3924_v28 = vadd.f32 %v12438_v25, %v3807_v26  ;;  %9578 = vmatprep.mubr.msk.f32.mxu1 %vm330_vm2, %v12538_v27  ;;  %v4001_v26 = vld [vmem:[#allocation3] sm:$0xff] }
 0x387   : > { %v3957_v30 = vmax.f32 %v3925_v62, 0.0  ;;  %9579 = vmatmul.mubr.msk.f32.gmra.mrb[12].mxu1 %vm330_vm2, %v12545_v29 }
 0x388   : > { %v3956_v31 = vmax.f32 %v3924_v28, 0.0  ;;  %v9517_v32 = vpop.f32.mrb[22].mxu0  ;;  %v12557_v1 = vld [vmem:[#allocation3 + $0xe1] sm:$0xff] }
 0x389   : > { %3990 = vst.msk [vmem:[#allocation3 + $0x111] sm:$0xff] %vm330_vm2, %v3957_v30  ;;  %v3927_v36 = vadd.f32 %v9517_v32, %v12438_v25  ;;  %v3817_v37 = vpop.f32.mrb[23].mxu0  ;;  %v12551_v55 = vld [vmem:[#allocation3 + $0xd9] sm:$0xff]  ;;  %v4002_v32 = vld [vmem:[#allocation3 + $0x8] sm:$0xff] }
 0x38a   : > { %3989 = vst.msk [vmem:[#allocation3 + $0x109] sm:$0xff] %vm330_vm2, %v3956_v31  ;;  %v3926_v57 = vadd.f32 %v12438_v25, %v3817_v37  ;;  %9581 = vmatprep.mubr.msk.f32.mxu1 %vm330_vm2, %v12551_v55  ;;  %v4767_v30 = vld [vmem:[#allocation8 + $0xd0] sm:$0xff]  ;;  %v4768_v31 = vld [vmem:[#allocation8 + $0xd8] sm:$0xff]  ;;  %v4769_v37 = vld [vmem:[#allocation8 + $0xe0] sm:$0xff] }
 0x38b   : > { %v3959_v2 = vmax.f32 %v3927_v36, 0.0  ;;  %9582 = vmatmul.mubr.msk.f32.gmra.mrb[14].mxu1 %vm330_vm2, %v12557_v1  ;;  %v10302_v36 = vpack.c.bf16 %v4768_v31, %v4767_v30  ;;  %v12686_v30 = vld [vmem:[#allocation3 + $0xb0] sm:$0xff]  ;;  %v12690_v31 = vld [vmem:[#allocation3 + $0xc0] sm:$0xff] }
 0x38c   : > { %v3958_v3 = vmax.f32 %v3926_v57, 0.0  ;;  %v9520_v4 = vpop.f32.mrb[24].mxu0  ;;  %v12569_v23 = vld [vmem:[#allocation3 + $0xf9] sm:$0xff] }
 0x38d   : > { %3992 = vst.msk [vmem:[#allocation3 + $0x129] sm:$0xff] %vm330_vm2, %v3959_v2  ;;  %v3929_v5 = vadd.f32 %v9520_v4, %v12438_v25  ;;  %v3827_v9 = vpop.f32.mrb[25].mxu0  ;;  %v12563_v13 = vld [vmem:[#allocation3 + $0xf1] sm:$0xff]  ;;  %v12634_v4 = vld [vmem:[#allocation3 + $0x20] sm:$0xff] }
 0x38e   : > { %3991 = vst.msk [vmem:[#allocation3 + $0x121] sm:$0xff] %vm330_vm2, %v3958_v3  ;;  %v3928_v17 = vadd.f32 %v12438_v25, %v3827_v9  ;;  %9584 = vmatprep.mubr.msk.f32.mxu1 %vm330_vm2, %v12563_v13  ;;  %v4770_v57 = vld [vmem:[#allocation8 + $0xe8] sm:$0xff]  ;;  %v4772_v9 = vld [vmem:[#allocation8 + $0xf8] sm:$0xff] }
 0x38f   : > { %v3961_v0 = vmax.f32 %v3929_v5, 0.0  ;;  %9585 = vmatmul.mubr.msk.f32.gmra.mrb[16].mxu1 %vm330_vm2, %v12569_v23  ;;  %v12629_v2 = vld [vmem:[#allocation3 + $0x18] sm:$0xff]  ;;  %v10306_v3 = vpack.c.bf16 %v4770_v57, %v4769_v37  ;;  %v4771_v5 = vld [vmem:[#allocation8 + $0xf0] sm:$0xff]  ;;  %v12706_v57 = vld [vmem:[#allocation3 + $0xf0] sm:$0xff] }
 0x390   : > { %v3960_v14 = vmax.f32 %v3928_v17, 0.0  ;;  %v9523_v11 = vpop.f32.mrb[26].mxu0  ;;  %v12581_v48 = vld [vmem:[#allocation3 + $0x111] sm:$0xff]  ;;  %v12702_v37 = vld [vmem:[#allocation3 + $0xe0] sm:$0xff] }
 0x391   : > { %3994 = vst.msk [vmem:[#allocation3 + $0x141] sm:$0xff] %vm330_vm2, %v3961_v0  ;;  %v3931_v12 = vadd.f32 %v9523_v11, %v12438_v25  ;;  %v3837_v35 = vpop.f32.mrb[27].mxu0  ;;  %v12575_v39 = vld [vmem:[#allocation3 + $0x109] sm:$0xff]  ;;  %13461 = vst [vmem:[#allocation12_spill] sm:$0xff] %v12581_v48  ;;  %v10310_v0 = vpack.c.bf16 %v4772_v9, %v4771_v5  ;;  %v4774_v11 = vld [vmem:[#allocation8 + $0x108] sm:$0xff] }
 0x392   : > { %3993 = vst.msk [vmem:[#allocation3 + $0x139] sm:$0xff] %vm330_vm2, %v3960_v14  ;;  %v3930_v40 = vadd.f32 %v12438_v25, %v3837_v35  ;;  %9587 = vmatprep.mubr.msk.f32.mxu1 %vm330_vm2, %v12575_v39  ;;  %v12638_v17 = vld [vmem:[#allocation3 + $0x30] sm:$0xff]  ;;  %v12642_v14 = vld [vmem:[#allocation3 + $0x38] sm:$0xff]  ;;  %v12714_v5 = vld [vmem:[#allocation3 + $0x108] sm:$0xff] }
 0x393   : > { %v3963_v51 = vmax.f32 %v3931_v12, 0.0  ;;  %9588 = vmatmul.mubr.msk.f32.gmra.mrb[18].mxu1 %vm330_vm2, %v12581_v48  ;;  %v12646_v12 = vld [vmem:[#allocation3 + $0x48] sm:$0xff]  ;;  %v12718_v9 = vld [vmem:[#allocation3 + $0x110] sm:$0xff] }
 0x394   : > { %v3962_v61 = vmax.f32 %v3930_v40, 0.0  ;;  %v9526_v33 = vpop.f32.mrb[28].mxu0  ;;  %v12593_v47 = vld [vmem:[#allocation3 + $0x129] sm:$0xff] }
 0x395   : > { %3996 = vst.msk [vmem:[#allocation3 + $0x159] sm:$0xff] %vm330_vm2, %v3963_v51  ;;  %v3933_v41 = vadd.f32 %v9526_v33, %v12438_v25  ;;  %v3847_v42 = vpop.f32.mrb[29].mxu0  ;;  %v12587_v44 = vld [vmem:[#allocation3 + $0x121] sm:$0xff]  ;;  %13463 = vst [vmem:[#allocation14_spill] sm:$0xff] %v12593_v47  ;;  %v12650_v40 = vld [vmem:[#allocation3 + $0x50] sm:$0xff] }
 0x396   : > { %13462 = vst [vmem:[#allocation13_spill] sm:$0xff] %v12587_v44  ;;  %3995 = vst.msk [vmem:[#allocation3 + $0x151] sm:$0xff] %vm330_vm2, %v3962_v61  ;;  %v3932_v46 = vadd.f32 %v12438_v25, %v3847_v42  ;;  %9590 = vmatprep.mubr.msk.f32.mxu1 %vm330_vm2, %v12587_v44  ;;  %v4775_v51 = vld [vmem:[#allocation8 + $0x110] sm:$0xff]  ;;  %v4776_v61 = vld [vmem:[#allocation8 + $0x118] sm:$0xff] }
 0x397   : > { %v3965_v50 = vmax.f32 %v3933_v41, 0.0  ;;  %9591 = vmatmul.mubr.msk.f32.gmra.mrb[20].mxu1 %vm330_vm2, %v12593_v47  ;;  %v12654_v33 = vld [vmem:[#allocation3 + $0x60] sm:$0xff]  ;;  %v10318_v41 = vpack.c.bf16 %v4776_v61, %v4775_v51  ;;  %v12658_v42 = vld [vmem:[#allocation3 + $0x68] sm:$0xff] }
 0x398   : > { %v3964_v52 = vmax.f32 %v3932_v46, 0.0  ;;  %v9529_v53 = vpop.f32.mrb[30].mxu0  ;;  %v12605_v19 = vld [vmem:[#allocation3 + $0x141] sm:$0xff]  ;;  %v5163_v46 = vld [vmem:[#allocation8 + $0x120] sm:$0xff] }
 0x399   : > { %3998 = vst.msk [vmem:[#allocation3 + $0x171] sm:$0xff] %vm330_vm2, %v3965_v50  ;;  %v3935_v54 = vadd.f32 %v9529_v53, %v12438_v25  ;;  %v3857_v15 = vpop.f32.mrb[31].mxu0  ;;  %v12599_v20 = vld [vmem:[#allocation3 + $0x139] sm:$0xff]  ;;  %13465 = vst [vmem:[#allocation16_spill] sm:$0xff] %v12605_v19  ;;  %v12760_v47 = vld [vmem:[#allocation3 + $0x22] sm:$0xff] }
 0x39a   : > { %13464 = vst [vmem:[#allocation15_spill] sm:$0xff] %v12599_v20  ;;  %3997 = vst.msk [vmem:[#allocation3 + $0x169] sm:$0xff] %vm330_vm2, %v3964_v52  ;;  %v3934_v22 = vadd.f32 %v12438_v25, %v3857_v15  ;;  %9593 = vmatprep.mubr.msk.f32.mxu1 %vm330_vm2, %v12599_v20  ;;  %v5164_v50 = vld [vmem:[#allocation8 + $0x128] sm:$0xff]  ;;  %v12670_v15 = vld [vmem:[#allocation3 + $0x90] sm:$0xff] }
 0x39b   : > { %v3967_v56 = vmax.f32 %v3935_v54, 0.0  ;;  %9594 = vmatmul.mubr.msk.f32.gmra.mrb[22].mxu1 %vm330_vm2, %v12605_v19  ;;  %v12662_v52 = vld [vmem:[#allocation3 + $0x78] sm:$0xff]  ;;  %v10322_v53 = vpack.c.bf16 %v5164_v50, %v5163_v46  ;;  %v12666_v54 = vld [vmem:[#allocation3 + $0x80] sm:$0xff]  ;;  %13472 = vst [vmem:[#allocation23_spill] sm:$0xff] %v12760_v47  ;;  %v5170_v48 = vld [vmem:[#allocation8 + $0x158] sm:$0xff] }
 0x39c   : > { %v3966_v58 = vmax.f32 %v3934_v22, 0.0  ;;  %v12615_v25 = vld [vmem:[#allocation3 + $0x159] sm:$0xff]  ;;  %v12672_v22 = vpop.f32.mrb[32].mxu0  ;;  %v4732_v46 = vld [vmem:[#allocation3 + $0x2] sm:$0xff] }
 0x39d   : > { %4000 = vst.msk [vmem:[#allocation3 + $0x189] sm:$0xff] %vm330_vm2, %v3967_v56  ;;  %v12610_v60 = vld [vmem:[#allocation3 + $0x151] sm:$0xff]  ;;  %13467 = vst [vmem:[#allocation18_spill] sm:$0xff] %v12615_v25  ;;  %v12676_v56 = vpop.f32.mrb[33].mxu0  ;;  %v12756_v19 = vld [vmem:[#allocation3 + $0x1a] sm:$0xff] }
 0x39e   : > { %13466 = vst [vmem:[#allocation17_spill] sm:$0xff] %v12610_v60  ;;  %3999 = vst.msk [vmem:[#allocation3 + $0x181] sm:$0xff] %vm330_vm2, %v3966_v58  ;;  %9596 = vmatprep.mubr.msk.f32.mxu1 %vm330_vm2, %v12610_v60  ;;  %v12678_v58 = vld [vmem:[#allocation3 + $0x98] sm:$0xff]  ;;  %v12738_v51 = vld [vmem:[#allocation3 + $0x150] sm:$0xff] }
 0x39f   : > { %9597 = vmatmul.mubr.msk.f32.gmra.mrb[24].mxu1 %vm330_vm2, %v12615_v25  ;;  %13470 = vst [vmem:[#allocation21_spill] sm:$0xff] %v12672_v22  ;;  %13471 = vst [vmem:[#allocation22_spill] sm:$0xff] %v12676_v56  ;;  %v12742_v61 = vld [vmem:[#allocation3 + $0x158] sm:$0xff]  ;;  %v5165_v56 = vld [vmem:[#allocation8 + $0x130] sm:$0xff] }
 0x3a0   : > { %v12623_v28 = vld [vmem:[#allocation3 + $0x171] sm:$0xff]  ;;  %v5166_v22 = vld [vmem:[#allocation8 + $0x138] sm:$0xff]  ;;  %v5169_v44 = vld [vmem:[#allocation8 + $0x150] sm:$0xff] }
 0x3a1   : > { %v12619_v62 = vld [vmem:[#allocation3 + $0x169] sm:$0xff]  ;;  %13469 = vst [vmem:[#allocation20_spill] sm:$0xff] %v12623_v28  ;;  %v5168_v60 = vld [vmem:[#allocation8 + $0x148] sm:$0xff] }
 0x3a2   : > { %13468 = vst [vmem:[#allocation19_spill] sm:$0xff] %v12619_v62  ;;  %9599 = vmatprep.mubr.msk.f32.mxu1 %vm330_vm2, %v12619_v62  ;;  %v12750_v50 = vld [vmem:[#allocation3 + $0x170] sm:$0xff]  ;;  %v10326_v62 = vpack.c.bf16 %v5166_v22, %v5165_v56  ;;  %v12768_v56 = vld [vmem:[#allocation3 + $0x3a] sm:$0xff] }
 0x3a3   : > { %9600 = vmatmul.mubr.msk.f32.gmra.mrb[26].mxu1 %vm330_vm2, %v12623_v28  ;;  %v4733_v28 = vld [vmem:[#allocation3 + $0xa] sm:$0xff]  ;;  %v12764_v22 = vld [vmem:[#allocation3 + $0x32] sm:$0xff]  ;;  %13474 = vst [vmem:[#allocation25_spill] sm:$0xff] %v12768_v56 }
 0x3a4   : > { %9626 = vmatprep.mubr.msk.f32.mxu1 %vm330_vm2, %v4001_v26  ;;  %v12682_v26 = vld [vmem:[#allocation3 + $0xa8] sm:$0xff]  ;;  %v5167_v25 = vld [vmem:[#allocation8 + $0x140] sm:$0xff]  ;;  %13473 = vst [vmem:[#allocation24_spill] sm:$0xff] %v12764_v22 }
 0x3a5   : > { %v10330_v20 = vpack.c.bf16 %v5168_v60, %v5167_v25  ;;  %v12772_v60 = vld [vmem:[#allocation3 + $0x4a] sm:$0xff] }
 0x3a6   : > { %13475 = vst [vmem:[#allocation26_spill] sm:$0xff] %v12772_v60 }
 0x3a7   : > { %9627 = vmatmul.mubr.msk.f32.vlgmr.msra.gmra.mrb[28].mxu1 %vm330_vm2, %v4002_v32  ;;  %v12694_v32 = vld [vmem:[#allocation3 + $0xc8] sm:$0xff] }
 0x3a8   : > { %9629 = vmatprep.mubr.msk.f32.mxu1 %vm330_vm2, %v12629_v2  ;;  %10301 = vmatpush3.bf16.msra.mxu1 %v12526_v7  ;;  %v4773_v7 = vld [vmem:[#allocation8 + $0x100] sm:$0xff] }
 0x3a9   : > { %10303 = vmatprep.subr.bf16.mxu1 %v10302_v36  ;;  %v10314_v35 = vpack.c.bf16 %v4774_v11, %v4773_v7  ;;  %v12726_v7 = vld [vmem:[#allocation3 + $0x128] sm:$0xff]  ;;  %v12730_v11 = vld [vmem:[#allocation3 + $0x138] sm:$0xff] }
 0x3ab   : > { %9630 = vmatmul.mubr.msk.f32.gmra.mrb[30].mxu1 %vm330_vm2, %v12634_v4 }
 0x3ac   : > { %9632 = vmatprep.mubr.msk.f32.mxu1 %vm330_vm2, %v12638_v17  ;;  %10305 = vmatpush3.bf16.msra.mxu1 %v10302_v36  ;;  %v12698_v36 = vld [vmem:[#allocation3 + $0xd8] sm:$0xff] }
 0x3ad   : > { %10307 = vmatprep.subr.bf16.mxu1 %v10306_v3 }
 0x3af   : > { %9633 = vmatmul.mubr.msk.f32.gmra.mrb[0].mxu1 %vm330_vm2, %v12642_v14 }
 0x3b0   : > { %9635 = vmatprep.mubr.msk.f32.mxu1 %vm330_vm2, %v12646_v12  ;;  %10309 = vmatpush3.bf16.msra.mxu1 %v10306_v3  ;;  %v12710_v3 = vld [vmem:[#allocation3 + $0xf8] sm:$0xff] }
 0x3b1   : > { %10311 = vmatprep.subr.bf16.mxu1 %v10310_v0 }
 0x3b3   : > { %9636 = vmatmul.mubr.msk.f32.gmra.mrb[2].mxu1 %vm330_vm2, %v12650_v40 }
 0x3b4   : > { %9638 = vmatprep.mubr.msk.f32.mxu1 %vm330_vm2, %v12654_v33  ;;  %10313 = vmatpush3.bf16.msra.mxu1 %v10310_v0  ;;  %v12722_v0 = vld [vmem:[#allocation3 + $0x120] sm:$0xff] }
 0x3b5   : > { %10315 = vmatprep.subr.bf16.mxu1 %v10314_v35 }
 0x3b7   : > { %9639 = vmatmul.mubr.msk.f32.gmra.mrb[4].mxu1 %vm330_vm2, %v12658_v42 }
 0x3b8   : > { %9641 = vmatprep.mubr.msk.f32.mxu1 %vm330_vm2, %v12662_v52  ;;  %10317 = vmatpush3.bf16.msra.mxu1 %v10314_v35  ;;  %v12734_v35 = vld [vmem:[#allocation3 + $0x140] sm:$0xff] }
 0x3b9   : > { %10319 = vmatprep.subr.bf16.mxu1 %v10318_v41 }
 0x3bb   : > { %9642 = vmatmul.mubr.msk.f32.gmra.mrb[6].mxu1 %vm330_vm2, %v12666_v54 }
 0x3bc   : > { %9644 = vmatprep.mubr.msk.f32.mxu1 %vm330_vm2, %v12670_v15  ;;  %10321 = vmatpush3.bf16.msra.mxu1 %v10318_v41  ;;  %v12746_v41 = vld [vmem:[#allocation3 + $0x168] sm:$0xff] }
 0x3bd   : > { %10323 = vmatprep.subr.bf16.mxu1 %v10322_v53 }
 0x3bf   : > { %9645 = vmatmul.mubr.msk.f32.gmra.mrb[8].mxu1 %vm330_vm2, %v12678_v58 }
 0x3c0   : > { %9647 = vmatprep.mubr.msk.f32.mxu1 %vm330_vm2, %v12682_v26 }
 0x3c3   : > { %9648 = vmatmul.mubr.msk.f32.gmra.mrb[10].mxu1 %vm330_vm2, %v12686_v30 }
 0x3c4   : > { %9650 = vmatprep.mubr.msk.f32.mxu1 %vm330_vm2, %v12690_v31 }
 0x3c7   : > { %9651 = vmatmul.mubr.msk.f32.gmra.mrb[12].mxu1 %vm330_vm2, %v12694_v32 }
 0x3c8   : > { %9653 = vmatprep.mubr.msk.f32.mxu1 %vm330_vm2, %v12698_v36 }
 0x3cb   : > { %9654 = vmatmul.mubr.msk.f32.gmra.mrb[14].mxu1 %vm330_vm2, %v12702_v37 }
 0x3cc   : > { %9656 = vmatprep.mubr.msk.f32.mxu1 %vm330_vm2, %v12706_v57 }
 0x3cf   : > { %9657 = vmatmul.mubr.msk.f32.gmra.mrb[16].mxu1 %vm330_vm2, %v12710_v3 }
 0x3d0   : > { %9659 = vmatprep.mubr.msk.f32.mxu1 %vm330_vm2, %v12714_v5 }
 0x3d3   : > { %9660 = vmatmul.mubr.msk.f32.gmra.mrb[18].mxu1 %vm330_vm2, %v12718_v9 }
 0x3d4   : > { %9662 = vmatprep.mubr.msk.f32.mxu1 %vm330_vm2, %v12722_v0 }
 0x3d7   : > { %9663 = vmatmul.mubr.msk.f32.gmra.mrb[20].mxu1 %vm330_vm2, %v12726_v7 }
 0x3d8   : > { %9665 = vmatprep.mubr.msk.f32.mxu1 %vm330_vm2, %v12730_v11 }
 0x3db   : > { %9666 = vmatmul.mubr.msk.f32.gmra.mrb[22].mxu1 %vm330_vm2, %v12734_v35 }
 0x3dc   : > { %9668 = vmatprep.mubr.msk.f32.mxu1 %vm330_vm2, %v12738_v51 }
 0x3df   : > { %9669 = vmatmul.mubr.msk.f32.gmra.mrb[24].mxu1 %vm330_vm2, %v12742_v61 }
 0x3e0   : > { %9671 = vmatprep.mubr.msk.f32.mxu1 %vm330_vm2, %v12746_v41 }
 0x3e3   : > { %9672 = vmatmul.mubr.msk.f32.gmra.mrb[26].mxu1 %vm330_vm2, %v12750_v50 }
 0x3e4   : > { %9698 = vmatprep.mubr.msk.f32.mxu1 %vm330_vm2, %v4732_v46  ;;  %v5172_v46 = vld [vmem:[#allocation8 + $0x168] sm:$0xff] }
 0x3e7   : > { %9699 = vmatmul.mubr.msk.f32.vlgmr.msra.gmra.mrb[28].mxu1 %vm330_vm2, %v4733_v28  ;;  %v10334_v28 = vpack.c.bf16 %v5170_v48, %v5169_v44  ;;  %v12780_v48 = vld [vmem:[#allocation3 + $0x62] sm:$0xff] }
 0x3e8   : > { %9701 = vmatprep.mubr.msk.f32.mxu1 %vm330_vm2, %v12756_v19  ;;  %10325 = vmatpush3.bf16.msra.mxu1 %v10322_v53  ;;  %v5171_v53 = vld [vmem:[#allocation8 + $0x160] sm:$0xff] }
 0x3e9   : > { %10327 = vmatprep.subr.bf16.mxu1 %v10326_v62  ;;  %v10338_v25 = vpack.c.bf16 %v5172_v46, %v5171_v53  ;;  %v12788_v53 = vld [vmem:[#allocation3 + $0x7a] sm:$0xff] }
 0x3ea   : > { %13477 = vst [vmem:[#allocation28_spill] sm:$0xff] %v12788_v53 }
 0x3eb   : > { %9702 = vmatmul.mubr.msk.f32.gmra.mrb[30].mxu1 %vm330_vm2, %v12760_v47  ;;  %v12776_v47 = vld [vmem:[#allocation3 + $0x52] sm:$0xff] }
 0x3ec   : > { %9704 = vmatprep.mubr.msk.f32.mxu1 %vm330_vm2, %v12764_v22  ;;  %10329 = vmatpush3.bf16.msra.mxu1 %v10326_v62  ;;  %13476 = vst [vmem:[#allocation27_spill] sm:$0xff] %v12776_v47  ;;  %v5173_v62 = vld [vmem:[#allocation8 + $0x170] sm:$0xff]  ;;  %v5174_v22 = vld [vmem:[#allocation8 + $0x178] sm:$0xff] }
 0x3ed   : > { %10331 = vmatprep.subr.bf16.mxu1 %v10330_v20  ;;  %v10342_v44 = vpack.c.bf16 %v5174_v22, %v5173_v62  ;;  %v12796_v22 = vld [vmem:[#allocation3 + $0x92] sm:$0xff]  ;;  %v12812_v62 = vld [vmem:[#allocation3 + $0xc2] sm:$0xff] }
 0x3ee   : > { %13479 = vst [vmem:[#allocation30_spill] sm:$0xff] %v12796_v22  ;;  %13483 = vst [vmem:[#allocation34_spill] sm:$0xff] %v12812_v62 }
 0x3ef   : > { %9705 = vmatmul.mubr.msk.f32.gmra.mrb[0].mxu1 %vm330_vm2, %v12768_v56  ;;  %v12784_v56 = vld [vmem:[#allocation3 + $0x6a] sm:$0xff] }
 0x3f0   : > { %9707 = vmatprep.mubr.msk.f32.mxu1 %vm330_vm2, %v12772_v60  ;;  %10333 = vmatpush3.bf16.msra.mxu1 %v10330_v20  ;;  %v5561_v20 = vld [vmem:[#allocation8 + $0x180] sm:$0xff]  ;;  %v5562_v60 = vld [vmem:[#allocation8 + $0x188] sm:$0xff] }
 0x3f1   : > { %10335 = vmatprep.subr.bf16.mxu1 %v10334_v28  ;;  %v10346_v46 = vpack.c.bf16 %v5562_v60, %v5561_v20  ;;  %v12808_v60 = vld [vmem:[#allocation3 + $0xb2] sm:$0xff]  ;;  %v12820_v20 = vld [vmem:[#allocation3 + $0xda] sm:$0xff] }
 0x3f2   : > { %13482 = vst [vmem:[#allocation33_spill] sm:$0xff] %v12808_v60  ;;  %13485 = vst [vmem:[#allocation36_spill] sm:$0xff] %v12820_v20 }
 0x3f3   : > { %9708 = vmatmul.mubr.msk.f32.gmra.mrb[2].mxu1 %vm330_vm2, %v12776_v47  ;;  %v12792_v47 = vld [vmem:[#allocation3 + $0x82] sm:$0xff] }
 0x3f4   : > { %9710 = vmatprep.mubr.msk.f32.mxu1 %vm330_vm2, %v12780_v48  ;;  %10337 = vmatpush3.bf16.msra.mxu1 %v10334_v28  ;;  %13478 = vst [vmem:[#allocation29_spill] sm:$0xff] %v12792_v47  ;;  %v12800_v28 = vld [vmem:[#allocation3 + $0x9a] sm:$0xff] }
 0x3f5   : > { %10339 = vmatprep.subr.bf16.mxu1 %v10338_v25  ;;  %13480 = vst [vmem:[#allocation31_spill] sm:$0xff] %v12800_v28 }
 0x3f7   : > { %9711 = vmatmul.mubr.msk.f32.gmra.mrb[4].mxu1 %vm330_vm2, %v12784_v56 }
 0x3f8   : > { %9713 = vmatprep.mubr.msk.f32.mxu1 %vm330_vm2, %v12788_v53  ;;  %10341 = vmatpush3.bf16.msra.mxu1 %v10338_v25  ;;  %v12804_v25 = vld [vmem:[#allocation3 + $0xaa] sm:$0xff] }
 0x3f9   : > { %10343 = vmatprep.subr.bf16.mxu1 %v10342_v44  ;;  %13481 = vst [vmem:[#allocation32_spill] sm:$0xff] %v12804_v25  ;;  %v5568_v53 = vld [vmem:[#allocation8 + $0x1b8] sm:$0xff] }
 0x3fb   : > { %9714 = vmatmul.mubr.msk.f32.gmra.mrb[6].mxu1 %vm330_vm2, %v12792_v47  ;;  %v5566_v47 = vld [vmem:[#allocation8 + $0x1a8] sm:$0xff] }
 0x3fc   : > { %9716 = vmatprep.mubr.msk.f32.mxu1 %vm330_vm2, %v12796_v22  ;;  %10345 = vmatpush3.bf16.msra.mxu1 %v10342_v44  ;;  %v12816_v44 = vld [vmem:[#allocation3 + $0xca] sm:$0xff] }
 0x3fd   : > { %10347 = vmatprep.subr.bf16.mxu1 %v10346_v46  ;;  %13484 = vst [vmem:[#allocation35_spill] sm:$0xff] %v12816_v44  ;;  %v5564_v22 = vld [vmem:[#allocation8 + $0x198] sm:$0xff] }
 0x3ff   : > { %9717 = vmatmul.mubr.msk.f32.gmra.mrb[8].mxu1 %vm330_vm2, %v12800_v28  ;;  %v5563_v28 = vld [vmem:[#allocation8 + $0x190] sm:$0xff] }
 0x400   : > { %9719 = vmatprep.mubr.msk.f32.mxu1 %vm330_vm2, %v12804_v25  ;;  %v12824_v25 = vld [vmem:[#allocation3 + $0xe2] sm:$0xff] }
 0x401   : > { %13486 = vst [vmem:[#allocation37_spill] sm:$0xff] %v12824_v25 }
 0x403   : > { %9720 = vmatmul.mubr.msk.f32.gmra.mrb[10].mxu1 %vm330_vm2, %v12808_v60  ;;  %v12828_v60 = vld [vmem:[#allocation3 + $0xf2] sm:$0xff] }
 0x404   : > { %9722 = vmatprep.mubr.msk.f32.mxu1 %vm330_vm2, %v12812_v62  ;;  %13487 = vst [vmem:[#allocation38_spill] sm:$0xff] %v12828_v60  ;;  %v12832_v62 = vld [vmem:[#allocation3 + $0xfa] sm:$0xff] }
 0x405   : > { %13488 = vst [vmem:[#allocation39_spill] sm:$0xff] %v12832_v62 }
 0x407   : > { %9723 = vmatmul.mubr.msk.f32.gmra.mrb[12].mxu1 %vm330_vm2, %v12816_v44  ;;  %v12836_v44 = vld [vmem:[#allocation3 + $0x10a] sm:$0xff] }
 0x408   : > { %9725 = vmatprep.mubr.msk.f32.mxu1 %vm330_vm2, %v12820_v20  ;;  %13489 = vst [vmem:[#allocation40_spill] sm:$0xff] %v12836_v44  ;;  %v12840_v20 = vld [vmem:[#allocation3 + $0x112] sm:$0xff] }
 0x409   : > { %13490 = vst [vmem:[#allocation41_spill] sm:$0xff] %v12840_v20 }
 0x40b   : > { %9726 = vmatmul.mubr.msk.f32.gmra.mrb[14].mxu1 %vm330_vm2, %v12824_v25  ;;  %v12844_v25 = vld [vmem:[#allocation3 + $0x122] sm:$0xff] }
 0x40c   : > { %9728 = vmatprep.mubr.msk.f32.mxu1 %vm330_vm2, %v12828_v60  ;;  %13491 = vst [vmem:[#allocation42_spill] sm:$0xff] %v12844_v25  ;;  %v12848_v60 = vld [vmem:[#allocation3 + $0x12a] sm:$0xff] }
 0x40d   : > { %13492 = vst [vmem:[#allocation43_spill] sm:$0xff] %v12848_v60 }
 0x40f   : > { %9729 = vmatmul.mubr.msk.f32.gmra.mrb[16].mxu1 %vm330_vm2, %v12832_v62  ;;  %v12852_v62 = vld [vmem:[#allocation3 + $0x13a] sm:$0xff] }
 0x410   : > { %9731 = vmatprep.mubr.msk.f32.mxu1 %vm330_vm2, %v12836_v44  ;;  %13493 = vst [vmem:[#allocation44_spill] sm:$0xff] %v12852_v62  ;;  %v12856_v44 = vld [vmem:[#allocation3 + $0x142] sm:$0xff] }
 0x411   : > { %13494 = vst [vmem:[#allocation11_spill] sm:$0xff] %v12856_v44 }
 0x413   : > { %9732 = vmatmul.mubr.msk.f32.gmra.mrb[18].mxu1 %vm330_vm2, %v12840_v20  ;;  %v12860_v20 = vld [vmem:[#allocation3 + $0x152] sm:$0xff] }
 0x414   : > { %9734 = vmatprep.mubr.msk.f32.mxu1 %vm330_vm2, %v12844_v25  ;;  %13495 = vst [vmem:[#allocation45_spill] sm:$0xff] %v12860_v20  ;;  %v12864_v25 = vld [vmem:[#allocation3 + $0x15a] sm:$0xff] }
 0x415   : > { %13496 = vst [vmem:[#allocation46_spill] sm:$0xff] %v12864_v25 }
 0x417   : > { %9735 = vmatmul.mubr.msk.f32.gmra.mrb[20].mxu1 %vm330_vm2, %v12848_v60  ;;  %v12868_v60 = vld [vmem:[#allocation3 + $0x16a] sm:$0xff] }
 0x418   : > { %9737 = vmatprep.mubr.msk.f32.mxu1 %vm330_vm2, %v12852_v62  ;;  %13497 = vst [vmem:[#allocation47_spill] sm:$0xff] %v12868_v60  ;;  %v12872_v62 = vld [vmem:[#allocation3 + $0x172] sm:$0xff] }
 0x41b   : > { %9738 = vmatmul.mubr.msk.f32.gmra.mrb[22].mxu1 %vm330_vm2, %v12856_v44  ;;  %v5565_v44 = vld [vmem:[#allocation8 + $0x1a0] sm:$0xff] }
 0x41c   : > { %9740 = vmatprep.mubr.msk.f32.mxu1 %vm330_vm2, %v12860_v20  ;;  %v10350_v20 = vpack.c.bf16 %v5564_v22, %v5563_v28  ;;  %v5569_v22 = vld [vmem:[#allocation8 + $0x1c0] sm:$0xff]  ;;  %v5570_v28 = vld [vmem:[#allocation8 + $0x1c8] sm:$0xff] }
 0x41f   : > { %9741 = vmatmul.mubr.msk.f32.gmra.mrb[24].mxu1 %vm330_vm2, %v12864_v25  ;;  %v5567_v25 = vld [vmem:[#allocation8 + $0x1b0] sm:$0xff] }
 0x420   : > { %9743 = vmatprep.mubr.msk.f32.mxu1 %vm330_vm2, %v12868_v60  ;;  %v10354_v60 = vpack.c.bf16 %v5566_v47, %v5565_v44  ;;  %v10362_v47 = vpack.c.bf16 %v5570_v28, %v5569_v22  ;;  %v5960_v44 = vld [vmem:[#allocation8 + $0x1e8] sm:$0xff]  ;;  %v12940_v22 = vld [vmem:[#allocation3 + $0x180] sm:$0xff]  ;;  %v12944_v28 = vld [vmem:[#allocation3 + $0x188] sm:$0xff] }
 0x423   : > { %9744 = vmatmul.mubr.msk.f32.gmra.mrb[26].mxu1 %vm330_vm2, %v12872_v62 }
 0x424   : > { %9770 = vmatprep.mubr.msk.f32.mxu1 %vm330_vm2, %v12629_v2  ;;  %v10358_v2 = vpack.c.bf16 %v5568_v53, %v5567_v25  ;;  %v5959_v25 = vld [vmem:[#allocation8 + $0x1e0] sm:$0xff] }
 0x427   : > { %9771 = vmatmul.mubr.msk.f32.vlgmr.msra.gmra.mrb[28].mxu1 %vm330_vm2, %v12634_v4  ;;  %v5571_v4 = vld [vmem:[#allocation8 + $0x1d0] sm:$0xff] }
 0x428   : > { %9773 = vmatprep.mubr.msk.f32.mxu1 %vm330_vm2, %v12638_v17  ;;  %10349 = vmatpush3.bf16.msra.mxu1 %v10346_v46  ;;  %v5572_v46 = vld [vmem:[#allocation8 + $0x1d8] sm:$0xff] }
 0x429   : > { %10351 = vmatprep.subr.bf16.mxu1 %v10350_v20  ;;  %v10366_v53 = vpack.c.bf16 %v5572_v46, %v5571_v4  ;;  %v5962_v4 = vld [vmem:[#allocation8 + $0x1f8] sm:$0xff] }
 0x42b   : > { %9774 = vmatmul.mubr.msk.f32.gmra.mrb[30].mxu1 %vm330_vm2, %v12642_v14 }
 0x42c   : > { %9776 = vmatprep.mubr.msk.f32.mxu1 %vm330_vm2, %v12646_v12  ;;  %10353 = vmatpush3.bf16.msra.mxu1 %v10350_v20 }
 0x42d   : > { %10355 = vmatprep.subr.bf16.mxu1 %v10354_v60 }
 0x42f   : > { %9777 = vmatmul.mubr.msk.f32.gmra.mrb[0].mxu1 %vm330_vm2, %v12650_v40 }
 0x430   : > { %9779 = vmatprep.mubr.msk.f32.mxu1 %vm330_vm2, %v12654_v33  ;;  %10357 = vmatpush3.bf16.msra.mxu1 %v10354_v60  ;;  %v10370_v60 = vpack.c.bf16 %v5960_v44, %v5959_v25  ;;  %v5964_v25 = vld [vmem:[#allocation8 + $0x208] sm:$0xff] }
 0x431   : > { %10359 = vmatprep.subr.bf16.mxu1 %v10358_v2 }
 0x433   : > { %9780 = vmatmul.mubr.msk.f32.gmra.mrb[2].mxu1 %vm330_vm2, %v12658_v42 }
 0x434   : > { %9782 = vmatprep.mubr.msk.f32.mxu1 %vm330_vm2, %v12662_v52  ;;  %10361 = vmatpush3.bf16.msra.mxu1 %v10358_v2 }
 0x435   : > { %10363 = vmatprep.subr.bf16.mxu1 %v10362_v47 }
 0x437   : > { %9783 = vmatmul.mubr.msk.f32.gmra.mrb[4].mxu1 %vm330_vm2, %v12666_v54 }
 0x438   : > { %9785 = vmatprep.mubr.msk.f32.mxu1 %vm330_vm2, %v12670_v15  ;;  %10365 = vmatpush3.bf16.msra.mxu1 %v10362_v47  ;;  %v5961_v47 = vld [vmem:[#allocation8 + $0x1f0] sm:$0xff] }
 0x439   : > { %10367 = vmatprep.subr.bf16.mxu1 %v10366_v53  ;;  %v10374_v46 = vpack.c.bf16 %v5962_v4, %v5961_v47  ;;  %v5967_v47 = vld [vmem:[#allocation8 + $0x220] sm:$0xff]  ;;  %v5968_v4 = vld [vmem:[#allocation8 + $0x228] sm:$0xff] }
 0x43b   : > { %9786 = vmatmul.mubr.msk.f32.gmra.mrb[6].mxu1 %vm330_vm2, %v12678_v58 }
 0x43c   : > { %9788 = vmatprep.mubr.msk.f32.mxu1 %vm330_vm2, %v12682_v26  ;;  %10369 = vmatpush3.bf16.msra.mxu1 %v10366_v53  ;;  %v5963_v53 = vld [vmem:[#allocation8 + $0x200] sm:$0xff] }
 0x43d   : > { %10371 = vmatprep.subr.bf16.mxu1 %v10370_v60  ;;  %v10378_v44 = vpack.c.bf16 %v5964_v25, %v5963_v53  ;;  %v13510_v53 = vld [vmem:[#allocation24_spill] sm:$0xff] }
 0x43e   : > { %v12902_v20 = vpop.f32.mrb[34].mxu0 }
 0x43f   : > { %13498 = vst [vmem:[#allocation48_spill] sm:$0xff] %v12902_v20  ;;  %v12904_v2 = vpop.f32.mrb[35].mxu0  ;;  %9789 = vmatmul.mubr.msk.f32.gmra.mrb[8].mxu1 %vm330_vm2, %v12686_v30  ;;  %v5966_v20 = vld [vmem:[#allocation8 + $0x218] sm:$0xff] }
 0x440   : > { %13499 = vst [vmem:[#allocation49_spill] sm:$0xff] %v12904_v2  ;;  %9791 = vmatprep.mubr.msk.f32.mxu1 %vm330_vm2, %v12690_v31  ;;  %v5965_v2 = vld [vmem:[#allocation8 + $0x210] sm:$0xff] }
 0x443   : > { %9792 = vmatmul.mubr.msk.f32.gmra.mrb[10].mxu1 %vm330_vm2, %v12694_v32 }
 0x444   : > { %9794 = vmatprep.mubr.msk.f32.mxu1 %vm330_vm2, %v12698_v36 }
 0x447   : > { %9795 = vmatmul.mubr.msk.f32.gmra.mrb[12].mxu1 %vm330_vm2, %v12702_v37 }
 0x448   : > { %9797 = vmatprep.mubr.msk.f32.mxu1 %vm330_vm2, %v12706_v57 }
 0x44b   : > { %9798 = vmatmul.mubr.msk.f32.gmra.mrb[14].mxu1 %vm330_vm2, %v12710_v3 }
 0x44c   : > { %9800 = vmatprep.mubr.msk.f32.mxu1 %vm330_vm2, %v12714_v5 }
 0x44f   : > { %9801 = vmatmul.mubr.msk.f32.gmra.mrb[16].mxu1 %vm330_vm2, %v12718_v9 }
 0x450   : > { %9803 = vmatprep.mubr.msk.f32.mxu1 %vm330_vm2, %v12722_v0 }
 0x453   : > { %9804 = vmatmul.mubr.msk.f32.gmra.mrb[18].mxu1 %vm330_vm2, %v12726_v7 }
 0x454   : > { %9806 = vmatprep.mubr.msk.f32.mxu1 %vm330_vm2, %v12730_v11 }
 0x457   : > { %9807 = vmatmul.mubr.msk.f32.gmra.mrb[20].mxu1 %vm330_vm2, %v12734_v35 }
 0x458   : > { %9809 = vmatprep.mubr.msk.f32.mxu1 %vm330_vm2, %v12738_v51 }
 0x45b   : > { %9810 = vmatmul.mubr.msk.f32.gmra.mrb[22].mxu1 %vm330_vm2, %v12742_v61 }
 0x45c   : > { %9812 = vmatprep.mubr.msk.f32.mxu1 %vm330_vm2, %v12746_v41 }
 0x45f   : > { %9813 = vmatmul.mubr.msk.f32.gmra.mrb[24].mxu1 %vm330_vm2, %v12750_v50 }
 0x460   : > { %9815 = vmatprep.mubr.msk.f32.mxu1 %vm330_vm2, %v12940_v22 }
 0x463   : > { %9816 = vmatmul.mubr.msk.f32.gmra.mrb[26].mxu1 %vm330_vm2, %v12944_v28 }
 0x464   : > { %9842 = vmatprep.mubr.msk.f32.mxu1 %vm330_vm2, %v12452_v16  ;;  %v10382_v16 = vpack.c.bf16 %v5966_v20, %v5965_v2  ;;  %v6359_v20 = vld [vmem:[#allocation8 + $0x248] sm:$0xff] }
 0x465   : > { %v6363_v2 = vld [vmem:[#allocation8 + $0x268] sm:$0xff] }
 0x467   : > { %9843 = vmatmul.mubr.msk.f32.vlgmr.msra.gmra.mrb[28].mxu1 %vm330_vm2, %v12458_v21  ;;  %v10386_v21 = vpack.c.bf16 %v5968_v4, %v5967_v47  ;;  %v13511_v47 = vld [vmem:[#allocation25_spill] sm:$0xff]  ;;  %v13512_v4 = vld [vmem:[#allocation26_spill] sm:$0xff] }
 0x468   : > { %9845 = vmatprep.mubr.msk.f32.mxu1 %vm330_vm2, %v12464_v59  ;;  %10373 = vmatpush3.bf16.msra.mxu1 %v10370_v60  ;;  %v5969_v59 = vld [vmem:[#allocation8 + $0x230] sm:$0xff]  ;;  %v5970_v60 = vld [vmem:[#allocation8 + $0x238] sm:$0xff] }
 0x469   : > { %10375 = vmatprep.subr.bf16.mxu1 %v10374_v46 }
 0x46b   : > { %9846 = vmatmul.mubr.msk.f32.gmra.mrb[30].mxu1 %vm330_vm2, %v12470_v24  ;;  %v10390_v24 = vpack.c.bf16 %v5970_v60, %v5969_v59  ;;  %v6367_v59 = vld [vmem:[#allocation8 + $0x288] sm:$0xff]  ;;  %v13513_v60 = vld [vmem:[#allocation27_spill] sm:$0xff] }
 0x46c   : > { %9848 = vmatprep.mubr.msk.f32.mxu1 %vm330_vm2, %v12476_v34  ;;  %10377 = vmatpush3.bf16.msra.mxu1 %v10374_v46  ;;  %v6358_v34 = vld [vmem:[#allocation8 + $0x240] sm:$0xff] }
 0x46d   : > { %10379 = vmatprep.subr.bf16.mxu1 %v10378_v44  ;;  %v13509_v46 = vld [vmem:[#allocation23_spill] sm:$0xff] }
 0x46f   : > { %9849 = vmatmul.mubr.msk.f32.gmra.mrb[0].mxu1 %vm330_vm2, %v12482_v8  ;;  %v10394_v8 = vpack.c.bf16 %v6359_v20, %v6358_v34  ;;  %v6368_v34 = vld [vmem:[#allocation8 + $0x290] sm:$0xff]  ;;  %v6369_v20 = vld [vmem:[#allocation8 + $0x298] sm:$0xff] }
 0x470   : > { %9851 = vmatprep.mubr.msk.f32.mxu1 %vm330_vm2, %v12488_v6  ;;  %10381 = vmatpush3.bf16.msra.mxu1 %v10378_v44  ;;  %v13500_v6 = vld [vmem:[#allocation12_spill] sm:$0xff]  ;;  %v6364_v44 = vld [vmem:[#allocation8 + $0x270] sm:$0xff] }
 0x471   : > { %10383 = vmatprep.subr.bf16.mxu1 %v10382_v16 }
 0x473   : > { %9852 = vmatmul.mubr.msk.f32.gmra.mrb[2].mxu1 %vm330_vm2, %v12494_v10  ;;  %v13501_v10 = vld [vmem:[#allocation13_spill] sm:$0xff] }
 0x474   : > { %9854 = vmatprep.mubr.msk.f32.mxu1 %vm330_vm2, %v12500_v38  ;;  %10385 = vmatpush3.bf16.msra.mxu1 %v10382_v16  ;;  %v13502_v38 = vld [vmem:[#allocation14_spill] sm:$0xff] }
 0x475   : > { %10387 = vmatprep.subr.bf16.mxu1 %v10386_v21  ;;  %v6365_v16 = vld [vmem:[#allocation8 + $0x278] sm:$0xff] }
 0x477   : > { %9855 = vmatmul.mubr.msk.f32.gmra.mrb[4].mxu1 %vm330_vm2, %v12506_v43  ;;  %v13503_v43 = vld [vmem:[#allocation15_spill] sm:$0xff] }
 0x478   : > { %9857 = vmatprep.mubr.msk.f32.mxu1 %vm330_vm2, %v12512_v45  ;;  %10389 = vmatpush3.bf16.msra.mxu1 %v10386_v21  ;;  %v13504_v45 = vld [vmem:[#allocation16_spill] sm:$0xff]  ;;  %v6366_v21 = vld [vmem:[#allocation8 + $0x280] sm:$0xff] }
 0x479   : > { %10391 = vmatprep.subr.bf16.mxu1 %v10390_v24 }
 0x47b   : > { %9858 = vmatmul.mubr.msk.f32.gmra.mrb[6].mxu1 %vm330_vm2, %v12518_v49  ;;  %v13505_v49 = vld [vmem:[#allocation17_spill] sm:$0xff] }
 0x47c   : > { %9860 = vmatprep.mubr.msk.f32.mxu1 %vm330_vm2, %v12524_v18  ;;  %10393 = vmatpush3.bf16.msra.mxu1 %v10390_v24  ;;  %v13506_v18 = vld [vmem:[#allocation18_spill] sm:$0xff]  ;;  %v10410_v24 = vpack.c.bf16 %v6367_v59, %v6366_v21 }
 0x47d   : > { %10395 = vmatprep.subr.bf16.mxu1 %v10394_v8  ;;  %v13076_v21 = vld [vmem:[#allocation3 + $0x182] sm:$0xff]  ;;  %v13080_v59 = vld [vmem:[#allocation3 + $0x18a] sm:$0xff] }
 0x47f   : > { %9861 = vmatmul.mubr.msk.f32.gmra.mrb[8].mxu1 %vm330_vm2, %v12532_v63  ;;  %v13507_v63 = vld [vmem:[#allocation19_spill] sm:$0xff] }
 0x480   : > { %9863 = vmatprep.mubr.msk.f32.mxu1 %vm330_vm2, %v12538_v27  ;;  %v13508_v27 = vld [vmem:[#allocation20_spill] sm:$0xff] }
 0x483   : > { %9864 = vmatmul.mubr.msk.f32.gmra.mrb[10].mxu1 %vm330_vm2, %v12545_v29  ;;  %v13008_v29 = vld [vmem:[#allocation3 + $0x181] sm:$0xff] }
 0x484   : > { %9866 = vmatprep.mubr.msk.f32.mxu1 %vm330_vm2, %v12551_v55  ;;  %v13012_v55 = vld [vmem:[#allocation3 + $0x189] sm:$0xff] }
 0x487   : > { %9867 = vmatmul.mubr.msk.f32.gmra.mrb[12].mxu1 %vm330_vm2, %v12557_v1  ;;  %v6360_v1 = vld [vmem:[#allocation8 + $0x250] sm:$0xff] }
 0x488   : > { %9869 = vmatprep.mubr.msk.f32.mxu1 %vm330_vm2, %v12563_v13  ;;  %v6361_v13 = vld [vmem:[#allocation8 + $0x258] sm:$0xff] }
 0x48b   : > { %9870 = vmatmul.mubr.msk.f32.gmra.mrb[14].mxu1 %vm330_vm2, %v12569_v23  ;;  %v10398_v23 = vpack.c.bf16 %v6361_v13, %v6360_v1  ;;  %v13522_v1 = vld [vmem:[#allocation36_spill] sm:$0xff]  ;;  %v13523_v13 = vld [vmem:[#allocation37_spill] sm:$0xff] }
 0x48c   : > { %9872 = vmatprep.mubr.msk.f32.mxu1 %vm330_vm2, %v12575_v39  ;;  %v6362_v39 = vld [vmem:[#allocation8 + $0x260] sm:$0xff] }
 0x48d   : > { %v10402_v25 = vpack.c.bf16 %v6363_v2, %v6362_v39  ;;  %v13525_v39 = vld [vmem:[#allocation39_spill] sm:$0xff]  ;;  %v13526_v2 = vld [vmem:[#allocation40_spill] sm:$0xff] }
 0x48f   : > { %9873 = vmatmul.mubr.msk.f32.gmra.mrb[16].mxu1 %vm330_vm2, %v13500_v6  ;;  %v10414_v6 = vpack.c.bf16 %v6369_v20, %v6368_v34  ;;  %v6760_v20 = vld [vmem:[#allocation8 + $0x2c0] sm:$0xff] }
 0x490   : > { %9875 = vmatprep.mubr.msk.f32.mxu1 %vm330_vm2, %v13501_v10  ;;  %v6756_v10 = vld [vmem:[#allocation8 + $0x2a0] sm:$0xff] }
 0x493   : > { %9876 = vmatmul.mubr.msk.f32.gmra.mrb[18].mxu1 %vm330_vm2, %v13502_v38  ;;  %v6757_v38 = vld [vmem:[#allocation8 + $0x2a8] sm:$0xff] }
 0x494   : > { %9878 = vmatprep.mubr.msk.f32.mxu1 %vm330_vm2, %v13503_v43  ;;  %v13515_v43 = vld [vmem:[#allocation29_spill] sm:$0xff] }
 0x497   : > { %9879 = vmatmul.mubr.msk.f32.gmra.mrb[20].mxu1 %vm330_vm2, %v13504_v45  ;;  %v10418_v45 = vpack.c.bf16 %v6757_v38, %v6756_v10  ;;  %v6763_v10 = vld [vmem:[#allocation8 + $0x2d8] sm:$0xff]  ;;  %v6764_v38 = vld [vmem:[#allocation8 + $0x2e0] sm:$0xff] }
 0x498   : > { %9881 = vmatprep.mubr.msk.f32.mxu1 %vm330_vm2, %v13505_v49  ;;  %v13517_v49 = vld [vmem:[#allocation31_spill] sm:$0xff] }
 0x49b   : > { %9882 = vmatmul.mubr.msk.f32.gmra.mrb[22].mxu1 %vm330_vm2, %v13506_v18  ;;  %v13519_v18 = vld [vmem:[#allocation33_spill] sm:$0xff] }
 0x49c   : > { %9884 = vmatprep.mubr.msk.f32.mxu1 %vm330_vm2, %v13507_v63  ;;  %v13520_v63 = vld [vmem:[#allocation34_spill] sm:$0xff] }
 0x49f   : > { %9885 = vmatmul.mubr.msk.f32.gmra.mrb[24].mxu1 %vm330_vm2, %v13508_v27  ;;  %v13521_v27 = vld [vmem:[#allocation35_spill] sm:$0xff] }
 0x4a0   : > { %9887 = vmatprep.mubr.msk.f32.mxu1 %vm330_vm2, %v13008_v29 }
 0x4a3   : > { %9888 = vmatmul.mubr.msk.f32.gmra.mrb[26].mxu1 %vm330_vm2, %v13012_v55 }
 0x4a4   : > { %9914 = vmatprep.mubr.msk.f32.mxu1 %vm330_vm2, %v12756_v19  ;;  %v10406_v19 = vpack.c.bf16 %v6365_v16, %v6364_v44  ;;  %v13530_v44 = vld [vmem:[#allocation44_spill] sm:$0xff]  ;;  %v13531_v16 = vld [vmem:[#allocation11_spill] sm:$0xff] }
 0x4a7   : > { %9915 = vmatmul.mubr.msk.f32.vlgmr.msra.gmra.mrb[28].mxu1 %vm330_vm2, %v13509_v46  ;;  %v13527_v46 = vld [vmem:[#allocation41_spill] sm:$0xff] }
 0x4a8   : > { %9917 = vmatprep.mubr.msk.f32.mxu1 %vm330_vm2, %v13510_v53  ;;  %10397 = vmatpush3.bf16.msra.mxu1 %v10394_v8  ;;  %v13514_v8 = vld [vmem:[#allocation28_spill] sm:$0xff]  ;;  %v13528_v53 = vld [vmem:[#allocation42_spill] sm:$0xff] }
 0x4a9   : > { %10399 = vmatprep.subr.bf16.mxu1 %v10398_v23 }
 0x4ab   : > { %9918 = vmatmul.mubr.msk.f32.gmra.mrb[30].mxu1 %vm330_vm2, %v13511_v47  ;;  %v13532_v47 = vld [vmem:[#allocation45_spill] sm:$0xff] }
 0x4ac   : > { %9920 = vmatprep.mubr.msk.f32.mxu1 %vm330_vm2, %v13512_v4  ;;  %10401 = vmatpush3.bf16.msra.mxu1 %v10398_v23  ;;  %v13524_v23 = vld [vmem:[#allocation38_spill] sm:$0xff] }
 0x4ad   : > { %10403 = vmatprep.subr.bf16.mxu1 %v10402_v25  ;;  %v13533_v4 = vld [vmem:[#allocation46_spill] sm:$0xff] }
 0x4af   : > { %9921 = vmatmul.mubr.msk.f32.gmra.mrb[0].mxu1 %vm330_vm2, %v13513_v60  ;;  %v6758_v60 = vld [vmem:[#allocation8 + $0x2b0] sm:$0xff] }
 0x4b0   : > { %9923 = vmatprep.mubr.msk.f32.mxu1 %vm330_vm2, %v12780_v48  ;;  %10405 = vmatpush3.bf16.msra.mxu1 %v10402_v25  ;;  %v13516_v48 = vld [vmem:[#allocation30_spill] sm:$0xff]  ;;  %v13529_v25 = vld [vmem:[#allocation43_spill] sm:$0xff] }
 0x4b1   : > { %10407 = vmatprep.subr.bf16.mxu1 %v10406_v19 }
 0x4b3   : > { %9924 = vmatmul.mubr.msk.f32.gmra.mrb[2].mxu1 %vm330_vm2, %v12784_v56  ;;  %v13518_v56 = vld [vmem:[#allocation32_spill] sm:$0xff] }
 0x4b4   : > { %9926 = vmatprep.mubr.msk.f32.mxu1 %vm330_vm2, %v13514_v8  ;;  %10409 = vmatpush3.bf16.msra.mxu1 %v10406_v19  ;;  %v13534_v19 = vld [vmem:[#allocation47_spill] sm:$0xff]  ;;  %v6761_v8 = vld [vmem:[#allocation8 + $0x2c8] sm:$0xff] }
 0x4b5   : > { %10411 = vmatprep.subr.bf16.mxu1 %v10410_v24 }
 0x4b7   : > { %9927 = vmatmul.mubr.msk.f32.gmra.mrb[4].mxu1 %vm330_vm2, %v13515_v43  ;;  %v6765_v43 = vld [vmem:[#allocation8 + $0x2e8] sm:$0xff] }
 0x4b8   : > { %9929 = vmatprep.mubr.msk.f32.mxu1 %vm330_vm2, %v13516_v48  ;;  %10413 = vmatpush3.bf16.msra.mxu1 %v10410_v24  ;;  %v6759_v24 = vld [vmem:[#allocation8 + $0x2b8] sm:$0xff] }
 0x4b9   : > { %10415 = vmatprep.subr.bf16.mxu1 %v10414_v6  ;;  %v10422_v34 = vpack.c.bf16 %v6759_v24, %v6758_v60  ;;  %v6767_v48 = vld [vmem:[#allocation8 + $0x2f8] sm:$0xff]  ;;  %v6748_v60 = vld [vmem:[#allocation3 + $0x159] sm:$0xff] }
 0x4ba   : > { %v6749_v24 = vld [vmem:[#allocation3 + $0x169] sm:$0xff] }
 0x4bb   : > { %9930 = vmatmul.mubr.msk.f32.gmra.mrb[6].mxu1 %vm330_vm2, %v13517_v49  ;;  %v6731_v49 = vld [vmem:[#allocation3 + $0x91] sm:$0xff] }
 0x4bc   : > { %9932 = vmatprep.mubr.msk.f32.mxu1 %vm330_vm2, %v13518_v56  ;;  %10417 = vmatpush3.bf16.msra.mxu1 %v10414_v6  ;;  %v6762_v6 = vld [vmem:[#allocation8 + $0x2d0] sm:$0xff] }
 0x4bd   : > { %10419 = vmatprep.subr.bf16.mxu1 %v10418_v45 }
 0x4bf   : > { %9933 = vmatmul.mubr.msk.f32.gmra.mrb[8].mxu1 %vm330_vm2, %v13519_v18  ;;  %v6732_v18 = vld [vmem:[#allocation3 + $0x99] sm:$0xff] }
 0x4c0   : > { %9935 = vmatprep.mubr.msk.f32.mxu1 %vm330_vm2, %v13520_v63  ;;  %v6733_v63 = vld [vmem:[#allocation3 + $0xa9] sm:$0xff] }
 0x4c3   : > { %9936 = vmatmul.mubr.msk.f32.gmra.mrb[10].mxu1 %vm330_vm2, %v13521_v27  ;;  %v6734_v27 = vld [vmem:[#allocation3 + $0xb1] sm:$0xff] }
 0x4c4   : > { %9938 = vmatprep.mubr.msk.f32.mxu1 %vm330_vm2, %v13522_v1  ;;  %v6735_v1 = vld [vmem:[#allocation3 + $0xc1] sm:$0xff] }
 0x4c7   : > { %9939 = vmatmul.mubr.msk.f32.gmra.mrb[12].mxu1 %vm330_vm2, %v13523_v13  ;;  %v6736_v13 = vld [vmem:[#allocation3 + $0xc9] sm:$0xff] }
 0x4c8   : > { %9941 = vmatprep.mubr.msk.f32.mxu1 %vm330_vm2, %v13524_v23  ;;  %v6737_v23 = vld [vmem:[#allocation3 + $0xd9] sm:$0xff] }
 0x4cb   : > { %9942 = vmatmul.mubr.msk.f32.gmra.mrb[14].mxu1 %vm330_vm2, %v13525_v39  ;;  %v6738_v39 = vld [vmem:[#allocation3 + $0xe1] sm:$0xff] }
 0x4cc   : > { %9944 = vmatprep.mubr.msk.f32.mxu1 %vm330_vm2, %v13526_v2  ;;  %v6739_v2 = vld [vmem:[#allocation3 + $0xf1] sm:$0xff] }
 0x4cf   : > { %9945 = vmatmul.mubr.msk.f32.gmra.mrb[16].mxu1 %vm330_vm2, %v13527_v46  ;;  %v6740_v46 = vld [vmem:[#allocation3 + $0xf9] sm:$0xff] }
 0x4d0   : > { %9947 = vmatprep.mubr.msk.f32.mxu1 %vm330_vm2, %v13528_v53  ;;  %v6741_v53 = vld [vmem:[#allocation3 + $0x109] sm:$0xff] }
 0x4d3   : > { %9948 = vmatmul.mubr.msk.f32.gmra.mrb[18].mxu1 %vm330_vm2, %v13529_v25  ;;  %v6742_v25 = vld [vmem:[#allocation3 + $0x111] sm:$0xff] }
 0x4d4   : > { %9950 = vmatprep.mubr.msk.f32.mxu1 %vm330_vm2, %v13530_v44  ;;  %v6743_v44 = vld [vmem:[#allocation3 + $0x121] sm:$0xff] }
 0x4d7   : > { %9951 = vmatmul.mubr.msk.f32.gmra.mrb[20].mxu1 %vm330_vm2, %v13531_v16  ;;  %v6744_v16 = vld [vmem:[#allocation3 + $0x129] sm:$0xff] }
 0x4d8   : > { %9953 = vmatprep.mubr.msk.f32.mxu1 %vm330_vm2, %v13532_v47  ;;  %v6745_v47 = vld [vmem:[#allocation3 + $0x139] sm:$0xff] }
 0x4db   : > { %9954 = vmatmul.mubr.msk.f32.gmra.mrb[22].mxu1 %vm330_vm2, %v13533_v4  ;;  %v6746_v4 = vld [vmem:[#allocation3 + $0x141] sm:$0xff] }
 0x4dc   : > { %9956 = vmatprep.mubr.msk.f32.mxu1 %vm330_vm2, %v13534_v19  ;;  %v6747_v19 = vld [vmem:[#allocation3 + $0x151] sm:$0xff] }
 0x4df   : > { %9957 = vmatmul.mubr.msk.f32.gmra.mrb[24].mxu1 %vm330_vm2, %v12872_v62  ;;  %v10426_v62 = vpack.c.bf16 %v6761_v8, %v6760_v20  ;;  %v6753_v20 = vld [vmem:[#allocation3 + $0x199] sm:$0xff]  ;;  %v6754_v8 = vld [vmem:[#allocation3 + $0x1a1] sm:$0xff] }
 0x4e0   : > { %9959 = vmatprep.mubr.msk.f32.mxu1 %vm330_vm2, %v13076_v21 }
 0x4e3   : > { %9960 = vmatmul.mubr.msk.f32.gmra.mrb[26].mxu1 %vm330_vm2, %v13080_v59 }
 0x4e4   : > { %9986 = vmatprep.mubr.msk.f32.mxu1 %vm330_vm2, %v12638_v17  ;;  %v10430_v17 = vpack.c.bf16 %v6763_v10, %v6762_v6  ;;  %v7122_v6 = vld [vmem:[#allocation3 + $0x3a] sm:$0xff]  ;;  %v7123_v10 = vld [vmem:[#allocation3 + $0x4a] sm:$0xff] }
 0x4e7   : > { %9987 = vmatmul.mubr.msk.f32.vlgmr.msra.gmra.mrb[28].mxu1 %vm330_vm2, %v12642_v14  ;;  %v10434_v14 = vpack.c.bf16 %v6765_v43, %v6764_v38  ;;  %v7127_v38 = vld [vmem:[#allocation3 + $0x7a] sm:$0xff]  ;;  %v7128_v43 = vld [vmem:[#allocation3 + $0x82] sm:$0xff] }
 0x4e8   : > { %9989 = vmatprep.mubr.msk.f32.mxu1 %vm330_vm2, %v12646_v12  ;;  %10421 = vmatpush3.bf16.msra.mxu1 %v10418_v45  ;;  %v6766_v12 = vld [vmem:[#allocation8 + $0x2f0] sm:$0xff]  ;;  %v7155_v45 = vld [vmem:[#allocation8 + $0x308] sm:$0xff] }
 0x4e9   : > { %10423 = vmatprep.subr.bf16.mxu1 %v10422_v34 }
 0x4eb   : > { %9990 = vmatmul.mubr.msk.f32.gmra.mrb[30].mxu1 %vm330_vm2, %v12650_v40  ;;  %v10438_v40 = vpack.c.bf16 %v6767_v48, %v6766_v12  ;;  %v7130_v12 = vld [vmem:[#allocation3 + $0x9a] sm:$0xff]  ;;  %v7131_v48 = vld [vmem:[#allocation3 + $0xaa] sm:$0xff] }
 0x4ec   : > { %9992 = vmatprep.mubr.msk.f32.mxu1 %vm330_vm2, %v12654_v33  ;;  %10425 = vmatpush3.bf16.msra.mxu1 %v10422_v34  ;;  %v7154_v33 = vld [vmem:[#allocation8 + $0x300] sm:$0xff] }
 0x4ed   : > { %10427 = vmatprep.subr.bf16.mxu1 %v10426_v62  ;;  %v6750_v34 = vld [vmem:[#allocation3 + $0x171] sm:$0xff] }
 0x4ef   : > { %9993 = vmatmul.mubr.msk.f32.gmra.mrb[0].mxu1 %vm330_vm2, %v12658_v42  ;;  %v10442_v42 = vpack.c.bf16 %v7155_v45, %v7154_v33  ;;  %v7133_v33 = vld [vmem:[#allocation3 + $0xc2] sm:$0xff]  ;;  %v7134_v45 = vld [vmem:[#allocation3 + $0xca] sm:$0xff] }
 0x4f0   : > { %9995 = vmatprep.mubr.msk.f32.mxu1 %vm330_vm2, %v12662_v52  ;;  %10429 = vmatpush3.bf16.msra.mxu1 %v10426_v62  ;;  %v6355_v52 = vld [vmem:[#allocation3 + $0x198] sm:$0xff] }
 0x4f1   : > { %10431 = vmatprep.subr.bf16.mxu1 %v10430_v17  ;;  %v7121_v62 = vld [vmem:[#allocation3 + $0x32] sm:$0xff] }
 0x4f3   : > { %9996 = vmatmul.mubr.msk.f32.gmra.mrb[2].mxu1 %vm330_vm2, %v12666_v54  ;;  %v6356_v54 = vld [vmem:[#allocation3 + $0x1a0] sm:$0xff] }
 0x4f4   : > { %9998 = vmatprep.mubr.msk.f32.mxu1 %vm330_vm2, %v12670_v15  ;;  %10433 = vmatpush3.bf16.msra.mxu1 %v10430_v17  ;;  %v7156_v15 = vld [vmem:[#allocation8 + $0x310] sm:$0xff]  ;;  %v7124_v17 = vld [vmem:[#allocation3 + $0x52] sm:$0xff] }
 0x4f5   : > { %10435 = vmatprep.subr.bf16.mxu1 %v10434_v14 }
 0x4f7   : > { %9999 = vmatmul.mubr.msk.f32.gmra.mrb[4].mxu1 %vm330_vm2, %v12678_v58  ;;  %v7157_v58 = vld [vmem:[#allocation8 + $0x318] sm:$0xff] }
 0x4f8   : > { %10001 = vmatprep.mubr.msk.f32.mxu1 %vm330_vm2, %v12682_v26  ;;  %10437 = vmatpush3.bf16.msra.mxu1 %v10434_v14  ;;  %v6723_v26 = vld [vmem:[#allocation3 + $0x31] sm:$0xff] }
 0x4f9   : > { %10439 = vmatprep.subr.bf16.mxu1 %v10438_v40  ;;  %v7129_v14 = vld [vmem:[#allocation3 + $0x92] sm:$0xff] }
 0x4fb   : > { %10002 = vmatmul.mubr.msk.f32.gmra.mrb[6].mxu1 %vm330_vm2, %v12686_v30  ;;  %v10446_v30 = vpack.c.bf16 %v7157_v58, %v7156_v15  ;;  %v7138_v15 = vld [vmem:[#allocation3 + $0xfa] sm:$0xff]  ;;  %v7139_v58 = vld [vmem:[#allocation3 + $0x10a] sm:$0xff] }
 0x4fc   : > { %10004 = vmatprep.mubr.msk.f32.mxu1 %vm330_vm2, %v12690_v31  ;;  %10441 = vmatpush3.bf16.msra.mxu1 %v10438_v40  ;;  %v6724_v31 = vld [vmem:[#allocation3 + $0x39] sm:$0xff] }
 0x4fd   : > { %10443 = vmatprep.subr.bf16.mxu1 %v10442_v42  ;;  %v7132_v40 = vld [vmem:[#allocation3 + $0xb2] sm:$0xff] }
 0x4ff   : > { %10005 = vmatmul.mubr.msk.f32.gmra.mrb[8].mxu1 %vm330_vm2, %v12694_v32  ;;  %v7158_v32 = vld [vmem:[#allocation8 + $0x320] sm:$0xff] }
 0x500   : > { %10007 = vmatprep.mubr.msk.f32.mxu1 %vm330_vm2, %v12698_v36  ;;  %v7159_v36 = vld [vmem:[#allocation8 + $0x328] sm:$0xff] }
 0x503   : > { %10008 = vmatmul.mubr.msk.f32.gmra.mrb[10].mxu1 %vm330_vm2, %v12702_v37  ;;  %v6725_v37 = vld [vmem:[#allocation3 + $0x49] sm:$0xff] }
 0x504   : > { %10010 = vmatprep.mubr.msk.f32.mxu1 %vm330_vm2, %v12706_v57  ;;  %v10450_v57 = vpack.c.bf16 %v7159_v36, %v7158_v32  ;;  %v7143_v32 = vld [vmem:[#allocation3 + $0x13a] sm:$0xff]  ;;  %v7144_v36 = vld [vmem:[#allocation3 + $0x142] sm:$0xff] }
 0x507   : > { %10011 = vmatmul.mubr.msk.f32.gmra.mrb[12].mxu1 %vm330_vm2, %v12710_v3  ;;  %v6726_v3 = vld [vmem:[#allocation3 + $0x51] sm:$0xff] }
 0x508   : > { %10013 = vmatprep.mubr.msk.f32.mxu1 %vm330_vm2, %v12714_v5  ;;  %v7160_v5 = vld [vmem:[#allocation8 + $0x330] sm:$0xff] }
 0x50b   : > { %10014 = vmatmul.mubr.msk.f32.gmra.mrb[14].mxu1 %vm330_vm2, %v12718_v9  ;;  %v7161_v9 = vld [vmem:[#allocation8 + $0x338] sm:$0xff] }
 0x50c   : > { %10016 = vmatprep.mubr.msk.f32.mxu1 %vm330_vm2, %v12722_v0  ;;  %v6727_v0 = vld [vmem:[#allocation3 + $0x61] sm:$0xff] }
 0x50f   : > { %10017 = vmatmul.mubr.msk.f32.gmra.mrb[16].mxu1 %vm330_vm2, %v12726_v7  ;;  %v10454_v7 = vpack.c.bf16 %v7161_v9, %v7160_v5  ;;  %v7148_v5 = vld [vmem:[#allocation3 + $0x172] sm:$0xff]  ;;  %v7151_v9 = vld [vmem:[#allocation3 + $0x19a] sm:$0xff] }
 0x510   : > { %10019 = vmatprep.mubr.msk.f32.mxu1 %vm330_vm2, %v12730_v11  ;;  %v6728_v11 = vld [vmem:[#allocation3 + $0x69] sm:$0xff] }
 0x513   : > { %10020 = vmatmul.mubr.msk.f32.gmra.mrb[18].mxu1 %vm330_vm2, %v12734_v35  ;;  %v7162_v35 = vld [vmem:[#allocation8 + $0x340] sm:$0xff] }
 0x514   : > { %10022 = vmatprep.mubr.msk.f32.mxu1 %vm330_vm2, %v12738_v51  ;;  %v7163_v51 = vld [vmem:[#allocation8 + $0x348] sm:$0xff] }
 0x517   : > { %10023 = vmatmul.mubr.msk.f32.gmra.mrb[20].mxu1 %vm330_vm2, %v12742_v61  ;;  %v6729_v61 = vld [vmem:[#allocation3 + $0x79] sm:$0xff] }
 0x518   : > { %10025 = vmatprep.mubr.msk.f32.mxu1 %vm330_vm2, %v12746_v41  ;;  %v10458_v41 = vpack.c.bf16 %v7163_v51, %v7162_v35 }
 0x51b   : > { %10026 = vmatmul.mubr.msk.f32.gmra.mrb[22].mxu1 %vm330_vm2, %v12750_v50  ;;  %v6730_v50 = vld [vmem:[#allocation3 + $0x81] sm:$0xff] }
 0x51c   : > { %10028 = vmatprep.mubr.msk.f32.mxu1 %vm330_vm2, %v12940_v22  ;;  %v7164_v22 = vld [vmem:[#allocation8 + $0x350] sm:$0xff] }
 0x51f   : > { %10029 = vmatmul.mubr.msk.f32.gmra.mrb[24].mxu1 %vm330_vm2, %v12944_v28  ;;  %v7165_v28 = vld [vmem:[#allocation8 + $0x358] sm:$0xff] }
 0x520   : > { %10031 = vmatprep.mubr.msk.f32.mxu1 %vm330_vm2, %v6355_v52  ;;  %v10462_v56 = vpack.c.bf16 %v7165_v28, %v7164_v22  ;;  %v7136_v52 = vld [vmem:[#allocation3 + $0xe2] sm:$0xff] }
 0x523   : > { %10032 = vmatmul.mubr.msk.f32.gmra.mrb[26].mxu1 %vm330_vm2, %v6356_v54  ;;  %v7137_v54 = vld [vmem:[#allocation3 + $0xf2] sm:$0xff] }
 0x524   : > { %10058 = vmatprep.mubr.msk.f32.mxu1 %vm330_vm2, %v6723_v26  ;;  %v7140_v26 = vld [vmem:[#allocation3 + $0x112] sm:$0xff] }
 0x527   : > { %10059 = vmatmul.mubr.msk.f32.vlgmr.msra.gmra.mrb[28].mxu1 %vm330_vm2, %v6724_v31  ;;  %v7142_v31 = vld [vmem:[#allocation3 + $0x12a] sm:$0xff] }
 0x528   : > { %10061 = vmatprep.mubr.msk.f32.mxu1 %vm330_vm2, %v6725_v37  ;;  %10445 = vmatpush3.bf16.msra.mxu1 %v10442_v42  ;;  %v7135_v42 = vld [vmem:[#allocation3 + $0xda] sm:$0xff]  ;;  %v7145_v37 = vld [vmem:[#allocation3 + $0x152] sm:$0xff] }
 0x529   : > { %10447 = vmatprep.subr.bf16.mxu1 %v10446_v30 }
 0x52b   : > { %10062 = vmatmul.mubr.msk.f32.gmra.mrb[30].mxu1 %vm330_vm2, %v6726_v3  ;;  %v7147_v3 = vld [vmem:[#allocation3 + $0x16a] sm:$0xff] }
 0x52c   : > { %10064 = vmatprep.mubr.msk.f32.mxu1 %vm330_vm2, %v6727_v0  ;;  %10449 = vmatpush3.bf16.msra.mxu1 %v10446_v30  ;;  %v7141_v30 = vld [vmem:[#allocation3 + $0x122] sm:$0xff] }
 0x52d   : > { %10451 = vmatprep.subr.bf16.mxu1 %v10450_v57  ;;  %v7152_v0 = vld [vmem:[#allocation3 + $0x1a2] sm:$0xff] }
 0x52f   : > { %10065 = vmatmul.mubr.msk.f32.gmra.mrb[0].mxu1 %vm330_vm2, %v6728_v11  ;;  %v13535_v11 = vld [vmem:[#allocation21_spill] sm:$0xff] }
 0x530   : > { %10067 = vmatprep.mubr.msk.f32.mxu1 %vm330_vm2, %v6729_v61  ;;  %10453 = vmatpush3.bf16.msra.mxu1 %v10450_v57  ;;  %v7146_v57 = vld [vmem:[#allocation3 + $0x15a] sm:$0xff]  ;;  %v13218_v61 = vld [vmem:[%s13277_s4] ss:$0 sm:$0xff] }
 0x531   : > { %10455 = vmatprep.subr.bf16.mxu1 %v10454_v7 }
 0x533   : > { %10068 = vmatmul.mubr.msk.f32.gmra.mrb[2].mxu1 %vm330_vm2, %v6730_v50 }
 0x534   : > { %10070 = vmatprep.mubr.msk.f32.mxu1 %vm330_vm2, %v6731_v49  ;;  %10457 = vmatpush3.bf16.msra.mxu1 %v10454_v7 }
 0x535   : > { %10459 = vmatprep.subr.bf16.mxu1 %v10458_v41 }
 0x537   : > { %10071 = vmatmul.mubr.msk.f32.gmra.mrb[4].mxu1 %vm330_vm2, %v6732_v18 }
 0x538   : > { %10073 = vmatprep.mubr.msk.f32.mxu1 %vm330_vm2, %v6733_v63  ;;  %10461 = vmatpush3.bf16.msra.mxu1 %v10458_v41  ;;  %v13536_v41 = vld [vmem:[#allocation22_spill] sm:$0xff] }
 0x539   : > { %10463 = vmatprep.subr.bf16.mxu1 %v10462_v56 }
 0x53b   : > { %10074 = vmatmul.mubr.msk.f32.gmra.mrb[6].mxu1 %vm330_vm2, %v6734_v27 }
 0x53c   : > { %10076 = vmatprep.mubr.msk.f32.mxu1 %vm330_vm2, %v6735_v1  ;;  %10465 = vmatpush3.bf16.msra.mxu1 %v10462_v56  ;;  %v13538_v56 = vld [vmem:[#allocation49_spill] sm:$0xff] }
 0x53f   : > { %10077 = vmatmul.mubr.msk.f32.gmra.mrb[8].mxu1 %vm330_vm2, %v6736_v13 }
 0x540   : > { %10079 = vmatprep.mubr.msk.f32.mxu1 %vm330_vm2, %v6737_v23 }
 0x543   : > { %10080 = vmatmul.mubr.msk.f32.gmra.mrb[10].mxu1 %vm330_vm2, %v6738_v39 }
 0x544   : > { %10082 = vmatprep.mubr.msk.f32.mxu1 %vm330_vm2, %v6739_v2 }
 0x547   : > { %10083 = vmatmul.mubr.msk.f32.gmra.mrb[12].mxu1 %vm330_vm2, %v6740_v46 }
 0x548   : > { %10085 = vmatprep.mubr.msk.f32.mxu1 %vm330_vm2, %v6741_v53 }
 0x54b   : > { %10086 = vmatmul.mubr.msk.f32.gmra.mrb[14].mxu1 %vm330_vm2, %v6742_v25 }
 0x54c   : > { %10088 = vmatprep.mubr.msk.f32.mxu1 %vm330_vm2, %v6743_v44 }
 0x54f   : > { %10089 = vmatmul.mubr.msk.f32.gmra.mrb[16].mxu1 %vm330_vm2, %v6744_v16 }
 0x550   : > { %10091 = vmatprep.mubr.msk.f32.mxu1 %vm330_vm2, %v6745_v47 }
 0x553   : > { %10092 = vmatmul.mubr.msk.f32.gmra.mrb[18].mxu1 %vm330_vm2, %v6746_v4 }
 0x554   : > { %10094 = vmatprep.mubr.msk.f32.mxu1 %vm330_vm2, %v6747_v19 }
 0x557   : > { %10095 = vmatmul.mubr.msk.f32.gmra.mrb[20].mxu1 %vm330_vm2, %v6748_v60 }
 0x558   : > { %10097 = vmatprep.mubr.msk.f32.mxu1 %vm330_vm2, %v6749_v24 }
 0x55b   : > { %10098 = vmatmul.mubr.msk.f32.gmra.mrb[22].mxu1 %vm330_vm2, %v6750_v34 }
 0x55c   : > { %10100 = vmatprep.mubr.msk.f32.mxu1 %vm330_vm2, %v13008_v29  ;;  %v7125_v29 = vld [vmem:[#allocation3 + $0x62] sm:$0xff] }
 0x55f   : > { %10101 = vmatmul.mubr.msk.f32.gmra.mrb[24].mxu1 %vm330_vm2, %v13012_v55  ;;  %v7126_v55 = vld [vmem:[#allocation3 + $0x6a] sm:$0xff] }
 0x560   : > { %10103 = vmatprep.mubr.msk.f32.mxu1 %vm330_vm2, %v6753_v20 }
 0x563   : > { %10104 = vmatmul.mubr.msk.f32.gmra.mrb[26].mxu1 %vm330_vm2, %v6754_v8 }
 0x564   : > { %10130 = vmatprep.mubr.msk.f32.mxu1 %vm330_vm2, %v7121_v62 }
 0x567   : > { %10131 = vmatmul.mubr.msk.f32.vlgmr.msra.gmra.mrb[28].mxu1 %vm330_vm2, %v7122_v6 }
 0x568   : > { %10133 = vmatprep.mubr.msk.f32.mxu1 %vm330_vm2, %v7123_v10 }
 0x56b   : > { %10134 = vmatmul.mubr.msk.f32.gmra.mrb[30].mxu1 %vm330_vm2, %v7124_v17 }
 0x56c   : > { %10136 = vmatprep.mubr.msk.f32.mxu1 %vm330_vm2, %v7125_v29 }
 0x56f   : > { %10137 = vmatmul.mubr.msk.f32.gmra.mrb[0].mxu1 %vm330_vm2, %v7126_v55 }
 0x570   : > { %10139 = vmatprep.mubr.msk.f32.mxu1 %vm330_vm2, %v7127_v38 }
 0x573   : > { %10140 = vmatmul.mubr.msk.f32.gmra.mrb[2].mxu1 %vm330_vm2, %v7128_v43 }
 0x574   : > { %10142 = vmatprep.mubr.msk.f32.mxu1 %vm330_vm2, %v7129_v14 }
 0x577   : > { %10143 = vmatmul.mubr.msk.f32.gmra.mrb[4].mxu1 %vm330_vm2, %v7130_v12 }
 0x578   : > { %10145 = vmatprep.mubr.msk.f32.mxu1 %vm330_vm2, %v7131_v48 }
 0x57b   : > { %10146 = vmatmul.mubr.msk.f32.gmra.mrb[6].mxu1 %vm330_vm2, %v7132_v40 }
 0x57c   : > { %10148 = vmatprep.mubr.msk.f32.mxu1 %vm330_vm2, %v7133_v33 }
 0x57f   : > { %10149 = vmatmul.mubr.msk.f32.gmra.mrb[8].mxu1 %vm330_vm2, %v7134_v45 }
 0x580   : > { %10151 = vmatprep.mubr.msk.f32.mxu1 %vm330_vm2, %v7135_v42 }
 0x583   : > { %10152 = vmatmul.mubr.msk.f32.gmra.mrb[10].mxu1 %vm330_vm2, %v7136_v52 }
 0x584   : > { %10154 = vmatprep.mubr.msk.f32.mxu1 %vm330_vm2, %v7137_v54 }
 0x587   : > { %10155 = vmatmul.mubr.msk.f32.gmra.mrb[12].mxu1 %vm330_vm2, %v7138_v15 }
 0x588   : > { %10157 = vmatprep.mubr.msk.f32.mxu1 %vm330_vm2, %v7139_v58 }
 0x58b   : > { %10158 = vmatmul.mubr.msk.f32.gmra.mrb[14].mxu1 %vm330_vm2, %v7140_v26 }
 0x58c   : > { %10160 = vmatprep.mubr.msk.f32.mxu1 %vm330_vm2, %v7141_v30 }
 0x58f   : > { %10161 = vmatmul.mubr.msk.f32.gmra.mrb[16].mxu1 %vm330_vm2, %v7142_v31 }
 0x590   : > { %10163 = vmatprep.mubr.msk.f32.mxu1 %vm330_vm2, %v7143_v32 }
 0x593   : > { %10164 = vmatmul.mubr.msk.f32.gmra.mrb[18].mxu1 %vm330_vm2, %v7144_v36 }
 0x594   : > { %10166 = vmatprep.mubr.msk.f32.mxu1 %vm330_vm2, %v7145_v37 }
 0x597   : > { %10167 = vmatmul.mubr.msk.f32.gmra.mrb[20].mxu1 %vm330_vm2, %v7146_v57 }
 0x598   : > { %10169 = vmatprep.mubr.msk.f32.mxu1 %vm330_vm2, %v7147_v3 }
 0x59b   : > { %10170 = vmatmul.mubr.msk.f32.gmra.mrb[22].mxu1 %vm330_vm2, %v7148_v5 }
 0x59c   : > { %10172 = vmatprep.mubr.msk.f32.mxu1 %vm330_vm2, %v13076_v21 }
 0x59f   : > { %10173 = vmatmul.mubr.msk.f32.gmra.mrb[24].mxu1 %vm330_vm2, %v13080_v59  ;;  %v13537_v59 = vld [vmem:[#allocation48_spill] sm:$0xff] }
 0x5a0   : > { %10175 = vmatprep.mubr.msk.f32.mxu1 %vm330_vm2, %v7151_v9 }
 0x5a3   : > { %10176 = vmatmul.mubr.msk.f32.gmra.mrb[26].mxu1 %vm330_vm2, %v7152_v0 }
 0x63a   : > { %v10132_v7 = vpop.f32.mrb[28].mxu1 }
 0x63b   : > { %v10478_v35 = vadd.f32 %v10132_v7, %v13535_v11  ;;  %v7328_v51 = vpop.f32.mrb[29].mxu1 }
 0x63c   : > { %v10479_v21 = vadd.f32 %v7328_v51, %v13536_v41 }
 0x63d   : > { %v7527_v27 = vadd.f32 %v10478_v35, %v13218_v61 }
 0x63e   : > { %v10135_v50 = vpop.f32.mrb[30].mxu1  ;;  %v7526_v22 = vadd.f32 %v10479_v21, %v13218_v61 }
 0x63f   : > { %v10480_v28 = vadd.f32 %v10135_v50, %v13537_v59  ;;  %v7338_v49 = vpop.f32.mrb[31].mxu1 }
 0x640   : > { %v10481_v18 = vadd.f32 %v7338_v49, %v13538_v56  ;;  %7558 = vxpose.xlu0.b32.start [1/16] (narrow) %v7526_v22, 8 }
 0x641   : > { %v7529_v46 = vadd.f32 %v10480_v28, %v13218_v61 }
 0x642   : > { %v10138_v63 = vpop.f32.mrb[0].mxu1  ;;  %v7528_v23 = vadd.f32 %v10481_v18, %v13218_v61 }
 0x643   : > { %v7348_v1 = vpop.f32.mrb[1].mxu1  ;;  %v7531_v47 = vadd.f32 %v10138_v63, %v13218_v61 }
 0x644   : > { %7559 = vxpose.xlu0.b32.cont [2/16] (narrow) %v7527_v27, 8  ;;  %v7530_v25 = vadd.f32 %v13218_v61, %v7348_v1 }
 0x646   : > { %v10141_v13 = vpop.f32.mrb[2].mxu1 }
 0x647   : > { %v7358_v39 = vpop.f32.mrb[3].mxu1  ;;  %v7533_v20 = vadd.f32 %v10141_v13, %v13218_v61 }
 0x648   : > { %7560 = vxpose.xlu0.b32.cont [3/16] (narrow) %v7528_v23, 8  ;;  %v7532_v60 = vadd.f32 %v13218_v61, %v7358_v39 }
 0x64a   : > { %v10144_v2 = vpop.f32.mrb[4].mxu1 }
 0x64b   : > { %v7368_v53 = vpop.f32.mrb[5].mxu1  ;;  %v7535_v38 = vadd.f32 %v10144_v2, %v13218_v61 }
 0x64c   : > { %7561 = vxpose.xlu0.b32.cont [4/16] (narrow) %v7529_v46, 8  ;;  %v7534_v10 = vadd.f32 %v13218_v61, %v7368_v53 }
 0x64e   : > { %v10147_v44 = vpop.f32.mrb[6].mxu1 }
 0x64f   : > { %v7378_v16 = vpop.f32.mrb[7].mxu1  ;;  %v7537_v42 = vadd.f32 %v10147_v44, %v13218_v61 }
 0x650   : > { %7562 = vxpose.xlu0.b32.cont [5/16] (narrow) %v7530_v25, 8  ;;  %v7536_v48 = vadd.f32 %v13218_v61, %v7378_v16 }
 0x652   : > { %v10150_v4 = vpop.f32.mrb[8].mxu1 }
 0x653   : > { %v7388_v19 = vpop.f32.mrb[9].mxu1  ;;  %v7539_v57 = vadd.f32 %v10150_v4, %v13218_v61 }
 0x654   : > { %7563 = vxpose.xlu0.b32.cont [6/16] (narrow) %v7531_v47, 8  ;;  %v7538_v26 = vadd.f32 %v13218_v61, %v7388_v19 }
 0x656   : > { %v10153_v24 = vpop.f32.mrb[10].mxu1 }
 0x657   : > { %v7398_v34 = vpop.f32.mrb[11].mxu1  ;;  %v7541_v22 = vadd.f32 %v10153_v24, %v13218_v61 }
 0x658   : > { %7564 = vxpose.xlu0.b32.cont [7/16] (narrow) %v7532_v60, 8  ;;  %v7540_v11 = vadd.f32 %v13218_v61, %v7398_v34 }
 0x65a   : > { %v10156_v8 = vpop.f32.mrb[12].mxu1 }
 0x65b   : > { %v7408_v62 = vpop.f32.mrb[13].mxu1  ;;  %v7543_v55 = vadd.f32 %v10156_v8, %v13218_v61 }
 0x65c   : > { %7565 = vxpose.xlu0.b32.cont [8/16] (narrow) %v7533_v20, 8  ;;  %v7542_v6 = vadd.f32 %v13218_v61, %v7408_v62 }
 0x65e   : > { %7590 = vxpose.xlu1.b32.start [1/16] (narrow) %v7542_v6, 8  ;;  %v10159_v17 = vpop.f32.mrb[14].mxu1 }
 0x65f   : > { %v7418_v29 = vpop.f32.mrb[15].mxu1  ;;  %v7545_v45 = vadd.f32 %v10159_v17, %v13218_v61 }
 0x660   : > { %7566 = vxpose.xlu0.b32.cont [9/16] (narrow) %v7534_v10, 8  ;;  %v7544_v12 = vadd.f32 %v13218_v61, %v7418_v29 }
 0x662   : > { %7591 = vxpose.xlu1.b32.cont [2/16] (narrow) %v7543_v55, 8  ;;  %v10162_v43 = vpop.f32.mrb[16].mxu1 }
 0x663   : > { %v7428_v14 = vpop.f32.mrb[17].mxu1  ;;  %v7547_v36 = vadd.f32 %v10162_v43, %v13218_v61 }
 0x664   : > { %7567 = vxpose.xlu0.b32.cont [10/16] (narrow) %v7535_v38, 8  ;;  %v7546_v58 = vadd.f32 %v13218_v61, %v7428_v14 }
 0x666   : > { %7592 = vxpose.xlu1.b32.cont [3/16] (narrow) %v7544_v12, 8  ;;  %v10165_v40 = vpop.f32.mrb[18].mxu1 }
 0x667   : > { %v7438_v33 = vpop.f32.mrb[19].mxu1  ;;  %v7549_v21 = vadd.f32 %v10165_v40, %v13218_v61 }
 0x668   : > { %7568 = vxpose.xlu0.b32.cont [11/16] (narrow) %v7536_v48, 8  ;;  %v7548_v0 = vadd.f32 %v13218_v61, %v7438_v33 }
 0x66a   : > { %7593 = vxpose.xlu1.b32.cont [4/16] (narrow) %v7545_v45, 8  ;;  %v10168_v52 = vpop.f32.mrb[20].mxu1 }
 0x66b   : > { %v7551_v54 = vadd.f32 %v10168_v52, %v13218_v61  ;;  %v7448_v15 = vpop.f32.mrb[21].mxu1 }
 0x66c   : > { %7569 = vxpose.xlu0.b32.cont [12/16] (narrow) %v7537_v42, 8  ;;  %v7550_v59 = vadd.f32 %v13218_v61, %v7448_v15 }
 0x66e   : > { %7594 = vxpose.xlu1.b32.cont [5/16] (narrow) %v7546_v58, 8  ;;  %v10171_v30 = vpop.f32.mrb[22].mxu1 }
 0x66f   : > { %v7553_v31 = vadd.f32 %v10171_v30, %v13218_v61  ;;  %v7458_v32 = vpop.f32.mrb[23].mxu1 }
 0x670   : > { %v7552_v37 = vadd.f32 %v13218_v61, %v7458_v32  ;;  %7570 = vxpose.xlu0.b32.cont [13/16] (narrow) %v7538_v26, 8 }
 0x672   : > { %7595 = vxpose.xlu1.b32.cont [6/16] (narrow) %v7547_v36, 8  ;;  %v10174_v3 = vpop.f32.mrb[24].mxu1 }
 0x673   : > { %v7555_v5 = vadd.f32 %v10174_v3, %v13218_v61  ;;  %v7468_v9 = vpop.f32.mrb[25].mxu1 }
 0x674   : > { %v7554_v7 = vadd.f32 %v13218_v61, %v7468_v9  ;;  %7571 = vxpose.xlu0.b32.cont [14/16] (narrow) %v7539_v57, 8 }
 0x676   : > { %7596 = vxpose.xlu1.b32.cont [7/16] (narrow) %v7548_v0, 8  ;;  %v10177_v35 = vpop.f32.mrb[26].mxu1 }
 0x677   : > { %v7557_v51 = vadd.f32 %v10177_v35, %v13218_v61  ;;  %v7478_v41 = vpop.f32.mrb[27].mxu1 }
 0x678   : > { %v7556_v50 = vadd.f32 %v13218_v61, %v7478_v41  ;;  %7572 = vxpose.xlu0.b32.cont [15/16] (narrow) %v7540_v11, 8 }
 0x67a   : > { %7597 = vxpose.xlu1.b32.cont [8/16] (narrow) %v7549_v21, 8 }
 0x67c   : > { %7573 = vxpose.xlu0.b32.end [16/16] (narrow) %v7541_v22, 8 }
 0x67e   : > { %7598 = vxpose.xlu1.b32.cont [9/16] (narrow) %v7550_v59, 8 }
 0x682   : > { %7599 = vxpose.xlu1.b32.cont [10/16] (narrow) %v7551_v54, 8 }
 0x686   : > { %7600 = vxpose.xlu1.b32.cont [11/16] (narrow) %v7552_v37, 8 }
 0x68a   : > { %7601 = vxpose.xlu1.b32.cont [12/16] (narrow) %v7553_v31, 8 }
 0x68e   : > { %7602 = vxpose.xlu1.b32.cont [13/16] (narrow) %v7554_v7, 8 }
 0x692   : > { %7603 = vxpose.xlu1.b32.cont [14/16] (narrow) %v7555_v5, 8 }
 0x696   : > { %7604 = vxpose.xlu1.b32.cont [15/16] (narrow) %v7556_v50, 8 }
 0x69a   : > { %7605 = vxpose.xlu1.b32.end [16/16] (narrow) %v7557_v51, 8 }
 0x6c0   : > { %v7574_v28 = vpop.trf.xlu0 }
 0x6c1   : > { %7622 = vst [vmem:[%s273_s21] sm:$0xff] %v7574_v28 }
 0x6de   : > { %v7606_v49 = vpop.trf.xlu1 }
 0x6df   : > { %7623 = vst [vmem:[%s273_s21 + $0x8] sm:$0xff] %v7606_v49 }
 0x6e0 PF: > { %p16_p9 = scmp.ge.s32.totalorder %s11314_s10, 4   ;;  %s13539_s18 = smov %s11169_s19 }
 0x6e1   : > { %s13540_s19 = smov %s11173_s20  ;;  %s13541_s20 = smov %s11325_s15 }
 0x6e2   : > { %s13542_s21 = smov %s11314_s10  ;;  %18 = sbr.rel (!%p16_p9) target bundleno = 4 (0x4), region = 108 }
 0x6e9   :  { %7645 = vsyncpa [#allocation5], 1 }
 0x6ea   :  { %7647 = vsyncpa [#allocation5 + $0x1], 1 }
 0x6eb   :  { %7648 = vsyncpa [#allocation7], 1 }

</bundles_post_ra>
